<compile_context>
chip_gen: v5e
topology: v5e:2x2
jax: 0.10.0
libtpu: 0.0.40
codegen_flags: <defaults>
</compile_context>

<pallas_src>
import functools

import jax
import jax.numpy as jnp
from jax.experimental import pallas as pl
from jax.experimental.pallas import tpu as pltpu


_VMEM = pl.BlockSpec(memory_space=pltpu.MemorySpace.VMEM)
_SMEM = pl.BlockSpec(memory_space=pltpu.MemorySpace.SMEM)


# ----------------------------------------------------------------------------
# Helpers
# ----------------------------------------------------------------------------

def _argmax_onehot(logits):
    """First-occurrence argmax along the last dim -> ((B,1) int32, (B,V) one-hot)."""
    V = logits.shape[-1]
    iota = jax.lax.broadcasted_iota(jnp.int32, logits.shape, 1)
    m = jnp.max(logits, axis=-1, keepdims=True)
    top1 = jnp.min(jnp.where(logits == m, iota, V), axis=-1, keepdims=True)
    return top1, (iota == top1).astype(jnp.float32)


def _gru_cell(gi, h, whh, bhh, H):
    """PyTorch-style GRU cell given precomputed input-gate projection gi (B,3H)."""
    gh = jnp.dot(h, whh, preferred_element_type=jnp.float32) + bhh
    r = jax.nn.sigmoid(gi[:, :H] + gh[:, :H])
    z = jax.nn.sigmoid(gi[:, H:2 * H] + gh[:, H:2 * H])
    n = jnp.tanh(gi[:, 2 * H:] + r * gh[:, 2 * H:])
    return (1.0 - z) * n + z * h


def _decode_step(x, h, enc, proj, vattn_b,
                 wih, whh, bih, bhh, wdec, battn,
                 wctx, whout, bfcn, wfc, bfc, *, H, use_attention):
    """Fused decoder step: GRU -> [additive attention] -> logits (all values)."""
    gi = jnp.dot(x, wih, preferred_element_type=jnp.float32) + bih
    h_new = _gru_cell(gi, h, whh, bhh, H)                               # (B,H)

    if use_attention:
        # Additive attention over the time-major (S,B,2H) encoder states.
        # TODO(synk): no source-padding mask (reference Attention not given).
        pd = jnp.dot(h_new, wdec, preferred_element_type=jnp.float32) + battn   # (B,H)
        energy = jnp.tanh(proj + pd[None, :, :])                        # (S,B,H)
        scores = jnp.sum(energy * vattn_b, axis=-1, keepdims=True)      # (S,B,1)
        m = jnp.max(scores, axis=0, keepdims=True)                      # (1,B,1)
        e = jnp.exp(scores - m)                                         # (S,B,1)
        w = e * pl.reciprocal(jnp.sum(e, axis=0, keepdims=True), approx=True)
        # Context as a VPU weighted sum over the merged 2H encoder states
        # (no M=1 MXU matmul on the serial path).
        ctx = jnp.sum(w * enc, axis=0)                                  # (B,2H)
        # concat([ctx, h]) @ W_fcn  ==  ctx @ W_fcn[:2H] + h @ W_fcn[2H:]
        logits = (jnp.dot(ctx, wctx, preferred_element_type=jnp.float32)
                  + jnp.dot(h_new, whout, preferred_element_type=jnp.float32)
                  + bfcn)
    else:
        logits = jnp.dot(h_new, wfc, preferred_element_type=jnp.float32) + bfc
    return h_new, logits


# ----------------------------------------------------------------------------
# Encoder kernel: whole bi-directional GRU recurrence, ONE grid-free pallas_call
# ----------------------------------------------------------------------------

def _encoder_kernel(gif_ref, gib_ref, whh_f_ref, bhh_f_ref, whh_b_ref, bhh_b_ref,
                    encf_ref, encb_ref, hid_ref, *, S, B, H):
    whh_f, bhh_f = whh_f_ref[...], bhh_f_ref[...]
    whh_b, bhh_b = whh_b_ref[...], bhh_b_ref[...]
    h_f = jnp.zeros((B, H), jnp.float32)
    h_b = jnp.zeros((B, H), jnp.float32)
    # Fully unrolled serial recurrence; only h @ W_hh is on the critical path
    # (x @ W_ih for all steps and both directions was hoisted to one XLA matmul).
    for t in range(S):
        tb = S - 1 - t
        h_f = _gru_cell(gif_ref[t], h_f, whh_f, bhh_f, H)
        h_b = _gru_cell(gib_ref[tb], h_b, whh_b, bhh_b, H)
        encf_ref[t] = h_f
        encb_ref[tb] = h_b
    # TODO(synk): EncoderBiDirGRU final-hidden combination assumed = fwd + bwd.
    hid_ref[...] = h_f + h_b


def encoder_forward(params, src_seq):
    B, S = src_seq.shape
    H = params["enc_w_hh_f"].shape[0]

    # Embedding lookup + the non-recurrent input-gate projections for BOTH
    # directions and ALL timesteps as one tall matmul (merged (E,6H) weight),
    # done in XLA per the review (keeps the kernel VMEM footprint minimal).
    emb_tm = jnp.transpose(jnp.take(params["enc_embedding"], src_seq, axis=0),
                           (1, 0, 2))                                    # (S,B,E)
    wih = jnp.concatenate([params["enc_w_ih_f"], params["enc_w_ih_b"]], axis=1)
    bih = jnp.concatenate([params["enc_b_ih_f"], params["enc_b_ih_b"]], axis=1)
    gi = jnp.einsum("sbe,eg->sbg", emb_tm, wih,
                    preferred_element_type=jnp.float32) + bih            # (S,B,6H)
    gif, gib = gi[..., :3 * H], gi[..., 3 * H:]

    inputs = [gif, gib,
              params["enc_w_hh_f"], params["enc_b_hh_f"],
              params["enc_w_hh_b"], params["enc_b_hh_b"]]
    enc_f, enc_b, hidden = pl.pallas_call(
        functools.partial(_encoder_kernel, S=S, B=B, H=H),
        out_shape=(jax.ShapeDtypeStruct((S, B, H), jnp.float32),
                   jax.ShapeDtypeStruct((S, B, H), jnp.float32),
                   jax.ShapeDtypeStruct((B, H), jnp.float32)),
        in_specs=[_VMEM] * len(inputs),
        out_specs=(_VMEM, _VMEM, _VMEM),
    )(*inputs)

    # Merged (S,B,2H) encoder states + the loop-invariant attention projection
    # enc @ W_enc hoisted ONCE; everything stays time-major -> no transposes.
    enc = jnp.concatenate([enc_f, enc_b], axis=-1)                       # (S,B,2H)
    proj = jnp.einsum("sbk,kh->sbh", enc, params["attn_w_enc"],
                      preferred_element_type=jnp.float32)                # (S,B,H)
    return enc, proj, hidden


# ----------------------------------------------------------------------------
# Decoder kernels: whole decode loop in ONE grid-free pallas_call
# ----------------------------------------------------------------------------

def _decoder_tf_kernel(tf_ref, xt_ref, h0_ref, enc_ref, proj_ref, emb_ref,
                       wih_ref, whh_ref, bih_ref, bhh_ref,
                       wdec_ref, battn_ref, vattn_ref,
                       wctx_ref, whout_ref, bfcn_ref, wfc_ref, bfc_ref,
                       out_ref, *, T, B, H, V, use_attention):
    # Hoist all resident loads / broadcasts once, outside the unrolled loop.
    enc, proj, emb = enc_ref[...], proj_ref[...], emb_ref[...]
    vattn_b = vattn_ref[...].reshape(1, 1, H)
    wih, whh, bih, bhh = wih_ref[...], whh_ref[...], bih_ref[...], bhh_ref[...]
    wdec, battn = wdec_ref[...], battn_ref[...]
    wctx, whout, bfcn = wctx_ref[...], whout_ref[...], bfcn_ref[...]
    wfc, bfc = wfc_ref[...], bfc_ref[...]

    h = h0_ref[...]
    x = xt_ref[0]                                   # embedding of tgt_seq[:, 0]
    out_ref[0] = jnp.zeros((B, V), jnp.float32)     # outputs[0] stays zero (as in reference)

    for t in range(1, T):                           # fully unrolled decode loop
        h, logits = _decode_step(x, h, enc, proj, vattn_b, wih, whh, bih, bhh,
                                 wdec, battn, wctx, whout, bfcn, wfc, bfc,
                                 H=H, use_attention=use_attention)
        out_ref[t] = logits                          # resident (T,B,V) VMEM output
        if t < T - 1:
            # Next input: teacher embedding (gathered in the wrapper) vs the
            # model's own argmax.  The SMEM flag drawn at step t governs the
            # input of step t+1, exactly like the reference's per-iteration rand.
            _, oh_pred = _argmax_onehot(logits)
            x_pred = jnp.dot(oh_pred, emb, preferred_element_type=jnp.float32)
            tf = tf_ref[t].astype(jnp.float32)
            x = tf * xt_ref[t] + (1.0 - tf) * x_pred


def _decoder_free_kernel(x0_ref, h0_ref, enc_ref, proj_ref, emb_ref,
                         wih_ref, whh_ref, bih_ref, bhh_ref,
                         wdec_ref, battn_ref, vattn_ref,
                         wctx_ref, whout_ref, bfcn_ref, wfc_ref, bfc_ref,
                         out_ref, *, T, B, H, V, use_attention, eos_idx):
    enc, proj, emb = enc_ref[...], proj_ref[...], emb_ref[...]
    vattn_b = vattn_ref[...].reshape(1, 1, H)
    wih, whh, bih, bhh = wih_ref[...], whh_ref[...], bih_ref[...], bhh_ref[...]
    wdec, battn = wdec_ref[...], battn_ref[...]
    wctx, whout, bfcn = wctx_ref[...], whout_ref[...], bfcn_ref[...]
    wfc, bfc = wfc_ref[...], bfc_ref[...]

    h = h0_ref[...]
    x = x0_ref[...]                                  # embedding of the <sos> token
    done = jnp.zeros((1, 1), jnp.float32)            # 1.0 once the reference would break
    for t in range(T):                               # fully unrolled decode loop
        h, logits = _decode_step(x, h, enc, proj, vattn_b, wih, whh, bih, bhh,
                                 wdec, battn, wctx, whout, bfcn, wfc, bfc,
                                 H=H, use_attention=use_attention)
        # Reference order: outputs[t] is written, THEN `if (top1==eos).all(): break`.
        # The break fires only when the *current* step's argmax is EOS for the whole
        # batch (exactly what `done` tracks); the all-EOS step itself is still
        # written, later steps stay zero — matching the reference outputs exactly.
        out_ref[t] = logits * (1.0 - done)
        top1, oh_pred = _argmax_onehot(logits)
        all_eos = jnp.min((top1 == eos_idx).astype(jnp.float32),
                          axis=0, keepdims=True)     # (1,1): all rows emit EOS now
        done = jnp.maximum(done, all_eos)
        if t < T - 1:
            x = jnp.dot(oh_pred, emb, preferred_element_type=jnp.float32)


def _decoder_weight_inputs(params):
    H = params["dec_w_hh"].shape[0]
    wfcn = params["attn_fcn_w"]
    return [params["dec_embedding"],
            params["dec_w_ih"], params["dec_w_hh"],
            params["dec_b_ih"], params["dec_b_hh"],
            params["attn_w_dec"], params["attn_b"], params["attn_v"].reshape(1, H),
            wfcn[:2 * H], wfcn[2 * H:], params["attn_fcn_b"],
            params["dec_fc_w"], params["dec_fc_b"]]


def decode_teacher_forced(params, hidden, enc, proj, tgt_seq, tf_flags, use_attention):
    B, H = hidden.shape
    V = params["dec_fc_w"].shape[1]
    T = tgt_seq.shape[1]
    # Teacher inputs as gathered embeddings (T,B,E): no (T,B,V) one-hot array.
    x_teacher = jnp.transpose(jnp.take(params["dec_embedding"], tgt_seq, axis=0),
                              (1, 0, 2))
    inputs = [tf_flags, x_teacher, hidden, enc, proj] + _decoder_weight_inputs(params)
    out_tm = pl.pallas_call(
        functools.partial(_decoder_tf_kernel, T=T, B=B, H=H, V=V,
                          use_attention=use_attention),
        out_shape=jax.ShapeDtypeStruct((T, B, V), jnp.float32),
        in_specs=[_SMEM] + [_VMEM] * (len(inputs) - 1),
        out_specs=_VMEM,
    )(*inputs)
    return jnp.transpose(out_tm, (1, 0, 2))                              # (B,T,V)


def decode_free_running(params, hidden, enc, proj, max_len, use_attention,
                        start_token_idx, eos_token_idx):
    B, H = hidden.shape
    V = params["dec_fc_w"].shape[1]
    x0 = jnp.tile(params["dec_embedding"][start_token_idx][None, :], (B, 1))  # embed(<sos>)
    inputs = [x0, hidden, enc, proj] + _decoder_weight_inputs(params)
    out_tm = pl.pallas_call(
        functools.partial(_decoder_free_kernel, T=max_len, B=B, H=H, V=V,
                          use_attention=use_attention, eos_idx=eos_token_idx),
        out_shape=jax.ShapeDtypeStruct((max_len, B, V), jnp.float32),
        in_specs=[_VMEM] * len(inputs),
        out_specs=_VMEM,
    )(*inputs)
    return jnp.transpose(out_tm, (1, 0, 2))                              # (B,max_len,V)


# ----------------------------------------------------------------------------
# Seq2Seq forward (glue; jit-able, no host syncs)
# ----------------------------------------------------------------------------

def seq2seq_forward(params, src_seq, tgt_seq=None, teacher_forcing_ratio=0.5,
                    max_len=20, use_attention=True,
                    start_token_idx=1, eos_token_idx=2, rng_key=None):
    if rng_key is None:
        rng_key = jax.random.PRNGKey(0)

    enc, proj, hidden = encoder_forward(params, src_seq)

    if tgt_seq is not None:
        T = tgt_seq.shape[1]
        # One Bernoulli(teacher_forcing_ratio) per decoded step for the whole
        # batch (same distribution as torch.rand(1).item() per step).
        tf_flags = (jax.random.uniform(rng_key, (T,))
                    < teacher_forcing_ratio).astype(jnp.int32)
        return decode_teacher_forced(params, hidden, enc, proj, tgt_seq,
                                     tf_flags, use_attention)
    return decode_free_running(params, hidden, enc, proj, max_len,
                               use_attention, start_token_idx, eos_token_idx)


# ----------------------------------------------------------------------------
# Deterministic parameter init (weights stored transposed: (in, out))
# ----------------------------------------------------------------------------

def init_params(key, *, src_vocab, tgt_vocab, emb_dim, hidden_dim):
    def u(key, shape, scale=0.1):
        return jax.random.uniform(key, shape, jnp.float32, -scale, scale)

    keys = jax.random.split(key, 24)
    k = iter(keys)
    E, H = emb_dim, hidden_dim
    return {
        # encoder (bi-dir GRU, 1 layer)
        "enc_embedding": u(next(k), (src_vocab, E)),
        "enc_w_ih_f": u(next(k), (E, 3 * H)), "enc_w_hh_f": u(next(k), (H, 3 * H)),
        "enc_b_ih_f": u(next(k), (1, 3 * H)), "enc_b_hh_f": u(next(k), (1, 3 * H)),
        "enc_w_ih_b": u(next(k), (E, 3 * H)), "enc_w_hh_b": u(next(k), (H, 3 * H)),
        "enc_b_ih_b": u(next(k), (1, 3 * H)), "enc_b_hh_b": u(next(k), (1, 3 * H)),
        # decoder (GRU, 1 layer) + output projection
        "dec_embedding": u(next(k), (tgt_vocab, E)),
        "dec_w_ih": u(next(k), (E, 3 * H)), "dec_w_hh": u(next(k), (H, 3 * H)),
        "dec_b_ih": u(next(k), (1, 3 * H)), "dec_b_hh": u(next(k), (1, 3 * H)),
        "dec_fc_w": u(next(k), (H, tgt_vocab)), "dec_fc_b": u(next(k), (1, tgt_vocab)),
        # additive attention over (S, B, 2H) encoder outputs
        "attn_w_enc": u(next(k), (2 * H, H)), "attn_w_dec": u(next(k), (H, H)),
        "attn_b": u(next(k), (1, H)), "attn_v": u(next(k), (H, 1)),
        # attention_fcn: Linear(hidden_dim * 3, target_vocab_size)
        "attn_fcn_w": u(next(k), (3 * H, tgt_vocab)),
        "attn_fcn_b": u(next(k), (1, tgt_vocab)),
    }


# ----------------------------------------------------------------------------
# Main
# ----------------------------------------------------------------------------

if __name__ == "__main__":
    B = 2          # batch
    S = 8          # source sequence length
    T = 6          # target sequence length
    E = 16         # embedding dim
    H = 32         # hidden dim (per direction)
    SRC_VOCAB = 37
    TGT_VOCAB = 29
    START_IDX, EOS_IDX = 1, 2

    root = jax.random.PRNGKey(0)
    k_params, k_src, k_tgt, k_tf = jax.random.split(root, 4)

    params = init_params(k_params, src_vocab=SRC_VOCAB, tgt_vocab=TGT_VOCAB,
                         emb_dim=E, hidden_dim=H)
    src_seq = jax.random.randint(k_src, (B, S), 0, SRC_VOCAB, dtype=jnp.int32)
    tgt_seq = jax.random.randint(k_tgt, (B, T), 0, TGT_VOCAB, dtype=jnp.int32)
    tgt_seq = tgt_seq.at[:, 0].set(START_IDX)

    fwd = jax.jit(seq2seq_forward,
                  static_argnames=("max_len", "use_attention",
                                   "start_token_idx", "eos_token_idx"))

    # Teacher-forced decode with attention.
    out = fwd(params, src_seq, tgt_seq, 0.5, max_len=20, use_attention=True,
              start_token_idx=START_IDX, eos_token_idx=EOS_IDX, rng_key=k_tf)
    out = jax.block_until_ready(out)
    assert out.shape == (B, T, TGT_VOCAB), out.shape
    assert bool(jnp.all(jnp.isfinite(out)))
    assert bool(jnp.all(out[:, 0, :] == 0.0))   # outputs[0] stays zero (as in reference)

    # Free-running decode with attention (EOS handled by in-kernel done mask).
    out2 = fwd(params, src_seq, None, 0.5, max_len=5, use_attention=True,
               start_token_idx=START_IDX, eos_token_idx=EOS_IDX, rng_key=k_tf)
    out2 = jax.block_until_ready(out2)
    assert out2.shape == (B, 5, TGT_VOCAB), out2.shape
    assert bool(jnp.all(jnp.isfinite(out2)))

    # Teacher-forced decode without attention (decoder's own Linear(H, V)).
    out3 = fwd(params, src_seq, tgt_seq, 0.5, max_len=20, use_attention=False,
               start_token_idx=START_IDX, eos_token_idx=EOS_IDX, rng_key=k_tf)
    out3 = jax.block_until_ready(out3)
    assert out3.shape == (B, T, TGT_VOCAB), out3.shape
    assert bool(jnp.all(jnp.isfinite(out3)))

    print("KERNEL_OK")
</pallas_src>

<mosaic_0001>
module attributes {stable_mosaic.version = 11 : i64} {
  func.func @_encoder_kernel(%arg0: memref<8x2x96xf32, #tpu.memory_space<vmem>>, %arg1: memref<8x2x96xf32, #tpu.memory_space<vmem>>, %arg2: memref<32x96xf32, #tpu.memory_space<vmem>>, %arg3: memref<1x96xf32, #tpu.memory_space<vmem>>, %arg4: memref<32x96xf32, #tpu.memory_space<vmem>>, %arg5: memref<1x96xf32, #tpu.memory_space<vmem>>, %arg6: memref<8x2x32xf32, #tpu.memory_space<vmem>>, %arg7: memref<8x2x32xf32, #tpu.memory_space<vmem>>, %arg8: memref<2x32xf32, #tpu.memory_space<vmem>>) attributes {dimension_semantics = [], scalar_prefetch = 0 : i64, scratch_operands = 0 : i64, tpu.core_type = #tpu.core_type<tc>} {
    %c0 = arith.constant 0 : index
    %c0_0 = arith.constant 0 : index
    %0 = vector.load %arg2[%c0, %c0_0] : memref<32x96xf32, #tpu.memory_space<vmem>>, vector<32x96xf32>
    %c0_1 = arith.constant 0 : index
    %c0_2 = arith.constant 0 : index
    %1 = vector.load %arg3[%c0_1, %c0_2] : memref<1x96xf32, #tpu.memory_space<vmem>>, vector<1x96xf32>
    %c0_3 = arith.constant 0 : index
    %c0_4 = arith.constant 0 : index
    %2 = vector.load %arg4[%c0_3, %c0_4] : memref<32x96xf32, #tpu.memory_space<vmem>>, vector<32x96xf32>
    %c0_5 = arith.constant 0 : index
    %c0_6 = arith.constant 0 : index
    %3 = vector.load %arg5[%c0_5, %c0_6] : memref<1x96xf32, #tpu.memory_space<vmem>>, vector<1x96xf32>
    %cst = arith.constant 0.000000e+00 : f32
    %4 = vector.broadcast %cst : f32 to vector<2x32xf32>
    %cst_7 = arith.constant 0.000000e+00 : f32
    %5 = vector.broadcast %cst_7 : f32 to vector<2x32xf32>
    %c0_8 = arith.constant 0 : index
    %c0_9 = arith.constant 0 : index
    %c0_10 = arith.constant 0 : index
    %6 = vector.load %arg0[%c0_8, %c0_9, %c0_10] : memref<8x2x96xf32, #tpu.memory_space<vmem>>, vector<1x2x96xf32>
    %7 = vector.shape_cast %6 : vector<1x2x96xf32> to vector<2x96xf32>
    %cst_11 = arith.constant dense<0.000000e+00> : vector<2x96xf32>
    %8 = tpu.matmul %4, %0, %cst_11 {dimension_numbers = #tpu.dot_dimension_numbers<[1], [0], [0], [1], [0, 0, 1, 1], [], []>} : vector<2x32xf32>, vector<32x96xf32>, vector<2x96xf32> -> vector<2x96xf32>
    %9 = vector.broadcast %1 : vector<1x96xf32> to vector<2x96xf32>
    %10 = arith.addf %8, %9 : vector<2x96xf32>
    %11 = vector.extract_strided_slice %7 {offsets = [0, 0], sizes = [2, 32], strides = [1, 1]} : vector<2x96xf32> to vector<2x32xf32>
    %12 = vector.extract_strided_slice %10 {offsets = [0, 0], sizes = [2, 32], strides = [1, 1]} : vector<2x96xf32> to vector<2x32xf32>
    %13 = arith.addf %11, %12 : vector<2x32xf32>
    %14 = arith.negf %13 : vector<2x32xf32>
    %15 = math.exp %14 : vector<2x32xf32>
    %cst_12 = arith.constant 1.000000e+00 : f32
    %16 = vector.broadcast %cst_12 : f32 to vector<2x32xf32>
    %17 = arith.addf %16, %15 : vector<2x32xf32>
    %18 = arith.divf %16, %17 : vector<2x32xf32>
    %19 = vector.extract_strided_slice %7 {offsets = [0, 32], sizes = [2, 32], strides = [1, 1]} : vector<2x96xf32> to vector<2x32xf32>
    %20 = vector.extract_strided_slice %10 {offsets = [0, 32], sizes = [2, 32], strides = [1, 1]} : vector<2x96xf32> to vector<2x32xf32>
    %21 = arith.addf %19, %20 : vector<2x32xf32>
    %22 = arith.negf %21 : vector<2x32xf32>
    %23 = math.exp %22 : vector<2x32xf32>
    %cst_13 = arith.constant 1.000000e+00 : f32
    %24 = vector.broadcast %cst_13 : f32 to vector<2x32xf32>
    %25 = arith.addf %24, %23 : vector<2x32xf32>
    %26 = arith.divf %24, %25 : vector<2x32xf32>
    %27 = vector.extract_strided_slice %7 {offsets = [0, 64], sizes = [2, 32], strides = [1, 1]} : vector<2x96xf32> to vector<2x32xf32>
    %28 = vector.extract_strided_slice %10 {offsets = [0, 64], sizes = [2, 32], strides = [1, 1]} : vector<2x96xf32> to vector<2x32xf32>
    %29 = arith.mulf %18, %28 : vector<2x32xf32>
    %30 = arith.addf %27, %29 : vector<2x32xf32>
    %31 = math.tanh %30 : vector<2x32xf32>
    %cst_14 = arith.constant 1.000000e+00 : f32
    %32 = vector.broadcast %cst_14 : f32 to vector<2x32xf32>
    %33 = arith.subf %32, %26 : vector<2x32xf32>
    %34 = arith.mulf %33, %31 : vector<2x32xf32>
    %35 = arith.mulf %26, %4 : vector<2x32xf32>
    %36 = arith.addf %34, %35 : vector<2x32xf32>
    %c7 = arith.constant 7 : index
    %c0_15 = arith.constant 0 : index
    %c0_16 = arith.constant 0 : index
    %37 = vector.load %arg1[%c7, %c0_15, %c0_16] : memref<8x2x96xf32, #tpu.memory_space<vmem>>, vector<1x2x96xf32>
    %38 = vector.shape_cast %37 : vector<1x2x96xf32> to vector<2x96xf32>
    %cst_17 = arith.constant dense<0.000000e+00> : vector<2x96xf32>
    %39 = tpu.matmul %5, %2, %cst_17 {dimension_numbers = #tpu.dot_dimension_numbers<[1], [0], [0], [1], [0, 0, 1, 1], [], []>} : vector<2x32xf32>, vector<32x96xf32>, vector<2x96xf32> -> vector<2x96xf32>
    %40 = vector.broadcast %3 : vector<1x96xf32> to vector<2x96xf32>
    %41 = arith.addf %39, %40 : vector<2x96xf32>
    %42 = vector.extract_strided_slice %38 {offsets = [0, 0], sizes = [2, 32], strides = [1, 1]} : vector<2x96xf32> to vector<2x32xf32>
    %43 = vector.extract_strided_slice %41 {offsets = [0, 0], sizes = [2, 32], strides = [1, 1]} : vector<2x96xf32> to vector<2x32xf32>
    %44 = arith.addf %42, %43 : vector<2x32xf32>
    %45 = arith.negf %44 : vector<2x32xf32>
    %46 = math.exp %45 : vector<2x32xf32>
    %cst_18 = arith.constant 1.000000e+00 : f32
    %47 = vector.broadcast %cst_18 : f32 to vector<2x32xf32>
    %48 = arith.addf %47, %46 : vector<2x32xf32>
    %49 = arith.divf %47, %48 : vector<2x32xf32>
    %50 = vector.extract_strided_slice %38 {offsets = [0, 32], sizes = [2, 32], strides = [1, 1]} : vector<2x96xf32> to vector<2x32xf32>
    %51 = vector.extract_strided_slice %41 {offsets = [0, 32], sizes = [2, 32], strides = [1, 1]} : vector<2x96xf32> to vector<2x32xf32>
    %52 = arith.addf %50, %51 : vector<2x32xf32>
    %53 = arith.negf %52 : vector<2x32xf32>
    %54 = math.exp %53 : vector<2x32xf32>
    %cst_19 = arith.constant 1.000000e+00 : f32
    %55 = vector.broadcast %cst_19 : f32 to vector<2x32xf32>
    %56 = arith.addf %55, %54 : vector<2x32xf32>
    %57 = arith.divf %55, %56 : vector<2x32xf32>
    %58 = vector.extract_strided_slice %38 {offsets = [0, 64], sizes = [2, 32], strides = [1, 1]} : vector<2x96xf32> to vector<2x32xf32>
    %59 = vector.extract_strided_slice %41 {offsets = [0, 64], sizes = [2, 32], strides = [1, 1]} : vector<2x96xf32> to vector<2x32xf32>
    %60 = arith.mulf %49, %59 : vector<2x32xf32>
    %61 = arith.addf %58, %60 : vector<2x32xf32>
    %62 = math.tanh %61 : vector<2x32xf32>
    %cst_20 = arith.constant 1.000000e+00 : f32
    %63 = vector.broadcast %cst_20 : f32 to vector<2x32xf32>
    %64 = arith.subf %63, %57 : vector<2x32xf32>
    %65 = arith.mulf %64, %62 : vector<2x32xf32>
    %66 = arith.mulf %57, %5 : vector<2x32xf32>
    %67 = arith.addf %65, %66 : vector<2x32xf32>
    %c0_21 = arith.constant 0 : index
    %c0_22 = arith.constant 0 : index
    %c0_23 = arith.constant 0 : index
    %68 = vector.load %arg6[%c0_21, %c0_22, %c0_23] : memref<8x2x32xf32, #tpu.memory_space<vmem>>, vector<1x2x32xf32>
    %69 = vector.shape_cast %68 : vector<1x2x32xf32> to vector<2x32xf32>
    %70 = vector.shape_cast %36 : vector<2x32xf32> to vector<1x2x32xf32>
    tpu.vector_store %arg6[%c0_21, %c0_22, %c0_23], %70 {strides = array<i32>} : memref<8x2x32xf32, #tpu.memory_space<vmem>>, vector<1x2x32xf32>,
    %c7_24 = arith.constant 7 : index
    %c0_25 = arith.constant 0 : index
    %c0_26 = arith.constant 0 : index
    %71 = vector.load %arg7[%c7_24, %c0_25, %c0_26] : memref<8x2x32xf32, #tpu.memory_space<vmem>>, vector<1x2x32xf32>
    %72 = vector.shape_cast %71 : vector<1x2x32xf32> to vector<2x32xf32>
    %73 = vector.shape_cast %67 : vector<2x32xf32> to vector<1x2x32xf32>
    tpu.vector_store %arg7[%c7_24, %c0_25, %c0_26], %73 {strides = array<i32>} : memref<8x2x32xf32, #tpu.memory_space<vmem>>, vector<1x2x32xf32>,
    %c1 = arith.constant 1 : index
    %c0_27 = arith.constant 0 : index
    %c0_28 = arith.constant 0 : index
    %74 = vector.load %arg0[%c1, %c0_27, %c0_28] : memref<8x2x96xf32, #tpu.memory_space<vmem>>, vector<1x2x96xf32>
    %75 = vector.shape_cast %74 : vector<1x2x96xf32> to vector<2x96xf32>
    %cst_29 = arith.constant dense<0.000000e+00> : vector<2x96xf32>
    %76 = tpu.matmul %36, %0, %cst_29 {dimension_numbers = #tpu.dot_dimension_numbers<[1], [0], [0], [1], [0, 0, 1, 1], [], []>} : vector<2x32xf32>, vector<32x96xf32>, vector<2x96xf32> -> vector<2x96xf32>
    %77 = vector.broadcast %1 : vector<1x96xf32> to vector<2x96xf32>
    %78 = arith.addf %76, %77 : vector<2x96xf32>
    %79 = vector.extract_strided_slice %75 {offsets = [0, 0], sizes = [2, 32], strides = [1, 1]} : vector<2x96xf32> to vector<2x32xf32>
    %80 = vector.extract_strided_slice %78 {offsets = [0, 0], sizes = [2, 32], strides = [1, 1]} : vector<2x96xf32> to vector<2x32xf32>
    %81 = arith.addf %79, %80 : vector<2x32xf32>
    %82 = arith.negf %81 : vector<2x32xf32>
    %83 = math.exp %82 : vector<2x32xf32>
    %cst_30 = arith.constant 1.000000e+00 : f32
    %84 = vector.broadcast %cst_30 : f32 to vector<2x32xf32>
    %85 = arith.addf %84, %83 : vector<2x32xf32>
    %86 = arith.divf %84, %85 : vector<2x32xf32>
    %87 = vector.extract_strided_slice %75 {offsets = [0, 32], sizes = [2, 32], strides = [1, 1]} : vector<2x96xf32> to vector<2x32xf32>
    %88 = vector.extract_strided_slice %78 {offsets = [0, 32], sizes = [2, 32], strides = [1, 1]} : vector<2x96xf32> to vector<2x32xf32>
    %89 = arith.addf %87, %88 : vector<2x32xf32>
    %90 = arith.negf %89 : vector<2x32xf32>
    %91 = math.exp %90 : vector<2x32xf32>
    %cst_31 = arith.constant 1.000000e+00 : f32
    %92 = vector.broadcast %cst_31 : f32 to vector<2x32xf32>
    %93 = arith.addf %92, %91 : vector<2x32xf32>
    %94 = arith.divf %92, %93 : vector<2x32xf32>
    %95 = vector.extract_strided_slice %75 {offsets = [0, 64], sizes = [2, 32], strides = [1, 1]} : vector<2x96xf32> to vector<2x32xf32>
    %96 = vector.extract_strided_slice %78 {offsets = [0, 64], sizes = [2, 32], strides = [1, 1]} : vector<2x96xf32> to vector<2x32xf32>
    %97 = arith.mulf %86, %96 : vector<2x32xf32>
    %98 = arith.addf %95, %97 : vector<2x32xf32>
    %99 = math.tanh %98 : vector<2x32xf32>
    %cst_32 = arith.constant 1.000000e+00 : f32
    %100 = vector.broadcast %cst_32 : f32 to vector<2x32xf32>
    %101 = arith.subf %100, %94 : vector<2x32xf32>
    %102 = arith.mulf %101, %99 : vector<2x32xf32>
    %103 = arith.mulf %94, %36 : vector<2x32xf32>
    %104 = arith.addf %102, %103 : vector<2x32xf32>
    %c6 = arith.constant 6 : index
    %c0_33 = arith.constant 0 : index
    %c0_34 = arith.constant 0 : index
    %105 = vector.load %arg1[%c6, %c0_33, %c0_34] : memref<8x2x96xf32, #tpu.memory_space<vmem>>, vector<1x2x96xf32>
    %106 = vector.shape_cast %105 : vector<1x2x96xf32> to vector<2x96xf32>
    %cst_35 = arith.constant dense<0.000000e+00> : vector<2x96xf32>
    %107 = tpu.matmul %67, %2, %cst_35 {dimension_numbers = #tpu.dot_dimension_numbers<[1], [0], [0], [1], [0, 0, 1, 1], [], []>} : vector<2x32xf32>, vector<32x96xf32>, vector<2x96xf32> -> vector<2x96xf32>
    %108 = vector.broadcast %3 : vector<1x96xf32> to vector<2x96xf32>
    %109 = arith.addf %107, %108 : vector<2x96xf32>
    %110 = vector.extract_strided_slice %106 {offsets = [0, 0], sizes = [2, 32], strides = [1, 1]} : vector<2x96xf32> to vector<2x32xf32>
    %111 = vector.extract_strided_slice %109 {offsets = [0, 0], sizes = [2, 32], strides = [1, 1]} : vector<2x96xf32> to vector<2x32xf32>
    %112 = arith.addf %110, %111 : vector<2x32xf32>
    %113 = arith.negf %112 : vector<2x32xf32>
    %114 = math.exp %113 : vector<2x32xf32>
    %cst_36 = arith.constant 1.000000e+00 : f32
    %115 = vector.broadcast %cst_36 : f32 to vector<2x32xf32>
    %116 = arith.addf %115, %114 : vector<2x32xf32>
    %117 = arith.divf %115, %116 : vector<2x32xf32>
    %118 = vector.extract_strided_slice %106 {offsets = [0, 32], sizes = [2, 32], strides = [1, 1]} : vector<2x96xf32> to vector<2x32xf32>
    %119 = vector.extract_strided_slice %109 {offsets = [0, 32], sizes = [2, 32], strides = [1, 1]} : vector<2x96xf32> to vector<2x32xf32>
    %120 = arith.addf %118, %119 : vector<2x32xf32>
    %121 = arith.negf %120 : vector<2x32xf32>
    %122 = math.exp %121 : vector<2x32xf32>
    %cst_37 = arith.constant 1.000000e+00 : f32
    %123 = vector.broadcast %cst_37 : f32 to vector<2x32xf32>
    %124 = arith.addf %123, %122 : vector<2x32xf32>
    %125 = arith.divf %123, %124 : vector<2x32xf32>
    %126 = vector.extract_strided_slice %106 {offsets = [0, 64], sizes = [2, 32], strides = [1, 1]} : vector<2x96xf32> to vector<2x32xf32>
    %127 = vector.extract_strided_slice %109 {offsets = [0, 64], sizes = [2, 32], strides = [1, 1]} : vector<2x96xf32> to vector<2x32xf32>
    %128 = arith.mulf %117, %127 : vector<2x32xf32>
    %129 = arith.addf %126, %128 : vector<2x32xf32>
    %130 = math.tanh %129 : vector<2x32xf32>
    %cst_38 = arith.constant 1.000000e+00 : f32
    %131 = vector.broadcast %cst_38 : f32 to vector<2x32xf32>
    %132 = arith.subf %131, %125 : vector<2x32xf32>
    %133 = arith.mulf %132, %130 : vector<2x32xf32>
    %134 = arith.mulf %125, %67 : vector<2x32xf32>
    %135 = arith.addf %133, %134 : vector<2x32xf32>
    %c1_39 = arith.constant 1 : index
    %c0_40 = arith.constant 0 : index
    %c0_41 = arith.constant 0 : index
    %136 = vector.load %arg6[%c1_39, %c0_40, %c0_41] : memref<8x2x32xf32, #tpu.memory_space<vmem>>, vector<1x2x32xf32>
    %137 = vector.shape_cast %136 : vector<1x2x32xf32> to vector<2x32xf32>
    %138 = vector.shape_cast %104 : vector<2x32xf32> to vector<1x2x32xf32>
    tpu.vector_store %arg6[%c1_39, %c0_40, %c0_41], %138 {strides = array<i32>} : memref<8x2x32xf32, #tpu.memory_space<vmem>>, vector<1x2x32xf32>,
    %c6_42 = arith.constant 6 : index
    %c0_43 = arith.constant 0 : index
    %c0_44 = arith.constant 0 : index
    %139 = vector.load %arg7[%c6_42, %c0_43, %c0_44] : memref<8x2x32xf32, #tpu.memory_space<vmem>>, vector<1x2x32xf32>
    %140 = vector.shape_cast %139 : vector<1x2x32xf32> to vector<2x32xf32>
    %141 = vector.shape_cast %135 : vector<2x32xf32> to vector<1x2x32xf32>
    tpu.vector_store %arg7[%c6_42, %c0_43, %c0_44], %141 {strides = array<i32>} : memref<8x2x32xf32, #tpu.memory_space<vmem>>, vector<1x2x32xf32>,
    %c2 = arith.constant 2 : index
    %c0_45 = arith.constant 0 : index
    %c0_46 = arith.constant 0 : index
    %142 = vector.load %arg0[%c2, %c0_45, %c0_46] : memref<8x2x96xf32, #tpu.memory_space<vmem>>, vector<1x2x96xf32>
    %143 = vector.shape_cast %142 : vector<1x2x96xf32> to vector<2x96xf32>
    %cst_47 = arith.constant dense<0.000000e+00> : vector<2x96xf32>
    %144 = tpu.matmul %104, %0, %cst_47 {dimension_numbers = #tpu.dot_dimension_numbers<[1], [0], [0], [1], [0, 0, 1, 1], [], []>} : vector<2x32xf32>, vector<32x96xf32>, vector<2x96xf32> -> vector<2x96xf32>
    %145 = vector.broadcast %1 : vector<1x96xf32> to vector<2x96xf32>
    %146 = arith.addf %144, %145 : vector<2x96xf32>
    %147 = vector.extract_strided_slice %143 {offsets = [0, 0], sizes = [2, 32], strides = [1, 1]} : vector<2x96xf32> to vector<2x32xf32>
    %148 = vector.extract_strided_slice %146 {offsets = [0, 0], sizes = [2, 32], strides = [1, 1]} : vector<2x96xf32> to vector<2x32xf32>
    %149 = arith.addf %147, %148 : vector<2x32xf32>
    %150 = arith.negf %149 : vector<2x32xf32>
    %151 = math.exp %150 : vector<2x32xf32>
    %cst_48 = arith.constant 1.000000e+00 : f32
    %152 = vector.broadcast %cst_48 : f32 to vector<2x32xf32>
    %153 = arith.addf %152, %151 : vector<2x32xf32>
    %154 = arith.divf %152, %153 : vector<2x32xf32>
    %155 = vector.extract_strided_slice %143 {offsets = [0, 32], sizes = [2, 32], strides = [1, 1]} : vector<2x96xf32> to vector<2x32xf32>
    %156 = vector.extract_strided_slice %146 {offsets = [0, 32], sizes = [2, 32], strides = [1, 1]} : vector<2x96xf32> to vector<2x32xf32>
    %157 = arith.addf %155, %156 : vector<2x32xf32>
    %158 = arith.negf %157 : vector<2x32xf32>
    %159 = math.exp %158 : vector<2x32xf32>
    %cst_49 = arith.constant 1.000000e+00 : f32
    %160 = vector.broadcast %cst_49 : f32 to vector<2x32xf32>
    %161 = arith.addf %160, %159 : vector<2x32xf32>
    %162 = arith.divf %160, %161 : vector<2x32xf32>
    %163 = vector.extract_strided_slice %143 {offsets = [0, 64], sizes = [2, 32], strides = [1, 1]} : vector<2x96xf32> to vector<2x32xf32>
    %164 = vector.extract_strided_slice %146 {offsets = [0, 64], sizes = [2, 32], strides = [1, 1]} : vector<2x96xf32> to vector<2x32xf32>
    %165 = arith.mulf %154, %164 : vector<2x32xf32>
    %166 = arith.addf %163, %165 : vector<2x32xf32>
    %167 = math.tanh %166 : vector<2x32xf32>
    %cst_50 = arith.constant 1.000000e+00 : f32
    %168 = vector.broadcast %cst_50 : f32 to vector<2x32xf32>
    %169 = arith.subf %168, %162 : vector<2x32xf32>
    %170 = arith.mulf %169, %167 : vector<2x32xf32>
    %171 = arith.mulf %162, %104 : vector<2x32xf32>
    %172 = arith.addf %170, %171 : vector<2x32xf32>
    %c5 = arith.constant 5 : index
    %c0_51 = arith.constant 0 : index
    %c0_52 = arith.constant 0 : index
    %173 = vector.load %arg1[%c5, %c0_51, %c0_52] : memref<8x2x96xf32, #tpu.memory_space<vmem>>, vector<1x2x96xf32>
    %174 = vector.shape_cast %173 : vector<1x2x96xf32> to vector<2x96xf32>
    %cst_53 = arith.constant dense<0.000000e+00> : vector<2x96xf32>
    %175 = tpu.matmul %135, %2, %cst_53 {dimension_numbers = #tpu.dot_dimension_numbers<[1], [0], [0], [1], [0, 0, 1, 1], [], []>} : vector<2x32xf32>, vector<32x96xf32>, vector<2x96xf32> -> vector<2x96xf32>
    %176 = vector.broadcast %3 : vector<1x96xf32> to vector<2x96xf32>
    %177 = arith.addf %175, %176 : vector<2x96xf32>
    %178 = vector.extract_strided_slice %174 {offsets = [0, 0], sizes = [2, 32], strides = [1, 1]} : vector<2x96xf32> to vector<2x32xf32>
    %179 = vector.extract_strided_slice %177 {offsets = [0, 0], sizes = [2, 32], strides = [1, 1]} : vector<2x96xf32> to vector<2x32xf32>
    %180 = arith.addf %178, %179 : vector<2x32xf32>
    %181 = arith.negf %180 : vector<2x32xf32>
    %182 = math.exp %181 : vector<2x32xf32>
    %cst_54 = arith.constant 1.000000e+00 : f32
    %183 = vector.broadcast %cst_54 : f32 to vector<2x32xf32>
    %184 = arith.addf %183, %182 : vector<2x32xf32>
    %185 = arith.divf %183, %184 : vector<2x32xf32>
    %186 = vector.extract_strided_slice %174 {offsets = [0, 32], sizes = [2, 32], strides = [1, 1]} : vector<2x96xf32> to vector<2x32xf32>
    %187 = vector.extract_strided_slice %177 {offsets = [0, 32], sizes = [2, 32], strides = [1, 1]} : vector<2x96xf32> to vector<2x32xf32>
    %188 = arith.addf %186, %187 : vector<2x32xf32>
    %189 = arith.negf %188 : vector<2x32xf32>
    %190 = math.exp %189 : vector<2x32xf32>
    %cst_55 = arith.constant 1.000000e+00 : f32
    %191 = vector.broadcast %cst_55 : f32 to vector<2x32xf32>
    %192 = arith.addf %191, %190 : vector<2x32xf32>
    %193 = arith.divf %191, %192 : vector<2x32xf32>
    %194 = vector.extract_strided_slice %174 {offsets = [0, 64], sizes = [2, 32], strides = [1, 1]} : vector<2x96xf32> to vector<2x32xf32>
    %195 = vector.extract_strided_slice %177 {offsets = [0, 64], sizes = [2, 32], strides = [1, 1]} : vector<2x96xf32> to vector<2x32xf32>
    %196 = arith.mulf %185, %195 : vector<2x32xf32>
    %197 = arith.addf %194, %196 : vector<2x32xf32>
    %198 = math.tanh %197 : vector<2x32xf32>
    %cst_56 = arith.constant 1.000000e+00 : f32
    %199 = vector.broadcast %cst_56 : f32 to vector<2x32xf32>
    %200 = arith.subf %199, %193 : vector<2x32xf32>
    %201 = arith.mulf %200, %198 : vector<2x32xf32>
    %202 = arith.mulf %193, %135 : vector<2x32xf32>
    %203 = arith.addf %201, %202 : vector<2x32xf32>
    %c2_57 = arith.constant 2 : index
    %c0_58 = arith.constant 0 : index
    %c0_59 = arith.constant 0 : index
    %204 = vector.load %arg6[%c2_57, %c0_58, %c0_59] : memref<8x2x32xf32, #tpu.memory_space<vmem>>, vector<1x2x32xf32>
    %205 = vector.shape_cast %204 : vector<1x2x32xf32> to vector<2x32xf32>
    %206 = vector.shape_cast %172 : vector<2x32xf32> to vector<1x2x32xf32>
    tpu.vector_store %arg6[%c2_57, %c0_58, %c0_59], %206 {strides = array<i32>} : memref<8x2x32xf32, #tpu.memory_space<vmem>>, vector<1x2x32xf32>,
    %c5_60 = arith.constant 5 : index
    %c0_61 = arith.constant 0 : index
    %c0_62 = arith.constant 0 : index
    %207 = vector.load %arg7[%c5_60, %c0_61, %c0_62] : memref<8x2x32xf32, #tpu.memory_space<vmem>>, vector<1x2x32xf32>
    %208 = vector.shape_cast %207 : vector<1x2x32xf32> to vector<2x32xf32>
    %209 = vector.shape_cast %203 : vector<2x32xf32> to vector<1x2x32xf32>
    tpu.vector_store %arg7[%c5_60, %c0_61, %c0_62], %209 {strides = array<i32>} : memref<8x2x32xf32, #tpu.memory_space<vmem>>, vector<1x2x32xf32>,
    %c3 = arith.constant 3 : index
    %c0_63 = arith.constant 0 : index
    %c0_64 = arith.constant 0 : index
    %210 = vector.load %arg0[%c3, %c0_63, %c0_64] : memref<8x2x96xf32, #tpu.memory_space<vmem>>, vector<1x2x96xf32>
    %211 = vector.shape_cast %210 : vector<1x2x96xf32> to vector<2x96xf32>
    %cst_65 = arith.constant dense<0.000000e+00> : vector<2x96xf32>
    %212 = tpu.matmul %172, %0, %cst_65 {dimension_numbers = #tpu.dot_dimension_numbers<[1], [0], [0], [1], [0, 0, 1, 1], [], []>} : vector<2x32xf32>, vector<32x96xf32>, vector<2x96xf32> -> vector<2x96xf32>
    %213 = vector.broadcast %1 : vector<1x96xf32> to vector<2x96xf32>
    %214 = arith.addf %212, %213 : vector<2x96xf32>
    %215 = vector.extract_strided_slice %211 {offsets = [0, 0], sizes = [2, 32], strides = [1, 1]} : vector<2x96xf32> to vector<2x32xf32>
    %216 = vector.extract_strided_slice %214 {offsets = [0, 0], sizes = [2, 32], strides = [1, 1]} : vector<2x96xf32> to vector<2x32xf32>
    %217 = arith.addf %215, %216 : vector<2x32xf32>
    %218 = arith.negf %217 : vector<2x32xf32>
    %219 = math.exp %218 : vector<2x32xf32>
    %cst_66 = arith.constant 1.000000e+00 : f32
    %220 = vector.broadcast %cst_66 : f32 to vector<2x32xf32>
    %221 = arith.addf %220, %219 : vector<2x32xf32>
    %222 = arith.divf %220, %221 : vector<2x32xf32>
    %223 = vector.extract_strided_slice %211 {offsets = [0, 32], sizes = [2, 32], strides = [1, 1]} : vector<2x96xf32> to vector<2x32xf32>
    %224 = vector.extract_strided_slice %214 {offsets = [0, 32], sizes = [2, 32], strides = [1, 1]} : vector<2x96xf32> to vector<2x32xf32>
    %225 = arith.addf %223, %224 : vector<2x32xf32>
    %226 = arith.negf %225 : vector<2x32xf32>
    %227 = math.exp %226 : vector<2x32xf32>
    %cst_67 = arith.constant 1.000000e+00 : f32
    %228 = vector.broadcast %cst_67 : f32 to vector<2x32xf32>
    %229 = arith.addf %228, %227 : vector<2x32xf32>
    %230 = arith.divf %228, %229 : vector<2x32xf32>
    %231 = vector.extract_strided_slice %211 {offsets = [0, 64], sizes = [2, 32], strides = [1, 1]} : vector<2x96xf32> to vector<2x32xf32>
    %232 = vector.extract_strided_slice %214 {offsets = [0, 64], sizes = [2, 32], strides = [1, 1]} : vector<2x96xf32> to vector<2x32xf32>
    %233 = arith.mulf %222, %232 : vector<2x32xf32>
    %234 = arith.addf %231, %233 : vector<2x32xf32>
    %235 = math.tanh %234 : vector<2x32xf32>
    %cst_68 = arith.constant 1.000000e+00 : f32
    %236 = vector.broadcast %cst_68 : f32 to vector<2x32xf32>
    %237 = arith.subf %236, %230 : vector<2x32xf32>
    %238 = arith.mulf %237, %235 : vector<2x32xf32>
    %239 = arith.mulf %230, %172 : vector<2x32xf32>
    %240 = arith.addf %238, %239 : vector<2x32xf32>
    %c4 = arith.constant 4 : index
    %c0_69 = arith.constant 0 : index
    %c0_70 = arith.constant 0 : index
    %241 = vector.load %arg1[%c4, %c0_69, %c0_70] : memref<8x2x96xf32, #tpu.memory_space<vmem>>, vector<1x2x96xf32>
    %242 = vector.shape_cast %241 : vector<1x2x96xf32> to vector<2x96xf32>
    %cst_71 = arith.constant dense<0.000000e+00> : vector<2x96xf32>
    %243 = tpu.matmul %203, %2, %cst_71 {dimension_numbers = #tpu.dot_dimension_numbers<[1], [0], [0], [1], [0, 0, 1, 1], [], []>} : vector<2x32xf32>, vector<32x96xf32>, vector<2x96xf32> -> vector<2x96xf32>
    %244 = vector.broadcast %3 : vector<1x96xf32> to vector<2x96xf32>
    %245 = arith.addf %243, %244 : vector<2x96xf32>
    %246 = vector.extract_strided_slice %242 {offsets = [0, 0], sizes = [2, 32], strides = [1, 1]} : vector<2x96xf32> to vector<2x32xf32>
    %247 = vector.extract_strided_slice %245 {offsets = [0, 0], sizes = [2, 32], strides = [1, 1]} : vector<2x96xf32> to vector<2x32xf32>
    %248 = arith.addf %246, %247 : vector<2x32xf32>
    %249 = arith.negf %248 : vector<2x32xf32>
    %250 = math.exp %249 : vector<2x32xf32>
    %cst_72 = arith.constant 1.000000e+00 : f32
    %251 = vector.broadcast %cst_72 : f32 to vector<2x32xf32>
    %252 = arith.addf %251, %250 : vector<2x32xf32>
    %253 = arith.divf %251, %252 : vector<2x32xf32>
    %254 = vector.extract_strided_slice %242 {offsets = [0, 32], sizes = [2, 32], strides = [1, 1]} : vector<2x96xf32> to vector<2x32xf32>
    %255 = vector.extract_strided_slice %245 {offsets = [0, 32], sizes = [2, 32], strides = [1, 1]} : vector<2x96xf32> to vector<2x32xf32>
    %256 = arith.addf %254, %255 : vector<2x32xf32>
    %257 = arith.negf %256 : vector<2x32xf32>
    %258 = math.exp %257 : vector<2x32xf32>
    %cst_73 = arith.constant 1.000000e+00 : f32
    %259 = vector.broadcast %cst_73 : f32 to vector<2x32xf32>
    %260 = arith.addf %259, %258 : vector<2x32xf32>
    %261 = arith.divf %259, %260 : vector<2x32xf32>
    %262 = vector.extract_strided_slice %242 {offsets = [0, 64], sizes = [2, 32], strides = [1, 1]} : vector<2x96xf32> to vector<2x32xf32>
    %263 = vector.extract_strided_slice %245 {offsets = [0, 64], sizes = [2, 32], strides = [1, 1]} : vector<2x96xf32> to vector<2x32xf32>
    %264 = arith.mulf %253, %263 : vector<2x32xf32>
    %265 = arith.addf %262, %264 : vector<2x32xf32>
    %266 = math.tanh %265 : vector<2x32xf32>
    %cst_74 = arith.constant 1.000000e+00 : f32
    %267 = vector.broadcast %cst_74 : f32 to vector<2x32xf32>
    %268 = arith.subf %267, %261 : vector<2x32xf32>
    %269 = arith.mulf %268, %266 : vector<2x32xf32>
    %270 = arith.mulf %261, %203 : vector<2x32xf32>
    %271 = arith.addf %269, %270 : vector<2x32xf32>
    %c3_75 = arith.constant 3 : index
    %c0_76 = arith.constant 0 : index
    %c0_77 = arith.constant 0 : index
    %272 = vector.load %arg6[%c3_75, %c0_76, %c0_77] : memref<8x2x32xf32, #tpu.memory_space<vmem>>, vector<1x2x32xf32>
    %273 = vector.shape_cast %272 : vector<1x2x32xf32> to vector<2x32xf32>
    %274 = vector.shape_cast %240 : vector<2x32xf32> to vector<1x2x32xf32>
    tpu.vector_store %arg6[%c3_75, %c0_76, %c0_77], %274 {strides = array<i32>} : memref<8x2x32xf32, #tpu.memory_space<vmem>>, vector<1x2x32xf32>,
    %c4_78 = arith.constant 4 : index
    %c0_79 = arith.constant 0 : index
    %c0_80 = arith.constant 0 : index
    %275 = vector.load %arg7[%c4_78, %c0_79, %c0_80] : memref<8x2x32xf32, #tpu.memory_space<vmem>>, vector<1x2x32xf32>
    %276 = vector.shape_cast %275 : vector<1x2x32xf32> to vector<2x32xf32>
    %277 = vector.shape_cast %271 : vector<2x32xf32> to vector<1x2x32xf32>
    tpu.vector_store %arg7[%c4_78, %c0_79, %c0_80], %277 {strides = array<i32>} : memref<8x2x32xf32, #tpu.memory_space<vmem>>, vector<1x2x32xf32>,
    %c4_81 = arith.constant 4 : index
    %c0_82 = arith.constant 0 : index
    %c0_83 = arith.constant 0 : index
    %278 = vector.load %arg0[%c4_81, %c0_82, %c0_83] : memref<8x2x96xf32, #tpu.memory_space<vmem>>, vector<1x2x96xf32>
    %279 = vector.shape_cast %278 : vector<1x2x96xf32> to vector<2x96xf32>
    %cst_84 = arith.constant dense<0.000000e+00> : vector<2x96xf32>
    %280 = tpu.matmul %240, %0, %cst_84 {dimension_numbers = #tpu.dot_dimension_numbers<[1], [0], [0], [1], [0, 0, 1, 1], [], []>} : vector<2x32xf32>, vector<32x96xf32>, vector<2x96xf32> -> vector<2x96xf32>
    %281 = vector.broadcast %1 : vector<1x96xf32> to vector<2x96xf32>
    %282 = arith.addf %280, %281 : vector<2x96xf32>
    %283 = vector.extract_strided_slice %279 {offsets = [0, 0], sizes = [2, 32], strides = [1, 1]} : vector<2x96xf32> to vector<2x32xf32>
    %284 = vector.extract_strided_slice %282 {offsets = [0, 0], sizes = [2, 32], strides = [1, 1]} : vector<2x96xf32> to vector<2x32xf32>
    %285 = arith.addf %283, %284 : vector<2x32xf32>
    %286 = arith.negf %285 : vector<2x32xf32>
    %287 = math.exp %286 : vector<2x32xf32>
    %cst_85 = arith.constant 1.000000e+00 : f32
    %288 = vector.broadcast %cst_85 : f32 to vector<2x32xf32>
    %289 = arith.addf %288, %287 : vector<2x32xf32>
    %290 = arith.divf %288, %289 : vector<2x32xf32>
    %291 = vector.extract_strided_slice %279 {offsets = [0, 32], sizes = [2, 32], strides = [1, 1]} : vector<2x96xf32> to vector<2x32xf32>
    %292 = vector.extract_strided_slice %282 {offsets = [0, 32], sizes = [2, 32], strides = [1, 1]} : vector<2x96xf32> to vector<2x32xf32>
    %293 = arith.addf %291, %292 : vector<2x32xf32>
    %294 = arith.negf %293 : vector<2x32xf32>
    %295 = math.exp %294 : vector<2x32xf32>
    %cst_86 = arith.constant 1.000000e+00 : f32
    %296 = vector.broadcast %cst_86 : f32 to vector<2x32xf32>
    %297 = arith.addf %296, %295 : vector<2x32xf32>
    %298 = arith.divf %296, %297 : vector<2x32xf32>
    %299 = vector.extract_strided_slice %279 {offsets = [0, 64], sizes = [2, 32], strides = [1, 1]} : vector<2x96xf32> to vector<2x32xf32>
    %300 = vector.extract_strided_slice %282 {offsets = [0, 64], sizes = [2, 32], strides = [1, 1]} : vector<2x96xf32> to vector<2x32xf32>
    %301 = arith.mulf %290, %300 : vector<2x32xf32>
    %302 = arith.addf %299, %301 : vector<2x32xf32>
    %303 = math.tanh %302 : vector<2x32xf32>
    %cst_87 = arith.constant 1.000000e+00 : f32
    %304 = vector.broadcast %cst_87 : f32 to vector<2x32xf32>
    %305 = arith.subf %304, %298 : vector<2x32xf32>
    %306 = arith.mulf %305, %303 : vector<2x32xf32>
    %307 = arith.mulf %298, %240 : vector<2x32xf32>
    %308 = arith.addf %306, %307 : vector<2x32xf32>
    %c3_88 = arith.constant 3 : index
    %c0_89 = arith.constant 0 : index
    %c0_90 = arith.constant 0 : index
    %309 = vector.load %arg1[%c3_88, %c0_89, %c0_90] : memref<8x2x96xf32, #tpu.memory_space<vmem>>, vector<1x2x96xf32>
    %310 = vector.shape_cast %309 : vector<1x2x96xf32> to vector<2x96xf32>
    %cst_91 = arith.constant dense<0.000000e+00> : vector<2x96xf32>
    %311 = tpu.matmul %271, %2, %cst_91 {dimension_numbers = #tpu.dot_dimension_numbers<[1], [0], [0], [1], [0, 0, 1, 1], [], []>} : vector<2x32xf32>, vector<32x96xf32>, vector<2x96xf32> -> vector<2x96xf32>
    %312 = vector.broadcast %3 : vector<1x96xf32> to vector<2x96xf32>
    %313 = arith.addf %311, %312 : vector<2x96xf32>
    %314 = vector.extract_strided_slice %310 {offsets = [0, 0], sizes = [2, 32], strides = [1, 1]} : vector<2x96xf32> to vector<2x32xf32>
    %315 = vector.extract_strided_slice %313 {offsets = [0, 0], sizes = [2, 32], strides = [1, 1]} : vector<2x96xf32> to vector<2x32xf32>
    %316 = arith.addf %314, %315 : vector<2x32xf32>
    %317 = arith.negf %316 : vector<2x32xf32>
    %318 = math.exp %317 : vector<2x32xf32>
    %cst_92 = arith.constant 1.000000e+00 : f32
    %319 = vector.broadcast %cst_92 : f32 to vector<2x32xf32>
    %320 = arith.addf %319, %318 : vector<2x32xf32>
    %321 = arith.divf %319, %320 : vector<2x32xf32>
    %322 = vector.extract_strided_slice %310 {offsets = [0, 32], sizes = [2, 32], strides = [1, 1]} : vector<2x96xf32> to vector<2x32xf32>
    %323 = vector.extract_strided_slice %313 {offsets = [0, 32], sizes = [2, 32], strides = [1, 1]} : vector<2x96xf32> to vector<2x32xf32>
    %324 = arith.addf %322, %323 : vector<2x32xf32>
    %325 = arith.negf %324 : vector<2x32xf32>
    %326 = math.exp %325 : vector<2x32xf32>
    %cst_93 = arith.constant 1.000000e+00 : f32
    %327 = vector.broadcast %cst_93 : f32 to vector<2x32xf32>
    %328 = arith.addf %327, %326 : vector<2x32xf32>
    %329 = arith.divf %327, %328 : vector<2x32xf32>
    %330 = vector.extract_strided_slice %310 {offsets = [0, 64], sizes = [2, 32], strides = [1, 1]} : vector<2x96xf32> to vector<2x32xf32>
    %331 = vector.extract_strided_slice %313 {offsets = [0, 64], sizes = [2, 32], strides = [1, 1]} : vector<2x96xf32> to vector<2x32xf32>
    %332 = arith.mulf %321, %331 : vector<2x32xf32>
    %333 = arith.addf %330, %332 : vector<2x32xf32>
    %334 = math.tanh %333 : vector<2x32xf32>
    %cst_94 = arith.constant 1.000000e+00 : f32
    %335 = vector.broadcast %cst_94 : f32 to vector<2x32xf32>
    %336 = arith.subf %335, %329 : vector<2x32xf32>
    %337 = arith.mulf %336, %334 : vector<2x32xf32>
    %338 = arith.mulf %329, %271 : vector<2x32xf32>
    %339 = arith.addf %337, %338 : vector<2x32xf32>
    %c4_95 = arith.constant 4 : index
    %c0_96 = arith.constant 0 : index
    %c0_97 = arith.constant 0 : index
    %340 = vector.load %arg6[%c4_95, %c0_96, %c0_97] : memref<8x2x32xf32, #tpu.memory_space<vmem>>, vector<1x2x32xf32>
    %341 = vector.shape_cast %340 : vector<1x2x32xf32> to vector<2x32xf32>
    %342 = vector.shape_cast %308 : vector<2x32xf32> to vector<1x2x32xf32>
    tpu.vector_store %arg6[%c4_95, %c0_96, %c0_97], %342 {strides = array<i32>} : memref<8x2x32xf32, #tpu.memory_space<vmem>>, vector<1x2x32xf32>,
    %c3_98 = arith.constant 3 : index
    %c0_99 = arith.constant 0 : index
    %c0_100 = arith.constant 0 : index
    %343 = vector.load %arg7[%c3_98, %c0_99, %c0_100] : memref<8x2x32xf32, #tpu.memory_space<vmem>>, vector<1x2x32xf32>
    %344 = vector.shape_cast %343 : vector<1x2x32xf32> to vector<2x32xf32>
    %345 = vector.shape_cast %339 : vector<2x32xf32> to vector<1x2x32xf32>
    tpu.vector_store %arg7[%c3_98, %c0_99, %c0_100], %345 {strides = array<i32>} : memref<8x2x32xf32, #tpu.memory_space<vmem>>, vector<1x2x32xf32>,
    %c5_101 = arith.constant 5 : index
    %c0_102 = arith.constant 0 : index
    %c0_103 = arith.constant 0 : index
    %346 = vector.load %arg0[%c5_101, %c0_102, %c0_103] : memref<8x2x96xf32, #tpu.memory_space<vmem>>, vector<1x2x96xf32>
    %347 = vector.shape_cast %346 : vector<1x2x96xf32> to vector<2x96xf32>
    %cst_104 = arith.constant dense<0.000000e+00> : vector<2x96xf32>
    %348 = tpu.matmul %308, %0, %cst_104 {dimension_numbers = #tpu.dot_dimension_numbers<[1], [0], [0], [1], [0, 0, 1, 1], [], []>} : vector<2x32xf32>, vector<32x96xf32>, vector<2x96xf32> -> vector<2x96xf32>
    %349 = vector.broadcast %1 : vector<1x96xf32> to vector<2x96xf32>
    %350 = arith.addf %348, %349 : vector<2x96xf32>
    %351 = vector.extract_strided_slice %347 {offsets = [0, 0], sizes = [2, 32], strides = [1, 1]} : vector<2x96xf32> to vector<2x32xf32>
    %352 = vector.extract_strided_slice %350 {offsets = [0, 0], sizes = [2, 32], strides = [1, 1]} : vector<2x96xf32> to vector<2x32xf32>
    %353 = arith.addf %351, %352 : vector<2x32xf32>
    %354 = arith.negf %353 : vector<2x32xf32>
    %355 = math.exp %354 : vector<2x32xf32>
    %cst_105 = arith.constant 1.000000e+00 : f32
    %356 = vector.broadcast %cst_105 : f32 to vector<2x32xf32>
    %357 = arith.addf %356, %355 : vector<2x32xf32>
    %358 = arith.divf %356, %357 : vector<2x32xf32>
    %359 = vector.extract_strided_slice %347 {offsets = [0, 32], sizes = [2, 32], strides = [1, 1]} : vector<2x96xf32> to vector<2x32xf32>
    %360 = vector.extract_strided_slice %350 {offsets = [0, 32], sizes = [2, 32], strides = [1, 1]} : vector<2x96xf32> to vector<2x32xf32>
    %361 = arith.addf %359, %360 : vector<2x32xf32>
    %362 = arith.negf %361 : vector<2x32xf32>
    %363 = math.exp %362 : vector<2x32xf32>
    %cst_106 = arith.constant 1.000000e+00 : f32
    %364 = vector.broadcast %cst_106 : f32 to vector<2x32xf32>
    %365 = arith.addf %364, %363 : vector<2x32xf32>
    %366 = arith.divf %364, %365 : vector<2x32xf32>
    %367 = vector.extract_strided_slice %347 {offsets = [0, 64], sizes = [2, 32], strides = [1, 1]} : vector<2x96xf32> to vector<2x32xf32>
    %368 = vector.extract_strided_slice %350 {offsets = [0, 64], sizes = [2, 32], strides = [1, 1]} : vector<2x96xf32> to vector<2x32xf32>
    %369 = arith.mulf %358, %368 : vector<2x32xf32>
    %370 = arith.addf %367, %369 : vector<2x32xf32>
    %371 = math.tanh %370 : vector<2x32xf32>
    %cst_107 = arith.constant 1.000000e+00 : f32
    %372 = vector.broadcast %cst_107 : f32 to vector<2x32xf32>
    %373 = arith.subf %372, %366 : vector<2x32xf32>
    %374 = arith.mulf %373, %371 : vector<2x32xf32>
    %375 = arith.mulf %366, %308 : vector<2x32xf32>
    %376 = arith.addf %374, %375 : vector<2x32xf32>
    %c2_108 = arith.constant 2 : index
    %c0_109 = arith.constant 0 : index
    %c0_110 = arith.constant 0 : index
    %377 = vector.load %arg1[%c2_108, %c0_109, %c0_110] : memref<8x2x96xf32, #tpu.memory_space<vmem>>, vector<1x2x96xf32>
    %378 = vector.shape_cast %377 : vector<1x2x96xf32> to vector<2x96xf32>
    %cst_111 = arith.constant dense<0.000000e+00> : vector<2x96xf32>
    %379 = tpu.matmul %339, %2, %cst_111 {dimension_numbers = #tpu.dot_dimension_numbers<[1], [0], [0], [1], [0, 0, 1, 1], [], []>} : vector<2x32xf32>, vector<32x96xf32>, vector<2x96xf32> -> vector<2x96xf32>
    %380 = vector.broadcast %3 : vector<1x96xf32> to vector<2x96xf32>
    %381 = arith.addf %379, %380 : vector<2x96xf32>
    %382 = vector.extract_strided_slice %378 {offsets = [0, 0], sizes = [2, 32], strides = [1, 1]} : vector<2x96xf32> to vector<2x32xf32>
    %383 = vector.extract_strided_slice %381 {offsets = [0, 0], sizes = [2, 32], strides = [1, 1]} : vector<2x96xf32> to vector<2x32xf32>
    %384 = arith.addf %382, %383 : vector<2x32xf32>
    %385 = arith.negf %384 : vector<2x32xf32>
    %386 = math.exp %385 : vector<2x32xf32>
    %cst_112 = arith.constant 1.000000e+00 : f32
    %387 = vector.broadcast %cst_112 : f32 to vector<2x32xf32>
    %388 = arith.addf %387, %386 : vector<2x32xf32>
    %389 = arith.divf %387, %388 : vector<2x32xf32>
    %390 = vector.extract_strided_slice %378 {offsets = [0, 32], sizes = [2, 32], strides = [1, 1]} : vector<2x96xf32> to vector<2x32xf32>
    %391 = vector.extract_strided_slice %381 {offsets = [0, 32], sizes = [2, 32], strides = [1, 1]} : vector<2x96xf32> to vector<2x32xf32>
    %392 = arith.addf %390, %391 : vector<2x32xf32>
    %393 = arith.negf %392 : vector<2x32xf32>
    %394 = math.exp %393 : vector<2x32xf32>
    %cst_113 = arith.constant 1.000000e+00 : f32
    %395 = vector.broadcast %cst_113 : f32 to vector<2x32xf32>
    %396 = arith.addf %395, %394 : vector<2x32xf32>
    %397 = arith.divf %395, %396 : vector<2x32xf32>
    %398 = vector.extract_strided_slice %378 {offsets = [0, 64], sizes = [2, 32], strides = [1, 1]} : vector<2x96xf32> to vector<2x32xf32>
    %399 = vector.extract_strided_slice %381 {offsets = [0, 64], sizes = [2, 32], strides = [1, 1]} : vector<2x96xf32> to vector<2x32xf32>
    %400 = arith.mulf %389, %399 : vector<2x32xf32>
    %401 = arith.addf %398, %400 : vector<2x32xf32>
    %402 = math.tanh %401 : vector<2x32xf32>
    %cst_114 = arith.constant 1.000000e+00 : f32
    %403 = vector.broadcast %cst_114 : f32 to vector<2x32xf32>
    %404 = arith.subf %403, %397 : vector<2x32xf32>
    %405 = arith.mulf %404, %402 : vector<2x32xf32>
    %406 = arith.mulf %397, %339 : vector<2x32xf32>
    %407 = arith.addf %405, %406 : vector<2x32xf32>
    %c5_115 = arith.constant 5 : index
    %c0_116 = arith.constant 0 : index
    %c0_117 = arith.constant 0 : index
    %408 = vector.load %arg6[%c5_115, %c0_116, %c0_117] : memref<8x2x32xf32, #tpu.memory_space<vmem>>, vector<1x2x32xf32>
    %409 = vector.shape_cast %408 : vector<1x2x32xf32> to vector<2x32xf32>
    %410 = vector.shape_cast %376 : vector<2x32xf32> to vector<1x2x32xf32>
    tpu.vector_store %arg6[%c5_115, %c0_116, %c0_117], %410 {strides = array<i32>} : memref<8x2x32xf32, #tpu.memory_space<vmem>>, vector<1x2x32xf32>,
    %c2_118 = arith.constant 2 : index
    %c0_119 = arith.constant 0 : index
    %c0_120 = arith.constant 0 : index
    %411 = vector.load %arg7[%c2_118, %c0_119, %c0_120] : memref<8x2x32xf32, #tpu.memory_space<vmem>>, vector<1x2x32xf32>
    %412 = vector.shape_cast %411 : vector<1x2x32xf32> to vector<2x32xf32>
    %413 = vector.shape_cast %407 : vector<2x32xf32> to vector<1x2x32xf32>
    tpu.vector_store %arg7[%c2_118, %c0_119, %c0_120], %413 {strides = array<i32>} : memref<8x2x32xf32, #tpu.memory_space<vmem>>, vector<1x2x32xf32>,
    %c6_121 = arith.constant 6 : index
    %c0_122 = arith.constant 0 : index
    %c0_123 = arith.constant 0 : index
    %414 = vector.load %arg0[%c6_121, %c0_122, %c0_123] : memref<8x2x96xf32, #tpu.memory_space<vmem>>, vector<1x2x96xf32>
    %415 = vector.shape_cast %414 : vector<1x2x96xf32> to vector<2x96xf32>
    %cst_124 = arith.constant dense<0.000000e+00> : vector<2x96xf32>
    %416 = tpu.matmul %376, %0, %cst_124 {dimension_numbers = #tpu.dot_dimension_numbers<[1], [0], [0], [1], [0, 0, 1, 1], [], []>} : vector<2x32xf32>, vector<32x96xf32>, vector<2x96xf32> -> vector<2x96xf32>
    %417 = vector.broadcast %1 : vector<1x96xf32> to vector<2x96xf32>
    %418 = arith.addf %416, %417 : vector<2x96xf32>
    %419 = vector.extract_strided_slice %415 {offsets = [0, 0], sizes = [2, 32], strides = [1, 1]} : vector<2x96xf32> to vector<2x32xf32>
    %420 = vector.extract_strided_slice %418 {offsets = [0, 0], sizes = [2, 32], strides = [1, 1]} : vector<2x96xf32> to vector<2x32xf32>
    %421 = arith.addf %419, %420 : vector<2x32xf32>
    %422 = arith.negf %421 : vector<2x32xf32>
    %423 = math.exp %422 : vector<2x32xf32>
    %cst_125 = arith.constant 1.000000e+00 : f32
    %424 = vector.broadcast %cst_125 : f32 to vector<2x32xf32>
    %425 = arith.addf %424, %423 : vector<2x32xf32>
    %426 = arith.divf %424, %425 : vector<2x32xf32>
    %427 = vector.extract_strided_slice %415 {offsets = [0, 32], sizes = [2, 32], strides = [1, 1]} : vector<2x96xf32> to vector<2x32xf32>
    %428 = vector.extract_strided_slice %418 {offsets = [0, 32], sizes = [2, 32], strides = [1, 1]} : vector<2x96xf32> to vector<2x32xf32>
    %429 = arith.addf %427, %428 : vector<2x32xf32>
    %430 = arith.negf %429 : vector<2x32xf32>
    %431 = math.exp %430 : vector<2x32xf32>
    %cst_126 = arith.constant 1.000000e+00 : f32
    %432 = vector.broadcast %cst_126 : f32 to vector<2x32xf32>
    %433 = arith.addf %432, %431 : vector<2x32xf32>
    %434 = arith.divf %432, %433 : vector<2x32xf32>
    %435 = vector.extract_strided_slice %415 {offsets = [0, 64], sizes = [2, 32], strides = [1, 1]} : vector<2x96xf32> to vector<2x32xf32>
    %436 = vector.extract_strided_slice %418 {offsets = [0, 64], sizes = [2, 32], strides = [1, 1]} : vector<2x96xf32> to vector<2x32xf32>
    %437 = arith.mulf %426, %436 : vector<2x32xf32>
    %438 = arith.addf %435, %437 : vector<2x32xf32>
    %439 = math.tanh %438 : vector<2x32xf32>
    %cst_127 = arith.constant 1.000000e+00 : f32
    %440 = vector.broadcast %cst_127 : f32 to vector<2x32xf32>
    %441 = arith.subf %440, %434 : vector<2x32xf32>
    %442 = arith.mulf %441, %439 : vector<2x32xf32>
    %443 = arith.mulf %434, %376 : vector<2x32xf32>
    %444 = arith.addf %442, %443 : vector<2x32xf32>
    %c1_128 = arith.constant 1 : index
    %c0_129 = arith.constant 0 : index
    %c0_130 = arith.constant 0 : index
    %445 = vector.load %arg1[%c1_128, %c0_129, %c0_130] : memref<8x2x96xf32, #tpu.memory_space<vmem>>, vector<1x2x96xf32>
    %446 = vector.shape_cast %445 : vector<1x2x96xf32> to vector<2x96xf32>
    %cst_131 = arith.constant dense<0.000000e+00> : vector<2x96xf32>
    %447 = tpu.matmul %407, %2, %cst_131 {dimension_numbers = #tpu.dot_dimension_numbers<[1], [0], [0], [1], [0, 0, 1, 1], [], []>} : vector<2x32xf32>, vector<32x96xf32>, vector<2x96xf32> -> vector<2x96xf32>
    %448 = vector.broadcast %3 : vector<1x96xf32> to vector<2x96xf32>
    %449 = arith.addf %447, %448 : vector<2x96xf32>
    %450 = vector.extract_strided_slice %446 {offsets = [0, 0], sizes = [2, 32], strides = [1, 1]} : vector<2x96xf32> to vector<2x32xf32>
    %451 = vector.extract_strided_slice %449 {offsets = [0, 0], sizes = [2, 32], strides = [1, 1]} : vector<2x96xf32> to vector<2x32xf32>
    %452 = arith.addf %450, %451 : vector<2x32xf32>
    %453 = arith.negf %452 : vector<2x32xf32>
    %454 = math.exp %453 : vector<2x32xf32>
    %cst_132 = arith.constant 1.000000e+00 : f32
    %455 = vector.broadcast %cst_132 : f32 to vector<2x32xf32>
    %456 = arith.addf %455, %454 : vector<2x32xf32>
    %457 = arith.divf %455, %456 : vector<2x32xf32>
    %458 = vector.extract_strided_slice %446 {offsets = [0, 32], sizes = [2, 32], strides = [1, 1]} : vector<2x96xf32> to vector<2x32xf32>
    %459 = vector.extract_strided_slice %449 {offsets = [0, 32], sizes = [2, 32], strides = [1, 1]} : vector<2x96xf32> to vector<2x32xf32>
    %460 = arith.addf %458, %459 : vector<2x32xf32>
    %461 = arith.negf %460 : vector<2x32xf32>
    %462 = math.exp %461 : vector<2x32xf32>
    %cst_133 = arith.constant 1.000000e+00 : f32
    %463 = vector.broadcast %cst_133 : f32 to vector<2x32xf32>
    %464 = arith.addf %463, %462 : vector<2x32xf32>
    %465 = arith.divf %463, %464 : vector<2x32xf32>
    %466 = vector.extract_strided_slice %446 {offsets = [0, 64], sizes = [2, 32], strides = [1, 1]} : vector<2x96xf32> to vector<2x32xf32>
    %467 = vector.extract_strided_slice %449 {offsets = [0, 64], sizes = [2, 32], strides = [1, 1]} : vector<2x96xf32> to vector<2x32xf32>
    %468 = arith.mulf %457, %467 : vector<2x32xf32>
    %469 = arith.addf %466, %468 : vector<2x32xf32>
    %470 = math.tanh %469 : vector<2x32xf32>
    %cst_134 = arith.constant 1.000000e+00 : f32
    %471 = vector.broadcast %cst_134 : f32 to vector<2x32xf32>
    %472 = arith.subf %471, %465 : vector<2x32xf32>
    %473 = arith.mulf %472, %470 : vector<2x32xf32>
    %474 = arith.mulf %465, %407 : vector<2x32xf32>
    %475 = arith.addf %473, %474 : vector<2x32xf32>
    %c6_135 = arith.constant 6 : index
    %c0_136 = arith.constant 0 : index
    %c0_137 = arith.constant 0 : index
    %476 = vector.load %arg6[%c6_135, %c0_136, %c0_137] : memref<8x2x32xf32, #tpu.memory_space<vmem>>, vector<1x2x32xf32>
    %477 = vector.shape_cast %476 : vector<1x2x32xf32> to vector<2x32xf32>
    %478 = vector.shape_cast %444 : vector<2x32xf32> to vector<1x2x32xf32>
    tpu.vector_store %arg6[%c6_135, %c0_136, %c0_137], %478 {strides = array<i32>} : memref<8x2x32xf32, #tpu.memory_space<vmem>>, vector<1x2x32xf32>,
    %c1_138 = arith.constant 1 : index
    %c0_139 = arith.constant 0 : index
    %c0_140 = arith.constant 0 : index
    %479 = vector.load %arg7[%c1_138, %c0_139, %c0_140] : memref<8x2x32xf32, #tpu.memory_space<vmem>>, vector<1x2x32xf32>
    %480 = vector.shape_cast %479 : vector<1x2x32xf32> to vector<2x32xf32>
    %481 = vector.shape_cast %475 : vector<2x32xf32> to vector<1x2x32xf32>
    tpu.vector_store %arg7[%c1_138, %c0_139, %c0_140], %481 {strides = array<i32>} : memref<8x2x32xf32, #tpu.memory_space<vmem>>, vector<1x2x32xf32>,
    %c7_141 = arith.constant 7 : index
    %c0_142 = arith.constant 0 : index
    %c0_143 = arith.constant 0 : index
    %482 = vector.load %arg0[%c7_141, %c0_142, %c0_143] : memref<8x2x96xf32, #tpu.memory_space<vmem>>, vector<1x2x96xf32>
    %483 = vector.shape_cast %482 : vector<1x2x96xf32> to vector<2x96xf32>
    %cst_144 = arith.constant dense<0.000000e+00> : vector<2x96xf32>
    %484 = tpu.matmul %444, %0, %cst_144 {dimension_numbers = #tpu.dot_dimension_numbers<[1], [0], [0], [1], [0, 0, 1, 1], [], []>} : vector<2x32xf32>, vector<32x96xf32>, vector<2x96xf32> -> vector<2x96xf32>
    %485 = vector.broadcast %1 : vector<1x96xf32> to vector<2x96xf32>
    %486 = arith.addf %484, %485 : vector<2x96xf32>
    %487 = vector.extract_strided_slice %483 {offsets = [0, 0], sizes = [2, 32], strides = [1, 1]} : vector<2x96xf32> to vector<2x32xf32>
    %488 = vector.extract_strided_slice %486 {offsets = [0, 0], sizes = [2, 32], strides = [1, 1]} : vector<2x96xf32> to vector<2x32xf32>
    %489 = arith.addf %487, %488 : vector<2x32xf32>
    %490 = arith.negf %489 : vector<2x32xf32>
    %491 = math.exp %490 : vector<2x32xf32>
    %cst_145 = arith.constant 1.000000e+00 : f32
    %492 = vector.broadcast %cst_145 : f32 to vector<2x32xf32>
    %493 = arith.addf %492, %491 : vector<2x32xf32>
    %494 = arith.divf %492, %493 : vector<2x32xf32>
    %495 = vector.extract_strided_slice %483 {offsets = [0, 32], sizes = [2, 32], strides = [1, 1]} : vector<2x96xf32> to vector<2x32xf32>
    %496 = vector.extract_strided_slice %486 {offsets = [0, 32], sizes = [2, 32], strides = [1, 1]} : vector<2x96xf32> to vector<2x32xf32>
    %497 = arith.addf %495, %496 : vector<2x32xf32>
    %498 = arith.negf %497 : vector<2x32xf32>
    %499 = math.exp %498 : vector<2x32xf32>
    %cst_146 = arith.constant 1.000000e+00 : f32
    %500 = vector.broadcast %cst_146 : f32 to vector<2x32xf32>
    %501 = arith.addf %500, %499 : vector<2x32xf32>
    %502 = arith.divf %500, %501 : vector<2x32xf32>
    %503 = vector.extract_strided_slice %483 {offsets = [0, 64], sizes = [2, 32], strides = [1, 1]} : vector<2x96xf32> to vector<2x32xf32>
    %504 = vector.extract_strided_slice %486 {offsets = [0, 64], sizes = [2, 32], strides = [1, 1]} : vector<2x96xf32> to vector<2x32xf32>
    %505 = arith.mulf %494, %504 : vector<2x32xf32>
    %506 = arith.addf %503, %505 : vector<2x32xf32>
    %507 = math.tanh %506 : vector<2x32xf32>
    %cst_147 = arith.constant 1.000000e+00 : f32
    %508 = vector.broadcast %cst_147 : f32 to vector<2x32xf32>
    %509 = arith.subf %508, %502 : vector<2x32xf32>
    %510 = arith.mulf %509, %507 : vector<2x32xf32>
    %511 = arith.mulf %502, %444 : vector<2x32xf32>
    %512 = arith.addf %510, %511 : vector<2x32xf32>
    %c0_148 = arith.constant 0 : index
    %c0_149 = arith.constant 0 : index
    %c0_150 = arith.constant 0 : index
    %513 = vector.load %arg1[%c0_148, %c0_149, %c0_150] : memref<8x2x96xf32, #tpu.memory_space<vmem>>, vector<1x2x96xf32>
    %514 = vector.shape_cast %513 : vector<1x2x96xf32> to vector<2x96xf32>
    %cst_151 = arith.constant dense<0.000000e+00> : vector<2x96xf32>
    %515 = tpu.matmul %475, %2, %cst_151 {dimension_numbers = #tpu.dot_dimension_numbers<[1], [0], [0], [1], [0, 0, 1, 1], [], []>} : vector<2x32xf32>, vector<32x96xf32>, vector<2x96xf32> -> vector<2x96xf32>
    %516 = vector.broadcast %3 : vector<1x96xf32> to vector<2x96xf32>
    %517 = arith.addf %515, %516 : vector<2x96xf32>
    %518 = vector.extract_strided_slice %514 {offsets = [0, 0], sizes = [2, 32], strides = [1, 1]} : vector<2x96xf32> to vector<2x32xf32>
    %519 = vector.extract_strided_slice %517 {offsets = [0, 0], sizes = [2, 32], strides = [1, 1]} : vector<2x96xf32> to vector<2x32xf32>
    %520 = arith.addf %518, %519 : vector<2x32xf32>
    %521 = arith.negf %520 : vector<2x32xf32>
    %522 = math.exp %521 : vector<2x32xf32>
    %cst_152 = arith.constant 1.000000e+00 : f32
    %523 = vector.broadcast %cst_152 : f32 to vector<2x32xf32>
    %524 = arith.addf %523, %522 : vector<2x32xf32>
    %525 = arith.divf %523, %524 : vector<2x32xf32>
    %526 = vector.extract_strided_slice %514 {offsets = [0, 32], sizes = [2, 32], strides = [1, 1]} : vector<2x96xf32> to vector<2x32xf32>
    %527 = vector.extract_strided_slice %517 {offsets = [0, 32], sizes = [2, 32], strides = [1, 1]} : vector<2x96xf32> to vector<2x32xf32>
    %528 = arith.addf %526, %527 : vector<2x32xf32>
    %529 = arith.negf %528 : vector<2x32xf32>
    %530 = math.exp %529 : vector<2x32xf32>
    %cst_153 = arith.constant 1.000000e+00 : f32
    %531 = vector.broadcast %cst_153 : f32 to vector<2x32xf32>
    %532 = arith.addf %531, %530 : vector<2x32xf32>
    %533 = arith.divf %531, %532 : vector<2x32xf32>
    %534 = vector.extract_strided_slice %514 {offsets = [0, 64], sizes = [2, 32], strides = [1, 1]} : vector<2x96xf32> to vector<2x32xf32>
    %535 = vector.extract_strided_slice %517 {offsets = [0, 64], sizes = [2, 32], strides = [1, 1]} : vector<2x96xf32> to vector<2x32xf32>
    %536 = arith.mulf %525, %535 : vector<2x32xf32>
    %537 = arith.addf %534, %536 : vector<2x32xf32>
    %538 = math.tanh %537 : vector<2x32xf32>
    %cst_154 = arith.constant 1.000000e+00 : f32
    %539 = vector.broadcast %cst_154 : f32 to vector<2x32xf32>
    %540 = arith.subf %539, %533 : vector<2x32xf32>
    %541 = arith.mulf %540, %538 : vector<2x32xf32>
    %542 = arith.mulf %533, %475 : vector<2x32xf32>
    %543 = arith.addf %541, %542 : vector<2x32xf32>
    %c7_155 = arith.constant 7 : index
    %c0_156 = arith.constant 0 : index
    %c0_157 = arith.constant 0 : index
    %544 = vector.load %arg6[%c7_155, %c0_156, %c0_157] : memref<8x2x32xf32, #tpu.memory_space<vmem>>, vector<1x2x32xf32>
    %545 = vector.shape_cast %544 : vector<1x2x32xf32> to vector<2x32xf32>
    %546 = vector.shape_cast %512 : vector<2x32xf32> to vector<1x2x32xf32>
    tpu.vector_store %arg6[%c7_155, %c0_156, %c0_157], %546 {strides = array<i32>} : memref<8x2x32xf32, #tpu.memory_space<vmem>>, vector<1x2x32xf32>,
    %c0_158 = arith.constant 0 : index
    %c0_159 = arith.constant 0 : index
    %c0_160 = arith.constant 0 : index
    %547 = vector.load %arg7[%c0_158, %c0_159, %c0_160] : memref<8x2x32xf32, #tpu.memory_space<vmem>>, vector<1x2x32xf32>
    %548 = vector.shape_cast %547 : vector<1x2x32xf32> to vector<2x32xf32>
    %549 = vector.shape_cast %543 : vector<2x32xf32> to vector<1x2x32xf32>
    tpu.vector_store %arg7[%c0_158, %c0_159, %c0_160], %549 {strides = array<i32>} : memref<8x2x32xf32, #tpu.memory_space<vmem>>, vector<1x2x32xf32>,
    %550 = arith.addf %512, %543 : vector<2x32xf32>
    %c0_161 = arith.constant 0 : index
    %c0_162 = arith.constant 0 : index
    %551 = vector.load %arg8[%c0_161, %c0_162] : memref<2x32xf32, #tpu.memory_space<vmem>>, vector<2x32xf32>
    tpu.vector_store %arg8[%c0_161, %c0_162], %550 {strides = array<i32>} : memref<2x32xf32, #tpu.memory_space<vmem>>, vector<2x32xf32>,
    return
  }
}

module attributes {stable_mosaic.version = 11 : i64} {
  func.func @_decoder_tf_kernel(%arg0: memref<6xi32, #tpu.memory_space<smem>>, %arg1: memref<6x2x16xf32, #tpu.memory_space<vmem>>, %arg2: memref<2x32xf32, #tpu.memory_space<vmem>>, %arg3: memref<8x2x64xf32, #tpu.memory_space<vmem>>, %arg4: memref<8x2x32xf32, #tpu.memory_space<vmem>>, %arg5: memref<29x16xf32, #tpu.memory_space<vmem>>, %arg6: memref<16x96xf32, #tpu.memory_space<vmem>>, %arg7: memref<32x96xf32, #tpu.memory_space<vmem>>, %arg8: memref<1x96xf32, #tpu.memory_space<vmem>>, %arg9: memref<1x96xf32, #tpu.memory_space<vmem>>, %arg10: memref<32x32xf32, #tpu.memory_space<vmem>>, %arg11: memref<1x32xf32, #tpu.memory_space<vmem>>, %arg12: memref<1x32xf32, #tpu.memory_space<vmem>>, %arg13: memref<64x29xf32, #tpu.memory_space<vmem>>, %arg14: memref<32x29xf32, #tpu.memory_space<vmem>>, %arg15: memref<1x29xf32, #tpu.memory_space<vmem>>, %arg16: memref<32x29xf32, #tpu.memory_space<vmem>>, %arg17: memref<1x29xf32, #tpu.memory_space<vmem>>, %arg18: memref<6x2x29xf32, #tpu.memory_space<vmem>>) attributes {dimension_semantics = [], scalar_prefetch = 0 : i64, scratch_operands = 0 : i64, tpu.core_type = #tpu.core_type<tc>} {
    %c0 = arith.constant 0 : index
    %c0_0 = arith.constant 0 : index
    %c0_1 = arith.constant 0 : index
    %0 = vector.load %arg3[%c0, %c0_0, %c0_1] : memref<8x2x64xf32, #tpu.memory_space<vmem>>, vector<8x2x64xf32>
    %c0_2 = arith.constant 0 : index
    %c0_3 = arith.constant 0 : index
    %c0_4 = arith.constant 0 : index
    %1 = vector.load %arg4[%c0_2, %c0_3, %c0_4] : memref<8x2x32xf32, #tpu.memory_space<vmem>>, vector<8x2x32xf32>
    %c0_5 = arith.constant 0 : index
    %c0_6 = arith.constant 0 : index
    %2 = vector.load %arg5[%c0_5, %c0_6] : memref<29x16xf32, #tpu.memory_space<vmem>>, vector<29x16xf32>
    %c0_7 = arith.constant 0 : index
    %c0_8 = arith.constant 0 : index
    %3 = vector.load %arg12[%c0_7, %c0_8] : memref<1x32xf32, #tpu.memory_space<vmem>>, vector<1x32xf32>
    %4 = vector.shape_cast %3 : vector<1x32xf32> to vector<1x1x32xf32>
    %c0_9 = arith.constant 0 : index
    %c0_10 = arith.constant 0 : index
    %5 = vector.load %arg6[%c0_9, %c0_10] : memref<16x96xf32, #tpu.memory_space<vmem>>, vector<16x96xf32>
    %c0_11 = arith.constant 0 : index
    %c0_12 = arith.constant 0 : index
    %6 = vector.load %arg7[%c0_11, %c0_12] : memref<32x96xf32, #tpu.memory_space<vmem>>, vector<32x96xf32>
    %c0_13 = arith.constant 0 : index
    %c0_14 = arith.constant 0 : index
    %7 = vector.load %arg8[%c0_13, %c0_14] : memref<1x96xf32, #tpu.memory_space<vmem>>, vector<1x96xf32>
    %c0_15 = arith.constant 0 : index
    %c0_16 = arith.constant 0 : index
    %8 = vector.load %arg9[%c0_15, %c0_16] : memref<1x96xf32, #tpu.memory_space<vmem>>, vector<1x96xf32>
    %c0_17 = arith.constant 0 : index
    %c0_18 = arith.constant 0 : index
    %9 = vector.load %arg10[%c0_17, %c0_18] : memref<32x32xf32, #tpu.memory_space<vmem>>, vector<32x32xf32>
    %c0_19 = arith.constant 0 : index
    %c0_20 = arith.constant 0 : index
    %10 = vector.load %arg11[%c0_19, %c0_20] : memref<1x32xf32, #tpu.memory_space<vmem>>, vector<1x32xf32>
    %c0_21 = arith.constant 0 : index
    %c0_22 = arith.constant 0 : index
    %11 = vector.load %arg13[%c0_21, %c0_22] : memref<64x29xf32, #tpu.memory_space<vmem>>, vector<64x29xf32>
    %c0_23 = arith.constant 0 : index
    %c0_24 = arith.constant 0 : index
    %12 = vector.load %arg14[%c0_23, %c0_24] : memref<32x29xf32, #tpu.memory_space<vmem>>, vector<32x29xf32>
    %c0_25 = arith.constant 0 : index
    %c0_26 = arith.constant 0 : index
    %13 = vector.load %arg15[%c0_25, %c0_26] : memref<1x29xf32, #tpu.memory_space<vmem>>, vector<1x29xf32>
    %c0_27 = arith.constant 0 : index
    %c0_28 = arith.constant 0 : index
    %14 = vector.load %arg2[%c0_27, %c0_28] : memref<2x32xf32, #tpu.memory_space<vmem>>, vector<2x32xf32>
    %c0_29 = arith.constant 0 : index
    %c0_30 = arith.constant 0 : index
    %c0_31 = arith.constant 0 : index
    %15 = vector.load %arg1[%c0_29, %c0_30, %c0_31] : memref<6x2x16xf32, #tpu.memory_space<vmem>>, vector<1x2x16xf32>
    %16 = vector.shape_cast %15 : vector<1x2x16xf32> to vector<2x16xf32>
    %cst = arith.constant 0.000000e+00 : f32
    %17 = vector.broadcast %cst : f32 to vector<2x29xf32>
    %c0_32 = arith.constant 0 : index
    %c0_33 = arith.constant 0 : index
    %c0_34 = arith.constant 0 : index
    %18 = vector.load %arg18[%c0_32, %c0_33, %c0_34] : memref<6x2x29xf32, #tpu.memory_space<vmem>>, vector<1x2x29xf32>
    %19 = vector.shape_cast %18 : vector<1x2x29xf32> to vector<2x29xf32>
    %20 = vector.shape_cast %17 : vector<2x29xf32> to vector<1x2x29xf32>
    tpu.vector_store %arg18[%c0_32, %c0_33, %c0_34], %20 {strides = array<i32>} : memref<6x2x29xf32, #tpu.memory_space<vmem>>, vector<1x2x29xf32>,
    %cst_35 = arith.constant dense<0.000000e+00> : vector<2x96xf32>
    %21 = tpu.matmul %16, %5, %cst_35 {dimension_numbers = #tpu.dot_dimension_numbers<[1], [0], [0], [1], [0, 0, 1, 1], [], []>} : vector<2x16xf32>, vector<16x96xf32>, vector<2x96xf32> -> vector<2x96xf32>
    %22 = vector.broadcast %7 : vector<1x96xf32> to vector<2x96xf32>
    %23 = arith.addf %21, %22 : vector<2x96xf32>
    %cst_36 = arith.constant dense<0.000000e+00> : vector<2x96xf32>
    %24 = tpu.matmul %14, %6, %cst_36 {dimension_numbers = #tpu.dot_dimension_numbers<[1], [0], [0], [1], [0, 0, 1, 1], [], []>} : vector<2x32xf32>, vector<32x96xf32>, vector<2x96xf32> -> vector<2x96xf32>
    %25 = vector.broadcast %8 : vector<1x96xf32> to vector<2x96xf32>
    %26 = arith.addf %24, %25 : vector<2x96xf32>
    %27 = vector.extract_strided_slice %23 {offsets = [0, 0], sizes = [2, 32], strides = [1, 1]} : vector<2x96xf32> to vector<2x32xf32>
    %28 = vector.extract_strided_slice %26 {offsets = [0, 0], sizes = [2, 32], strides = [1, 1]} : vector<2x96xf32> to vector<2x32xf32>
    %29 = arith.addf %27, %28 : vector<2x32xf32>
    %30 = arith.negf %29 : vector<2x32xf32>
    %31 = math.exp %30 : vector<2x32xf32>
    %cst_37 = arith.constant 1.000000e+00 : f32
    %32 = vector.broadcast %cst_37 : f32 to vector<2x32xf32>
    %33 = arith.addf %32, %31 : vector<2x32xf32>
    %34 = arith.divf %32, %33 : vector<2x32xf32>
    %35 = vector.extract_strided_slice %23 {offsets = [0, 32], sizes = [2, 32], strides = [1, 1]} : vector<2x96xf32> to vector<2x32xf32>
    %36 = vector.extract_strided_slice %26 {offsets = [0, 32], sizes = [2, 32], strides = [1, 1]} : vector<2x96xf32> to vector<2x32xf32>
    %37 = arith.addf %35, %36 : vector<2x32xf32>
    %38 = arith.negf %37 : vector<2x32xf32>
    %39 = math.exp %38 : vector<2x32xf32>
    %cst_38 = arith.constant 1.000000e+00 : f32
    %40 = vector.broadcast %cst_38 : f32 to vector<2x32xf32>
    %41 = arith.addf %40, %39 : vector<2x32xf32>
    %42 = arith.divf %40, %41 : vector<2x32xf32>
    %43 = vector.extract_strided_slice %23 {offsets = [0, 64], sizes = [2, 32], strides = [1, 1]} : vector<2x96xf32> to vector<2x32xf32>
    %44 = vector.extract_strided_slice %26 {offsets = [0, 64], sizes = [2, 32], strides = [1, 1]} : vector<2x96xf32> to vector<2x32xf32>
    %45 = arith.mulf %34, %44 : vector<2x32xf32>
    %46 = arith.addf %43, %45 : vector<2x32xf32>
    %47 = math.tanh %46 : vector<2x32xf32>
    %cst_39 = arith.constant 1.000000e+00 : f32
    %48 = vector.broadcast %cst_39 : f32 to vector<2x32xf32>
    %49 = arith.subf %48, %42 : vector<2x32xf32>
    %50 = arith.mulf %49, %47 : vector<2x32xf32>
    %51 = arith.mulf %42, %14 : vector<2x32xf32>
    %52 = arith.addf %50, %51 : vector<2x32xf32>
    %cst_40 = arith.constant dense<0.000000e+00> : vector<2x32xf32>
    %53 = tpu.matmul %52, %9, %cst_40 {dimension_numbers = #tpu.dot_dimension_numbers<[1], [0], [0], [1], [0, 0, 1, 1], [], []>} : vector<2x32xf32>, vector<32x32xf32>, vector<2x32xf32> -> vector<2x32xf32>
    %54 = vector.broadcast %10 : vector<1x32xf32> to vector<2x32xf32>
    %55 = arith.addf %53, %54 : vector<2x32xf32>
    %56 = vector.shape_cast %55 : vector<2x32xf32> to vector<1x2x32xf32>
    %57 = vector.broadcast %56 : vector<1x2x32xf32> to vector<8x2x32xf32>
    %58 = arith.addf %1, %57 : vector<8x2x32xf32>
    %59 = math.tanh %58 : vector<8x2x32xf32>
    %60 = vector.broadcast %4 : vector<1x1x32xf32> to vector<8x2x32xf32>
    %61 = arith.mulf %59, %60 : vector<8x2x32xf32>
    %cst_41 = arith.constant dense<0.000000e+00> : vector<8x2xf32>
    %62 = vector.multi_reduction <add>, %61, %cst_41 [2] : vector<8x2x32xf32> to vector<8x2xf32>
    %63 = vector.shape_cast %62 : vector<8x2xf32> to vector<8x2x1xf32>
    %cst_42 = arith.constant dense<0xFF800000> : vector<2x1xf32>
    %64 = vector.multi_reduction <maximumf>, %63, %cst_42 [0] : vector<8x2x1xf32> to vector<2x1xf32>
    %65 = vector.shape_cast %64 : vector<2x1xf32> to vector<1x2x1xf32>
    %66 = vector.broadcast %65 : vector<1x2x1xf32> to vector<8x2x1xf32>
    %67 = arith.subf %63, %66 : vector<8x2x1xf32>
    %68 = math.exp %67 : vector<8x2x1xf32>
    %cst_43 = arith.constant dense<0.000000e+00> : vector<2x1xf32>
    %69 = vector.multi_reduction <add>, %68, %cst_43 [0] : vector<8x2x1xf32> to vector<2x1xf32>
    %70 = vector.shape_cast %69 : vector<2x1xf32> to vector<1x2x1xf32>
    %71 = tpu.reciprocal %70 {approx = true} : vector<1x2x1xf32> -> vector<1x2x1xf32>
    %72 = vector.broadcast %71 : vector<1x2x1xf32> to vector<8x2x1xf32>
    %73 = arith.mulf %68, %72 : vector<8x2x1xf32>
    %74 = vector.broadcast %73 : vector<8x2x1xf32> to vector<8x2x64xf32>
    %75 = arith.mulf %74, %0 : vector<8x2x64xf32>
    %cst_44 = arith.constant dense<0.000000e+00> : vector<2x64xf32>
    %76 = vector.multi_reduction <add>, %75, %cst_44 [0] : vector<8x2x64xf32> to vector<2x64xf32>
    %cst_45 = arith.constant dense<0.000000e+00> : vector<2x29xf32>
    %77 = tpu.matmul %76, %11, %cst_45 {dimension_numbers = #tpu.dot_dimension_numbers<[1], [0], [0], [1], [0, 0, 1, 1], [], []>} : vector<2x64xf32>, vector<64x29xf32>, vector<2x29xf32> -> vector<2x29xf32>
    %cst_46 = arith.constant dense<0.000000e+00> : vector<2x29xf32>
    %78 = tpu.matmul %52, %12, %cst_46 {dimension_numbers = #tpu.dot_dimension_numbers<[1], [0], [0], [1], [0, 0, 1, 1], [], []>} : vector<2x32xf32>, vector<32x29xf32>, vector<2x29xf32> -> vector<2x29xf32>
    %79 = arith.addf %77, %78 : vector<2x29xf32>
    %80 = vector.broadcast %13 : vector<1x29xf32> to vector<2x29xf32>
    %81 = arith.addf %79, %80 : vector<2x29xf32>
    %c1 = arith.constant 1 : index
    %c0_47 = arith.constant 0 : index
    %c0_48 = arith.constant 0 : index
    %82 = vector.load %arg18[%c1, %c0_47, %c0_48] : memref<6x2x29xf32, #tpu.memory_space<vmem>>, vector<1x2x29xf32>
    %83 = vector.shape_cast %82 : vector<1x2x29xf32> to vector<2x29xf32>
    %84 = vector.shape_cast %81 : vector<2x29xf32> to vector<1x2x29xf32>
    tpu.vector_store %arg18[%c1, %c0_47, %c0_48], %84 {strides = array<i32>} : memref<6x2x29xf32, #tpu.memory_space<vmem>>, vector<1x2x29xf32>,
    %85 = tpu.iota {dimensions = array<i32: 1>} : vector<2x29xi32>
    %cst_49 = arith.constant dense<0xFF800000> : vector<2xf32>
    %86 = vector.multi_reduction <maximumf>, %81, %cst_49 [1] : vector<2x29xf32> to vector<2xf32>
    %87 = vector.shape_cast %86 : vector<2xf32> to vector<2x1xf32>
    %88 = vector.broadcast %87 : vector<2x1xf32> to vector<2x29xf32>
    %89 = arith.cmpf oeq, %81, %88 : vector<2x29xf32>
    %c29_i32 = arith.constant 29 : i32
    %90 = vector.broadcast %c29_i32 : i32 to vector<2x29xi32>
    %91 = arith.select %89, %85, %90 : vector<2x29xi1>, vector<2x29xi32>
    %cst_50 = arith.constant dense<2147483647> : vector<2xi32>
    %92 = vector.multi_reduction <minsi>, %91, %cst_50 [1] : vector<2x29xi32> to vector<2xi32>
    %93 = vector.shape_cast %92 : vector<2xi32> to vector<2x1xi32>
    %94 = vector.broadcast %93 : vector<2x1xi32> to vector<2x29xi32>
    %95 = arith.cmpi eq, %85, %94 : vector<2x29xi32>
    %96 = arith.extui %95 : vector<2x29xi1> to vector<2x29xi32>
    %97 = arith.sitofp %96 : vector<2x29xi32> to vector<2x29xf32>
    %cst_51 = arith.constant dense<0.000000e+00> : vector<2x16xf32>
    %98 = tpu.matmul %97, %2, %cst_51 {dimension_numbers = #tpu.dot_dimension_numbers<[1], [0], [0], [1], [0, 0, 1, 1], [], []>} : vector<2x29xf32>, vector<29x16xf32>, vector<2x16xf32> -> vector<2x16xf32>
    %c1_52 = arith.constant 1 : index
    %99 = memref.load %arg0[%c1_52] : memref<6xi32, #tpu.memory_space<smem>>
    %100 = arith.sitofp %99 : i32 to f32
    %c1_53 = arith.constant 1 : index
    %c0_54 = arith.constant 0 : index
    %c0_55 = arith.constant 0 : index
    %101 = vector.load %arg1[%c1_53, %c0_54, %c0_55] : memref<6x2x16xf32, #tpu.memory_space<vmem>>, vector<1x2x16xf32>
    %102 = vector.shape_cast %101 : vector<1x2x16xf32> to vector<2x16xf32>
    %103 = vector.broadcast %100 : f32 to vector<2x16xf32>
    %104 = arith.mulf %103, %102 : vector<2x16xf32>
    %cst_56 = arith.constant 1.000000e+00 : f32
    %105 = arith.subf %cst_56, %100 : f32
    %106 = vector.broadcast %105 : f32 to vector<2x16xf32>
    %107 = arith.mulf %106, %98 : vector<2x16xf32>
    %108 = arith.addf %104, %107 : vector<2x16xf32>
    %cst_57 = arith.constant dense<0.000000e+00> : vector<2x96xf32>
    %109 = tpu.matmul %108, %5, %cst_57 {dimension_numbers = #tpu.dot_dimension_numbers<[1], [0], [0], [1], [0, 0, 1, 1], [], []>} : vector<2x16xf32>, vector<16x96xf32>, vector<2x96xf32> -> vector<2x96xf32>
    %110 = vector.broadcast %7 : vector<1x96xf32> to vector<2x96xf32>
    %111 = arith.addf %109, %110 : vector<2x96xf32>
    %cst_58 = arith.constant dense<0.000000e+00> : vector<2x96xf32>
    %112 = tpu.matmul %52, %6, %cst_58 {dimension_numbers = #tpu.dot_dimension_numbers<[1], [0], [0], [1], [0, 0, 1, 1], [], []>} : vector<2x32xf32>, vector<32x96xf32>, vector<2x96xf32> -> vector<2x96xf32>
    %113 = vector.broadcast %8 : vector<1x96xf32> to vector<2x96xf32>
    %114 = arith.addf %112, %113 : vector<2x96xf32>
    %115 = vector.extract_strided_slice %111 {offsets = [0, 0], sizes = [2, 32], strides = [1, 1]} : vector<2x96xf32> to vector<2x32xf32>
    %116 = vector.extract_strided_slice %114 {offsets = [0, 0], sizes = [2, 32], strides = [1, 1]} : vector<2x96xf32> to vector<2x32xf32>
    %117 = arith.addf %115, %116 : vector<2x32xf32>
    %118 = arith.negf %117 : vector<2x32xf32>
    %119 = math.exp %118 : vector<2x32xf32>
    %cst_59 = arith.constant 1.000000e+00 : f32
    %120 = vector.broadcast %cst_59 : f32 to vector<2x32xf32>
    %121 = arith.addf %120, %119 : vector<2x32xf32>
    %122 = arith.divf %120, %121 : vector<2x32xf32>
    %123 = vector.extract_strided_slice %111 {offsets = [0, 32], sizes = [2, 32], strides = [1, 1]} : vector<2x96xf32> to vector<2x32xf32>
    %124 = vector.extract_strided_slice %114 {offsets = [0, 32], sizes = [2, 32], strides = [1, 1]} : vector<2x96xf32> to vector<2x32xf32>
    %125 = arith.addf %123, %124 : vector<2x32xf32>
    %126 = arith.negf %125 : vector<2x32xf32>
    %127 = math.exp %126 : vector<2x32xf32>
    %cst_60 = arith.constant 1.000000e+00 : f32
    %128 = vector.broadcast %cst_60 : f32 to vector<2x32xf32>
    %129 = arith.addf %128, %127 : vector<2x32xf32>
    %130 = arith.divf %128, %129 : vector<2x32xf32>
    %131 = vector.extract_strided_slice %111 {offsets = [0, 64], sizes = [2, 32], strides = [1, 1]} : vector<2x96xf32> to vector<2x32xf32>
    %132 = vector.extract_strided_slice %114 {offsets = [0, 64], sizes = [2, 32], strides = [1, 1]} : vector<2x96xf32> to vector<2x32xf32>
    %133 = arith.mulf %122, %132 : vector<2x32xf32>
    %134 = arith.addf %131, %133 : vector<2x32xf32>
    %135 = math.tanh %134 : vector<2x32xf32>
    %cst_61 = arith.constant 1.000000e+00 : f32
    %136 = vector.broadcast %cst_61 : f32 to vector<2x32xf32>
    %137 = arith.subf %136, %130 : vector<2x32xf32>
    %138 = arith.mulf %137, %135 : vector<2x32xf32>
    %139 = arith.mulf %130, %52 : vector<2x32xf32>
    %140 = arith.addf %138, %139 : vector<2x32xf32>
    %cst_62 = arith.constant dense<0.000000e+00> : vector<2x32xf32>
    %141 = tpu.matmul %140, %9, %cst_62 {dimension_numbers = #tpu.dot_dimension_numbers<[1], [0], [0], [1], [0, 0, 1, 1], [], []>} : vector<2x32xf32>, vector<32x32xf32>, vector<2x32xf32> -> vector<2x32xf32>
    %142 = vector.broadcast %10 : vector<1x32xf32> to vector<2x32xf32>
    %143 = arith.addf %141, %142 : vector<2x32xf32>
    %144 = vector.shape_cast %143 : vector<2x32xf32> to vector<1x2x32xf32>
    %145 = vector.broadcast %144 : vector<1x2x32xf32> to vector<8x2x32xf32>
    %146 = arith.addf %1, %145 : vector<8x2x32xf32>
    %147 = math.tanh %146 : vector<8x2x32xf32>
    %148 = vector.broadcast %4 : vector<1x1x32xf32> to vector<8x2x32xf32>
    %149 = arith.mulf %147, %148 : vector<8x2x32xf32>
    %cst_63 = arith.constant dense<0.000000e+00> : vector<8x2xf32>
    %150 = vector.multi_reduction <add>, %149, %cst_63 [2] : vector<8x2x32xf32> to vector<8x2xf32>
    %151 = vector.shape_cast %150 : vector<8x2xf32> to vector<8x2x1xf32>
    %cst_64 = arith.constant dense<0xFF800000> : vector<2x1xf32>
    %152 = vector.multi_reduction <maximumf>, %151, %cst_64 [0] : vector<8x2x1xf32> to vector<2x1xf32>
    %153 = vector.shape_cast %152 : vector<2x1xf32> to vector<1x2x1xf32>
    %154 = vector.broadcast %153 : vector<1x2x1xf32> to vector<8x2x1xf32>
    %155 = arith.subf %151, %154 : vector<8x2x1xf32>
    %156 = math.exp %155 : vector<8x2x1xf32>
    %cst_65 = arith.constant dense<0.000000e+00> : vector<2x1xf32>
    %157 = vector.multi_reduction <add>, %156, %cst_65 [0] : vector<8x2x1xf32> to vector<2x1xf32>
    %158 = vector.shape_cast %157 : vector<2x1xf32> to vector<1x2x1xf32>
    %159 = tpu.reciprocal %158 {approx = true} : vector<1x2x1xf32> -> vector<1x2x1xf32>
    %160 = vector.broadcast %159 : vector<1x2x1xf32> to vector<8x2x1xf32>
    %161 = arith.mulf %156, %160 : vector<8x2x1xf32>
    %162 = vector.broadcast %161 : vector<8x2x1xf32> to vector<8x2x64xf32>
    %163 = arith.mulf %162, %0 : vector<8x2x64xf32>
    %cst_66 = arith.constant dense<0.000000e+00> : vector<2x64xf32>
    %164 = vector.multi_reduction <add>, %163, %cst_66 [0] : vector<8x2x64xf32> to vector<2x64xf32>
    %cst_67 = arith.constant dense<0.000000e+00> : vector<2x29xf32>
    %165 = tpu.matmul %164, %11, %cst_67 {dimension_numbers = #tpu.dot_dimension_numbers<[1], [0], [0], [1], [0, 0, 1, 1], [], []>} : vector<2x64xf32>, vector<64x29xf32>, vector<2x29xf32> -> vector<2x29xf32>
    %cst_68 = arith.constant dense<0.000000e+00> : vector<2x29xf32>
    %166 = tpu.matmul %140, %12, %cst_68 {dimension_numbers = #tpu.dot_dimension_numbers<[1], [0], [0], [1], [0, 0, 1, 1], [], []>} : vector<2x32xf32>, vector<32x29xf32>, vector<2x29xf32> -> vector<2x29xf32>
    %167 = arith.addf %165, %166 : vector<2x29xf32>
    %168 = vector.broadcast %13 : vector<1x29xf32> to vector<2x29xf32>
    %169 = arith.addf %167, %168 : vector<2x29xf32>
    %c2 = arith.constant 2 : index
    %c0_69 = arith.constant 0 : index
    %c0_70 = arith.constant 0 : index
    %170 = vector.load %arg18[%c2, %c0_69, %c0_70] : memref<6x2x29xf32, #tpu.memory_space<vmem>>, vector<1x2x29xf32>
    %171 = vector.shape_cast %170 : vector<1x2x29xf32> to vector<2x29xf32>
    %172 = vector.shape_cast %169 : vector<2x29xf32> to vector<1x2x29xf32>
    tpu.vector_store %arg18[%c2, %c0_69, %c0_70], %172 {strides = array<i32>} : memref<6x2x29xf32, #tpu.memory_space<vmem>>, vector<1x2x29xf32>,
    %173 = tpu.iota {dimensions = array<i32: 1>} : vector<2x29xi32>
    %cst_71 = arith.constant dense<0xFF800000> : vector<2xf32>
    %174 = vector.multi_reduction <maximumf>, %169, %cst_71 [1] : vector<2x29xf32> to vector<2xf32>
    %175 = vector.shape_cast %174 : vector<2xf32> to vector<2x1xf32>
    %176 = vector.broadcast %175 : vector<2x1xf32> to vector<2x29xf32>
    %177 = arith.cmpf oeq, %169, %176 : vector<2x29xf32>
    %c29_i32_72 = arith.constant 29 : i32
    %178 = vector.broadcast %c29_i32_72 : i32 to vector<2x29xi32>
    %179 = arith.select %177, %173, %178 : vector<2x29xi1>, vector<2x29xi32>
    %cst_73 = arith.constant dense<2147483647> : vector<2xi32>
    %180 = vector.multi_reduction <minsi>, %179, %cst_73 [1] : vector<2x29xi32> to vector<2xi32>
    %181 = vector.shape_cast %180 : vector<2xi32> to vector<2x1xi32>
    %182 = vector.broadcast %181 : vector<2x1xi32> to vector<2x29xi32>
    %183 = arith.cmpi eq, %173, %182 : vector<2x29xi32>
    %184 = arith.extui %183 : vector<2x29xi1> to vector<2x29xi32>
    %185 = arith.sitofp %184 : vector<2x29xi32> to vector<2x29xf32>
    %cst_74 = arith.constant dense<0.000000e+00> : vector<2x16xf32>
    %186 = tpu.matmul %185, %2, %cst_74 {dimension_numbers = #tpu.dot_dimension_numbers<[1], [0], [0], [1], [0, 0, 1, 1], [], []>} : vector<2x29xf32>, vector<29x16xf32>, vector<2x16xf32> -> vector<2x16xf32>
    %c2_75 = arith.constant 2 : index
    %187 = memref.load %arg0[%c2_75] : memref<6xi32, #tpu.memory_space<smem>>
    %188 = arith.sitofp %187 : i32 to f32
    %c2_76 = arith.constant 2 : index
    %c0_77 = arith.constant 0 : index
    %c0_78 = arith.constant 0 : index
    %189 = vector.load %arg1[%c2_76, %c0_77, %c0_78] : memref<6x2x16xf32, #tpu.memory_space<vmem>>, vector<1x2x16xf32>
    %190 = vector.shape_cast %189 : vector<1x2x16xf32> to vector<2x16xf32>
    %191 = vector.broadcast %188 : f32 to vector<2x16xf32>
    %192 = arith.mulf %191, %190 : vector<2x16xf32>
    %cst_79 = arith.constant 1.000000e+00 : f32
    %193 = arith.subf %cst_79, %188 : f32
    %194 = vector.broadcast %193 : f32 to vector<2x16xf32>
    %195 = arith.mulf %194, %186 : vector<2x16xf32>
    %196 = arith.addf %192, %195 : vector<2x16xf32>
    %cst_80 = arith.constant dense<0.000000e+00> : vector<2x96xf32>
    %197 = tpu.matmul %196, %5, %cst_80 {dimension_numbers = #tpu.dot_dimension_numbers<[1], [0], [0], [1], [0, 0, 1, 1], [], []>} : vector<2x16xf32>, vector<16x96xf32>, vector<2x96xf32> -> vector<2x96xf32>
    %198 = vector.broadcast %7 : vector<1x96xf32> to vector<2x96xf32>
    %199 = arith.addf %197, %198 : vector<2x96xf32>
    %cst_81 = arith.constant dense<0.000000e+00> : vector<2x96xf32>
    %200 = tpu.matmul %140, %6, %cst_81 {dimension_numbers = #tpu.dot_dimension_numbers<[1], [0], [0], [1], [0, 0, 1, 1], [], []>} : vector<2x32xf32>, vector<32x96xf32>, vector<2x96xf32> -> vector<2x96xf32>
    %201 = vector.broadcast %8 : vector<1x96xf32> to vector<2x96xf32>
    %202 = arith.addf %200, %201 : vector<2x96xf32>
    %203 = vector.extract_strided_slice %199 {offsets = [0, 0], sizes = [2, 32], strides = [1, 1]} : vector<2x96xf32> to vector<2x32xf32>
    %204 = vector.extract_strided_slice %202 {offsets = [0, 0], sizes = [2, 32], strides = [1, 1]} : vector<2x96xf32> to vector<2x32xf32>
    %205 = arith.addf %203, %204 : vector<2x32xf32>
    %206 = arith.negf %205 : vector<2x32xf32>
    %207 = math.exp %206 : vector<2x32xf32>
    %cst_82 = arith.constant 1.000000e+00 : f32
    %208 = vector.broadcast %cst_82 : f32 to vector<2x32xf32>
    %209 = arith.addf %208, %207 : vector<2x32xf32>
    %210 = arith.divf %208, %209 : vector<2x32xf32>
    %211 = vector.extract_strided_slice %199 {offsets = [0, 32], sizes = [2, 32], strides = [1, 1]} : vector<2x96xf32> to vector<2x32xf32>
    %212 = vector.extract_strided_slice %202 {offsets = [0, 32], sizes = [2, 32], strides = [1, 1]} : vector<2x96xf32> to vector<2x32xf32>
    %213 = arith.addf %211, %212 : vector<2x32xf32>
    %214 = arith.negf %213 : vector<2x32xf32>
    %215 = math.exp %214 : vector<2x32xf32>
    %cst_83 = arith.constant 1.000000e+00 : f32
    %216 = vector.broadcast %cst_83 : f32 to vector<2x32xf32>
    %217 = arith.addf %216, %215 : vector<2x32xf32>
    %218 = arith.divf %216, %217 : vector<2x32xf32>
    %219 = vector.extract_strided_slice %199 {offsets = [0, 64], sizes = [2, 32], strides = [1, 1]} : vector<2x96xf32> to vector<2x32xf32>
    %220 = vector.extract_strided_slice %202 {offsets = [0, 64], sizes = [2, 32], strides = [1, 1]} : vector<2x96xf32> to vector<2x32xf32>
    %221 = arith.mulf %210, %220 : vector<2x32xf32>
    %222 = arith.addf %219, %221 : vector<2x32xf32>
    %223 = math.tanh %222 : vector<2x32xf32>
    %cst_84 = arith.constant 1.000000e+00 : f32
    %224 = vector.broadcast %cst_84 : f32 to vector<2x32xf32>
    %225 = arith.subf %224, %218 : vector<2x32xf32>
    %226 = arith.mulf %225, %223 : vector<2x32xf32>
    %227 = arith.mulf %218, %140 : vector<2x32xf32>
    %228 = arith.addf %226, %227 : vector<2x32xf32>
    %cst_85 = arith.constant dense<0.000000e+00> : vector<2x32xf32>
    %229 = tpu.matmul %228, %9, %cst_85 {dimension_numbers = #tpu.dot_dimension_numbers<[1], [0], [0], [1], [0, 0, 1, 1], [], []>} : vector<2x32xf32>, vector<32x32xf32>, vector<2x32xf32> -> vector<2x32xf32>
    %230 = vector.broadcast %10 : vector<1x32xf32> to vector<2x32xf32>
    %231 = arith.addf %229, %230 : vector<2x32xf32>
    %232 = vector.shape_cast %231 : vector<2x32xf32> to vector<1x2x32xf32>
    %233 = vector.broadcast %232 : vector<1x2x32xf32> to vector<8x2x32xf32>
    %234 = arith.addf %1, %233 : vector<8x2x32xf32>
    %235 = math.tanh %234 : vector<8x2x32xf32>
    %236 = vector.broadcast %4 : vector<1x1x32xf32> to vector<8x2x32xf32>
    %237 = arith.mulf %235, %236 : vector<8x2x32xf32>
    %cst_86 = arith.constant dense<0.000000e+00> : vector<8x2xf32>
    %238 = vector.multi_reduction <add>, %237, %cst_86 [2] : vector<8x2x32xf32> to vector<8x2xf32>
    %239 = vector.shape_cast %238 : vector<8x2xf32> to vector<8x2x1xf32>
    %cst_87 = arith.constant dense<0xFF800000> : vector<2x1xf32>
    %240 = vector.multi_reduction <maximumf>, %239, %cst_87 [0] : vector<8x2x1xf32> to vector<2x1xf32>
    %241 = vector.shape_cast %240 : vector<2x1xf32> to vector<1x2x1xf32>
    %242 = vector.broadcast %241 : vector<1x2x1xf32> to vector<8x2x1xf32>
    %243 = arith.subf %239, %242 : vector<8x2x1xf32>
    %244 = math.exp %243 : vector<8x2x1xf32>
    %cst_88 = arith.constant dense<0.000000e+00> : vector<2x1xf32>
    %245 = vector.multi_reduction <add>, %244, %cst_88 [0] : vector<8x2x1xf32> to vector<2x1xf32>
    %246 = vector.shape_cast %245 : vector<2x1xf32> to vector<1x2x1xf32>
    %247 = tpu.reciprocal %246 {approx = true} : vector<1x2x1xf32> -> vector<1x2x1xf32>
    %248 = vector.broadcast %247 : vector<1x2x1xf32> to vector<8x2x1xf32>
    %249 = arith.mulf %244, %248 : vector<8x2x1xf32>
    %250 = vector.broadcast %249 : vector<8x2x1xf32> to vector<8x2x64xf32>
    %251 = arith.mulf %250, %0 : vector<8x2x64xf32>
    %cst_89 = arith.constant dense<0.000000e+00> : vector<2x64xf32>
    %252 = vector.multi_reduction <add>, %251, %cst_89 [0] : vector<8x2x64xf32> to vector<2x64xf32>
    %cst_90 = arith.constant dense<0.000000e+00> : vector<2x29xf32>
    %253 = tpu.matmul %252, %11, %cst_90 {dimension_numbers = #tpu.dot_dimension_numbers<[1], [0], [0], [1], [0, 0, 1, 1], [], []>} : vector<2x64xf32>, vector<64x29xf32>, vector<2x29xf32> -> vector<2x29xf32>
    %cst_91 = arith.constant dense<0.000000e+00> : vector<2x29xf32>
    %254 = tpu.matmul %228, %12, %cst_91 {dimension_numbers = #tpu.dot_dimension_numbers<[1], [0], [0], [1], [0, 0, 1, 1], [], []>} : vector<2x32xf32>, vector<32x29xf32>, vector<2x29xf32> -> vector<2x29xf32>
    %255 = arith.addf %253, %254 : vector<2x29xf32>
    %256 = vector.broadcast %13 : vector<1x29xf32> to vector<2x29xf32>
    %257 = arith.addf %255, %256 : vector<2x29xf32>
    %c3 = arith.constant 3 : index
    %c0_92 = arith.constant 0 : index
    %c0_93 = arith.constant 0 : index
    %258 = vector.load %arg18[%c3, %c0_92, %c0_93] : memref<6x2x29xf32, #tpu.memory_space<vmem>>, vector<1x2x29xf32>
    %259 = vector.shape_cast %258 : vector<1x2x29xf32> to vector<2x29xf32>
    %260 = vector.shape_cast %257 : vector<2x29xf32> to vector<1x2x29xf32>
    tpu.vector_store %arg18[%c3, %c0_92, %c0_93], %260 {strides = array<i32>} : memref<6x2x29xf32, #tpu.memory_space<vmem>>, vector<1x2x29xf32>,
    %261 = tpu.iota {dimensions = array<i32: 1>} : vector<2x29xi32>
    %cst_94 = arith.constant dense<0xFF800000> : vector<2xf32>
    %262 = vector.multi_reduction <maximumf>, %257, %cst_94 [1] : vector<2x29xf32> to vector<2xf32>
    %263 = vector.shape_cast %262 : vector<2xf32> to vector<2x1xf32>
    %264 = vector.broadcast %263 : vector<2x1xf32> to vector<2x29xf32>
    %265 = arith.cmpf oeq, %257, %264 : vector<2x29xf32>
    %c29_i32_95 = arith.constant 29 : i32
    %266 = vector.broadcast %c29_i32_95 : i32 to vector<2x29xi32>
    %267 = arith.select %265, %261, %266 : vector<2x29xi1>, vector<2x29xi32>
    %cst_96 = arith.constant dense<2147483647> : vector<2xi32>
    %268 = vector.multi_reduction <minsi>, %267, %cst_96 [1] : vector<2x29xi32> to vector<2xi32>
    %269 = vector.shape_cast %268 : vector<2xi32> to vector<2x1xi32>
    %270 = vector.broadcast %269 : vector<2x1xi32> to vector<2x29xi32>
    %271 = arith.cmpi eq, %261, %270 : vector<2x29xi32>
    %272 = arith.extui %271 : vector<2x29xi1> to vector<2x29xi32>
    %273 = arith.sitofp %272 : vector<2x29xi32> to vector<2x29xf32>
    %cst_97 = arith.constant dense<0.000000e+00> : vector<2x16xf32>
    %274 = tpu.matmul %273, %2, %cst_97 {dimension_numbers = #tpu.dot_dimension_numbers<[1], [0], [0], [1], [0, 0, 1, 1], [], []>} : vector<2x29xf32>, vector<29x16xf32>, vector<2x16xf32> -> vector<2x16xf32>
    %c3_98 = arith.constant 3 : index
    %275 = memref.load %arg0[%c3_98] : memref<6xi32, #tpu.memory_space<smem>>
    %276 = arith.sitofp %275 : i32 to f32
    %c3_99 = arith.constant 3 : index
    %c0_100 = arith.constant 0 : index
    %c0_101 = arith.constant 0 : index
    %277 = vector.load %arg1[%c3_99, %c0_100, %c0_101] : memref<6x2x16xf32, #tpu.memory_space<vmem>>, vector<1x2x16xf32>
    %278 = vector.shape_cast %277 : vector<1x2x16xf32> to vector<2x16xf32>
    %279 = vector.broadcast %276 : f32 to vector<2x16xf32>
    %280 = arith.mulf %279, %278 : vector<2x16xf32>
    %cst_102 = arith.constant 1.000000e+00 : f32
    %281 = arith.subf %cst_102, %276 : f32
    %282 = vector.broadcast %281 : f32 to vector<2x16xf32>
    %283 = arith.mulf %282, %274 : vector<2x16xf32>
    %284 = arith.addf %280, %283 : vector<2x16xf32>
    %cst_103 = arith.constant dense<0.000000e+00> : vector<2x96xf32>
    %285 = tpu.matmul %284, %5, %cst_103 {dimension_numbers = #tpu.dot_dimension_numbers<[1], [0], [0], [1], [0, 0, 1, 1], [], []>} : vector<2x16xf32>, vector<16x96xf32>, vector<2x96xf32> -> vector<2x96xf32>
    %286 = vector.broadcast %7 : vector<1x96xf32> to vector<2x96xf32>
    %287 = arith.addf %285, %286 : vector<2x96xf32>
    %cst_104 = arith.constant dense<0.000000e+00> : vector<2x96xf32>
    %288 = tpu.matmul %228, %6, %cst_104 {dimension_numbers = #tpu.dot_dimension_numbers<[1], [0], [0], [1], [0, 0, 1, 1], [], []>} : vector<2x32xf32>, vector<32x96xf32>, vector<2x96xf32> -> vector<2x96xf32>
    %289 = vector.broadcast %8 : vector<1x96xf32> to vector<2x96xf32>
    %290 = arith.addf %288, %289 : vector<2x96xf32>
    %291 = vector.extract_strided_slice %287 {offsets = [0, 0], sizes = [2, 32], strides = [1, 1]} : vector<2x96xf32> to vector<2x32xf32>
    %292 = vector.extract_strided_slice %290 {offsets = [0, 0], sizes = [2, 32], strides = [1, 1]} : vector<2x96xf32> to vector<2x32xf32>
    %293 = arith.addf %291, %292 : vector<2x32xf32>
    %294 = arith.negf %293 : vector<2x32xf32>
    %295 = math.exp %294 : vector<2x32xf32>
    %cst_105 = arith.constant 1.000000e+00 : f32
    %296 = vector.broadcast %cst_105 : f32 to vector<2x32xf32>
    %297 = arith.addf %296, %295 : vector<2x32xf32>
    %298 = arith.divf %296, %297 : vector<2x32xf32>
    %299 = vector.extract_strided_slice %287 {offsets = [0, 32], sizes = [2, 32], strides = [1, 1]} : vector<2x96xf32> to vector<2x32xf32>
    %300 = vector.extract_strided_slice %290 {offsets = [0, 32], sizes = [2, 32], strides = [1, 1]} : vector<2x96xf32> to vector<2x32xf32>
    %301 = arith.addf %299, %300 : vector<2x32xf32>
    %302 = arith.negf %301 : vector<2x32xf32>
    %303 = math.exp %302 : vector<2x32xf32>
    %cst_106 = arith.constant 1.000000e+00 : f32
    %304 = vector.broadcast %cst_106 : f32 to vector<2x32xf32>
    %305 = arith.addf %304, %303 : vector<2x32xf32>
    %306 = arith.divf %304, %305 : vector<2x32xf32>
    %307 = vector.extract_strided_slice %287 {offsets = [0, 64], sizes = [2, 32], strides = [1, 1]} : vector<2x96xf32> to vector<2x32xf32>
    %308 = vector.extract_strided_slice %290 {offsets = [0, 64], sizes = [2, 32], strides = [1, 1]} : vector<2x96xf32> to vector<2x32xf32>
    %309 = arith.mulf %298, %308 : vector<2x32xf32>
    %310 = arith.addf %307, %309 : vector<2x32xf32>
    %311 = math.tanh %310 : vector<2x32xf32>
    %cst_107 = arith.constant 1.000000e+00 : f32
    %312 = vector.broadcast %cst_107 : f32 to vector<2x32xf32>
    %313 = arith.subf %312, %306 : vector<2x32xf32>
    %314 = arith.mulf %313, %311 : vector<2x32xf32>
    %315 = arith.mulf %306, %228 : vector<2x32xf32>
    %316 = arith.addf %314, %315 : vector<2x32xf32>
    %cst_108 = arith.constant dense<0.000000e+00> : vector<2x32xf32>
    %317 = tpu.matmul %316, %9, %cst_108 {dimension_numbers = #tpu.dot_dimension_numbers<[1], [0], [0], [1], [0, 0, 1, 1], [], []>} : vector<2x32xf32>, vector<32x32xf32>, vector<2x32xf32> -> vector<2x32xf32>
    %318 = vector.broadcast %10 : vector<1x32xf32> to vector<2x32xf32>
    %319 = arith.addf %317, %318 : vector<2x32xf32>
    %320 = vector.shape_cast %319 : vector<2x32xf32> to vector<1x2x32xf32>
    %321 = vector.broadcast %320 : vector<1x2x32xf32> to vector<8x2x32xf32>
    %322 = arith.addf %1, %321 : vector<8x2x32xf32>
    %323 = math.tanh %322 : vector<8x2x32xf32>
    %324 = vector.broadcast %4 : vector<1x1x32xf32> to vector<8x2x32xf32>
    %325 = arith.mulf %323, %324 : vector<8x2x32xf32>
    %cst_109 = arith.constant dense<0.000000e+00> : vector<8x2xf32>
    %326 = vector.multi_reduction <add>, %325, %cst_109 [2] : vector<8x2x32xf32> to vector<8x2xf32>
    %327 = vector.shape_cast %326 : vector<8x2xf32> to vector<8x2x1xf32>
    %cst_110 = arith.constant dense<0xFF800000> : vector<2x1xf32>
    %328 = vector.multi_reduction <maximumf>, %327, %cst_110 [0] : vector<8x2x1xf32> to vector<2x1xf32>
    %329 = vector.shape_cast %328 : vector<2x1xf32> to vector<1x2x1xf32>
    %330 = vector.broadcast %329 : vector<1x2x1xf32> to vector<8x2x1xf32>
    %331 = arith.subf %327, %330 : vector<8x2x1xf32>
    %332 = math.exp %331 : vector<8x2x1xf32>
    %cst_111 = arith.constant dense<0.000000e+00> : vector<2x1xf32>
    %333 = vector.multi_reduction <add>, %332, %cst_111 [0] : vector<8x2x1xf32> to vector<2x1xf32>
    %334 = vector.shape_cast %333 : vector<2x1xf32> to vector<1x2x1xf32>
    %335 = tpu.reciprocal %334 {approx = true} : vector<1x2x1xf32> -> vector<1x2x1xf32>
    %336 = vector.broadcast %335 : vector<1x2x1xf32> to vector<8x2x1xf32>
    %337 = arith.mulf %332, %336 : vector<8x2x1xf32>
    %338 = vector.broadcast %337 : vector<8x2x1xf32> to vector<8x2x64xf32>
    %339 = arith.mulf %338, %0 : vector<8x2x64xf32>
    %cst_112 = arith.constant dense<0.000000e+00> : vector<2x64xf32>
    %340 = vector.multi_reduction <add>, %339, %cst_112 [0] : vector<8x2x64xf32> to vector<2x64xf32>
    %cst_113 = arith.constant dense<0.000000e+00> : vector<2x29xf32>
    %341 = tpu.matmul %340, %11, %cst_113 {dimension_numbers = #tpu.dot_dimension_numbers<[1], [0], [0], [1], [0, 0, 1, 1], [], []>} : vector<2x64xf32>, vector<64x29xf32>, vector<2x29xf32> -> vector<2x29xf32>
    %cst_114 = arith.constant dense<0.000000e+00> : vector<2x29xf32>
    %342 = tpu.matmul %316, %12, %cst_114 {dimension_numbers = #tpu.dot_dimension_numbers<[1], [0], [0], [1], [0, 0, 1, 1], [], []>} : vector<2x32xf32>, vector<32x29xf32>, vector<2x29xf32> -> vector<2x29xf32>
    %343 = arith.addf %341, %342 : vector<2x29xf32>
    %344 = vector.broadcast %13 : vector<1x29xf32> to vector<2x29xf32>
    %345 = arith.addf %343, %344 : vector<2x29xf32>
    %c4 = arith.constant 4 : index
    %c0_115 = arith.constant 0 : index
    %c0_116 = arith.constant 0 : index
    %346 = vector.load %arg18[%c4, %c0_115, %c0_116] : memref<6x2x29xf32, #tpu.memory_space<vmem>>, vector<1x2x29xf32>
    %347 = vector.shape_cast %346 : vector<1x2x29xf32> to vector<2x29xf32>
    %348 = vector.shape_cast %345 : vector<2x29xf32> to vector<1x2x29xf32>
    tpu.vector_store %arg18[%c4, %c0_115, %c0_116], %348 {strides = array<i32>} : memref<6x2x29xf32, #tpu.memory_space<vmem>>, vector<1x2x29xf32>,
    %349 = tpu.iota {dimensions = array<i32: 1>} : vector<2x29xi32>
    %cst_117 = arith.constant dense<0xFF800000> : vector<2xf32>
    %350 = vector.multi_reduction <maximumf>, %345, %cst_117 [1] : vector<2x29xf32> to vector<2xf32>
    %351 = vector.shape_cast %350 : vector<2xf32> to vector<2x1xf32>
    %352 = vector.broadcast %351 : vector<2x1xf32> to vector<2x29xf32>
    %353 = arith.cmpf oeq, %345, %352 : vector<2x29xf32>
    %c29_i32_118 = arith.constant 29 : i32
    %354 = vector.broadcast %c29_i32_118 : i32 to vector<2x29xi32>
    %355 = arith.select %353, %349, %354 : vector<2x29xi1>, vector<2x29xi32>
    %cst_119 = arith.constant dense<2147483647> : vector<2xi32>
    %356 = vector.multi_reduction <minsi>, %355, %cst_119 [1] : vector<2x29xi32> to vector<2xi32>
    %357 = vector.shape_cast %356 : vector<2xi32> to vector<2x1xi32>
    %358 = vector.broadcast %357 : vector<2x1xi32> to vector<2x29xi32>
    %359 = arith.cmpi eq, %349, %358 : vector<2x29xi32>
    %360 = arith.extui %359 : vector<2x29xi1> to vector<2x29xi32>
    %361 = arith.sitofp %360 : vector<2x29xi32> to vector<2x29xf32>
    %cst_120 = arith.constant dense<0.000000e+00> : vector<2x16xf32>
    %362 = tpu.matmul %361, %2, %cst_120 {dimension_numbers = #tpu.dot_dimension_numbers<[1], [0], [0], [1], [0, 0, 1, 1], [], []>} : vector<2x29xf32>, vector<29x16xf32>, vector<2x16xf32> -> vector<2x16xf32>
    %c4_121 = arith.constant 4 : index
    %363 = memref.load %arg0[%c4_121] : memref<6xi32, #tpu.memory_space<smem>>
    %364 = arith.sitofp %363 : i32 to f32
    %c4_122 = arith.constant 4 : index
    %c0_123 = arith.constant 0 : index
    %c0_124 = arith.constant 0 : index
    %365 = vector.load %arg1[%c4_122, %c0_123, %c0_124] : memref<6x2x16xf32, #tpu.memory_space<vmem>>, vector<1x2x16xf32>
    %366 = vector.shape_cast %365 : vector<1x2x16xf32> to vector<2x16xf32>
    %367 = vector.broadcast %364 : f32 to vector<2x16xf32>
    %368 = arith.mulf %367, %366 : vector<2x16xf32>
    %cst_125 = arith.constant 1.000000e+00 : f32
    %369 = arith.subf %cst_125, %364 : f32
    %370 = vector.broadcast %369 : f32 to vector<2x16xf32>
    %371 = arith.mulf %370, %362 : vector<2x16xf32>
    %372 = arith.addf %368, %371 : vector<2x16xf32>
    %cst_126 = arith.constant dense<0.000000e+00> : vector<2x96xf32>
    %373 = tpu.matmul %372, %5, %cst_126 {dimension_numbers = #tpu.dot_dimension_numbers<[1], [0], [0], [1], [0, 0, 1, 1], [], []>} : vector<2x16xf32>, vector<16x96xf32>, vector<2x96xf32> -> vector<2x96xf32>
    %374 = vector.broadcast %7 : vector<1x96xf32> to vector<2x96xf32>
    %375 = arith.addf %373, %374 : vector<2x96xf32>
    %cst_127 = arith.constant dense<0.000000e+00> : vector<2x96xf32>
    %376 = tpu.matmul %316, %6, %cst_127 {dimension_numbers = #tpu.dot_dimension_numbers<[1], [0], [0], [1], [0, 0, 1, 1], [], []>} : vector<2x32xf32>, vector<32x96xf32>, vector<2x96xf32> -> vector<2x96xf32>
    %377 = vector.broadcast %8 : vector<1x96xf32> to vector<2x96xf32>
    %378 = arith.addf %376, %377 : vector<2x96xf32>
    %379 = vector.extract_strided_slice %375 {offsets = [0, 0], sizes = [2, 32], strides = [1, 1]} : vector<2x96xf32> to vector<2x32xf32>
    %380 = vector.extract_strided_slice %378 {offsets = [0, 0], sizes = [2, 32], strides = [1, 1]} : vector<2x96xf32> to vector<2x32xf32>
    %381 = arith.addf %379, %380 : vector<2x32xf32>
    %382 = arith.negf %381 : vector<2x32xf32>
    %383 = math.exp %382 : vector<2x32xf32>
    %cst_128 = arith.constant 1.000000e+00 : f32
    %384 = vector.broadcast %cst_128 : f32 to vector<2x32xf32>
    %385 = arith.addf %384, %383 : vector<2x32xf32>
    %386 = arith.divf %384, %385 : vector<2x32xf32>
    %387 = vector.extract_strided_slice %375 {offsets = [0, 32], sizes = [2, 32], strides = [1, 1]} : vector<2x96xf32> to vector<2x32xf32>
    %388 = vector.extract_strided_slice %378 {offsets = [0, 32], sizes = [2, 32], strides = [1, 1]} : vector<2x96xf32> to vector<2x32xf32>
    %389 = arith.addf %387, %388 : vector<2x32xf32>
    %390 = arith.negf %389 : vector<2x32xf32>
    %391 = math.exp %390 : vector<2x32xf32>
    %cst_129 = arith.constant 1.000000e+00 : f32
    %392 = vector.broadcast %cst_129 : f32 to vector<2x32xf32>
    %393 = arith.addf %392, %391 : vector<2x32xf32>
    %394 = arith.divf %392, %393 : vector<2x32xf32>
    %395 = vector.extract_strided_slice %375 {offsets = [0, 64], sizes = [2, 32], strides = [1, 1]} : vector<2x96xf32> to vector<2x32xf32>
    %396 = vector.extract_strided_slice %378 {offsets = [0, 64], sizes = [2, 32], strides = [1, 1]} : vector<2x96xf32> to vector<2x32xf32>
    %397 = arith.mulf %386, %396 : vector<2x32xf32>
    %398 = arith.addf %395, %397 : vector<2x32xf32>
    %399 = math.tanh %398 : vector<2x32xf32>
    %cst_130 = arith.constant 1.000000e+00 : f32
    %400 = vector.broadcast %cst_130 : f32 to vector<2x32xf32>
    %401 = arith.subf %400, %394 : vector<2x32xf32>
    %402 = arith.mulf %401, %399 : vector<2x32xf32>
    %403 = arith.mulf %394, %316 : vector<2x32xf32>
    %404 = arith.addf %402, %403 : vector<2x32xf32>
    %cst_131 = arith.constant dense<0.000000e+00> : vector<2x32xf32>
    %405 = tpu.matmul %404, %9, %cst_131 {dimension_numbers = #tpu.dot_dimension_numbers<[1], [0], [0], [1], [0, 0, 1, 1], [], []>} : vector<2x32xf32>, vector<32x32xf32>, vector<2x32xf32> -> vector<2x32xf32>
    %406 = vector.broadcast %10 : vector<1x32xf32> to vector<2x32xf32>
    %407 = arith.addf %405, %406 : vector<2x32xf32>
    %408 = vector.shape_cast %407 : vector<2x32xf32> to vector<1x2x32xf32>
    %409 = vector.broadcast %408 : vector<1x2x32xf32> to vector<8x2x32xf32>
    %410 = arith.addf %1, %409 : vector<8x2x32xf32>
    %411 = math.tanh %410 : vector<8x2x32xf32>
    %412 = vector.broadcast %4 : vector<1x1x32xf32> to vector<8x2x32xf32>
    %413 = arith.mulf %411, %412 : vector<8x2x32xf32>
    %cst_132 = arith.constant dense<0.000000e+00> : vector<8x2xf32>
    %414 = vector.multi_reduction <add>, %413, %cst_132 [2] : vector<8x2x32xf32> to vector<8x2xf32>
    %415 = vector.shape_cast %414 : vector<8x2xf32> to vector<8x2x1xf32>
    %cst_133 = arith.constant dense<0xFF800000> : vector<2x1xf32>
    %416 = vector.multi_reduction <maximumf>, %415, %cst_133 [0] : vector<8x2x1xf32> to vector<2x1xf32>
    %417 = vector.shape_cast %416 : vector<2x1xf32> to vector<1x2x1xf32>
    %418 = vector.broadcast %417 : vector<1x2x1xf32> to vector<8x2x1xf32>
    %419 = arith.subf %415, %418 : vector<8x2x1xf32>
    %420 = math.exp %419 : vector<8x2x1xf32>
    %cst_134 = arith.constant dense<0.000000e+00> : vector<2x1xf32>
    %421 = vector.multi_reduction <add>, %420, %cst_134 [0] : vector<8x2x1xf32> to vector<2x1xf32>
    %422 = vector.shape_cast %421 : vector<2x1xf32> to vector<1x2x1xf32>
    %423 = tpu.reciprocal %422 {approx = true} : vector<1x2x1xf32> -> vector<1x2x1xf32>
    %424 = vector.broadcast %423 : vector<1x2x1xf32> to vector<8x2x1xf32>
    %425 = arith.mulf %420, %424 : vector<8x2x1xf32>
    %426 = vector.broadcast %425 : vector<8x2x1xf32> to vector<8x2x64xf32>
    %427 = arith.mulf %426, %0 : vector<8x2x64xf32>
    %cst_135 = arith.constant dense<0.000000e+00> : vector<2x64xf32>
    %428 = vector.multi_reduction <add>, %427, %cst_135 [0] : vector<8x2x64xf32> to vector<2x64xf32>
    %cst_136 = arith.constant dense<0.000000e+00> : vector<2x29xf32>
    %429 = tpu.matmul %428, %11, %cst_136 {dimension_numbers = #tpu.dot_dimension_numbers<[1], [0], [0], [1], [0, 0, 1, 1], [], []>} : vector<2x64xf32>, vector<64x29xf32>, vector<2x29xf32> -> vector<2x29xf32>
    %cst_137 = arith.constant dense<0.000000e+00> : vector<2x29xf32>
    %430 = tpu.matmul %404, %12, %cst_137 {dimension_numbers = #tpu.dot_dimension_numbers<[1], [0], [0], [1], [0, 0, 1, 1], [], []>} : vector<2x32xf32>, vector<32x29xf32>, vector<2x29xf32> -> vector<2x29xf32>
    %431 = arith.addf %429, %430 : vector<2x29xf32>
    %432 = vector.broadcast %13 : vector<1x29xf32> to vector<2x29xf32>
    %433 = arith.addf %431, %432 : vector<2x29xf32>
    %c5 = arith.constant 5 : index
    %c0_138 = arith.constant 0 : index
    %c0_139 = arith.constant 0 : index
    %434 = vector.load %arg18[%c5, %c0_138, %c0_139] : memref<6x2x29xf32, #tpu.memory_space<vmem>>, vector<1x2x29xf32>
    %435 = vector.shape_cast %434 : vector<1x2x29xf32> to vector<2x29xf32>
    %436 = vector.shape_cast %433 : vector<2x29xf32> to vector<1x2x29xf32>
    tpu.vector_store %arg18[%c5, %c0_138, %c0_139], %436 {strides = array<i32>} : memref<6x2x29xf32, #tpu.memory_space<vmem>>, vector<1x2x29xf32>,
    return
  }
}

</mosaic_0001>

<bundles_post_ra>
// kernel: seq2seq_forward.2
= control target key start
LH: loop header
LB: loop body
LE: loop exit
PB: predicated region body
PF: predicated region fallthrough
CT: control target
= control target key end

     0   :  { %v1322_v8 = vmov 0.0   ;;  %s1323_s21 = smov 64   ;;  %s1324_s28 = smov 96   ;;  %vm171_vm8 = vcmask 254976   ;;  %vm40_vm9 = vcmask 261120   ;;  %s1761_s2 = inlined_call_operand.vmem [shape: f32[32,96], index: 2, kind: input, shape index: {}]   ;;  %s1762_s4 = inlined_call_operand.vmem [shape: f32[32,96], index: 4, kind: input, shape index: {}]   ;;  %s1763_s3 = inlined_call_operand.vmem [shape: f32[1,96], index: 3, kind: input, shape index: {}]   ;;  %s1764_s5 = inlined_call_operand.vmem [shape: f32[1,96], index: 5, kind: input, shape index: {}]   ;;  %s1765_s0 = inlined_call_operand.vmem [shape: f32[8,2,96], index: 0, kind: input, shape index: {}]   ;;  %s1766_s1 = inlined_call_operand.vmem [shape: f32[8,2,96], index: 1, kind: input, shape index: {}]   ;;  %s1767_s6 = inlined_call_operand.vmem [shape: f32[8,2,32], index: 6, kind: output, shape index: {0}]   ;;  %s1768_s7 = inlined_call_operand.vmem [shape: f32[8,2,32], index: 7, kind: output, shape index: {1}]   ;;  %s1769_s8 = inlined_call_operand.vmem [shape: f32[2,32], index: 8, kind: output, shape index: {2}]  }
   0x1   :  { %v1373_v0 = vld [vmem:[%s1761_s2 + $0x18] sm:$0xff]  ;;  %v1383_v2 = vld [vmem:[%s1761_s2 + $0x10] sm:$0xff]  ;;  %v1395_v4 = vld [vmem:[%s1761_s2 + $0x8] sm:$0xff] }
   0x2   :  { %v1378_v1 = vld [vmem:[%s1762_s4 + $0x18] sm:$0xff]  ;;  %56 = vmatpush.msra.mxu0 %v1373_v0  ;;  %v1390_v3 = vld [vmem:[%s1762_s4 + $0x10] sm:$0xff]  ;;  %v1400_v5 = vld [vmem:[%s1762_s4 + $0x8] sm:$0xff]  ;;  %195 = vmatpush.msra.mxu2 %v1373_v0 }
   0x3   :  { %120 = vmatpush.msra.mxu1 %v1378_v1  ;;  %258 = vmatpush.msra.mxu3 %v1378_v1  ;;  %v1409_v6 = vld [vmem:[%s1761_s2] sm:$0xff]  ;;  %v1162_v18 = vld [vmem:[%s1766_s1 + $0xe] sm:$0x3] }
   0x4   :  { %57 = vmatpush.msra.mxu0 %v1383_v2  ;;  %v1414_v7 = vld [vmem:[%s1762_s4] sm:$0xff]  ;;  %196 = vmatpush.msra.mxu2 %v1383_v2 }
   0x5   :  { %121 = vmatpush.msra.mxu1 %v1390_v3  ;;  %259 = vmatpush.msra.mxu3 %v1390_v3  ;;  %v1453_v9 = vld [vmem:[%s1763_s3] ss:$0 sm:$0xff] }
   0x6   :  { %58 = vmatpush.msra.mxu0 %v1395_v4  ;;  %197 = vmatpush.msra.mxu2 %v1395_v4  ;;  %v1460_v12 = vld [vmem:[%s1764_s5] ss:$0 sm:$0xff] }
   0x7   :  { %122 = vmatpush.msra.mxu1 %v1400_v5  ;;  %260 = vmatpush.msra.mxu3 %v1400_v5  ;;  %v36_v15 = vld [vmem:[%s1765_s0] sm:$0x3] }
   0x8   :  { %59 = vmatpush.msra.mxu0 %v1409_v6  ;;  %198 = vmatpush.msra.mxu2 %v1409_v6 }
   0x9   :  { %123 = vmatpush.msra.mxu1 %v1414_v7  ;;  %60 = vmatmul.f32.vlgmr.msra.gmra.mxu0 %v1322_v8 }
   0xa   :  { %124 = vmatmul.f32.vlgmr.msra.gmra.mxu1 %v1322_v8  ;;  %261 = vmatpush.msra.mxu3 %v1414_v7 }
   0xb   :  { %333 = vmatpush.msrb.mxu0 %v1373_v0  ;;  %396 = vmatpush.msrb.mxu1 %v1378_v1 }
   0xc   :  { %471 = vmatpush.msrb.mxu2 %v1373_v0  ;;  %534 = vmatpush.msrb.mxu3 %v1378_v1 }
   0xd   :  { %334 = vmatpush.msrb.mxu0 %v1383_v2  ;;  %397 = vmatpush.msrb.mxu1 %v1390_v3 }
   0xe   :  { %472 = vmatpush.msrb.mxu2 %v1383_v2  ;;  %535 = vmatpush.msrb.mxu3 %v1390_v3 }
   0xf   :  { %335 = vmatpush.msrb.mxu0 %v1395_v4  ;;  %398 = vmatpush.msrb.mxu1 %v1400_v5 }
  0x10   :  { %473 = vmatpush.msrb.mxu2 %v1395_v4  ;;  %536 = vmatpush.msrb.mxu3 %v1400_v5 }
  0x11   :  { %336 = vmatpush.msrb.mxu0 %v1409_v6  ;;  %399 = vmatpush.msrb.mxu1 %v1414_v7 }
  0x12   :  { %474 = vmatpush.msrb.mxu2 %v1409_v6  ;;  %537 = vmatpush.msrb.mxu3 %v1414_v7 }
  0x13   :  { %609 = vmatpush.msra.mxu0 %v1373_v0  ;;  %672 = vmatpush.msra.mxu1 %v1378_v1 }
  0x15   :  { %610 = vmatpush.msra.mxu0 %v1383_v2  ;;  %673 = vmatpush.msra.mxu1 %v1390_v3 }
  0x17   :  { %611 = vmatpush.msra.mxu0 %v1395_v4  ;;  %674 = vmatpush.msra.mxu1 %v1400_v5 }
  0x19   :  { %612 = vmatpush.msra.mxu0 %v1409_v6  ;;  %675 = vmatpush.msra.mxu1 %v1414_v7 }
  0x86   :  { %v61_v10 = vpop.f32.mrf.mxu0 }
  0x87   :  { %v62_v11 = vadd.f32 %v1453_v9, %v61_v10  ;;  %v125_v13 = vpop.f32.mrf.mxu1 }
  0x88   :  { %v126_v14 = vadd.f32 %v1460_v12, %v125_v13 }
  0x89   :  { %85 = vrot.lane.b32.xlu0 %v62_v11, %s1323_s21  ;;  %v64_v16 = vadd.f32 %v62_v11, %v36_v15 }
  0x8a   :  { %v128_v19 = vadd.f32 %v1162_v18, %v126_v14 }
  0x8b   :  { %v1161_v17 = vmul.f32 -1.442695, %v64_v16 }
  0x8c   :  { %v1163_v20 = vmul.f32 -1.442695, %v128_v19 }
  0x8d   :  { %1224 = vpow2.f32 %v1161_v17  ;;  %v1165_v17 = vld [vmem:[%s1765_s0 + $0x2] sm:$0x3] }
  0x8e   :  { %1226 = vpow2.f32 %v1163_v20 }
  0x91   :  { %149 = vrot.lane.b32.xlu0 %v126_v14, %s1323_s21 }
  0x93   :  { %v1225_v21 = vpop.eup %1224 }
  0x94   :  { %v68_v22 = vadd.f32 1.0, %v1225_v21  ;;  %v1227_v23 = vpop.eup %1226 }
  0x95   :  { %v132_v24 = vadd.f32 1.0, %v1227_v23  ;;  %v1168_v23 = vld [vmem:[%s1766_s1 + $0xc] sm:$0x3] }
  0x96   :  { %1228 = vrcp.f32 %v68_v22  ;;  %v80_v33 = vand.u32 2147483648, %v68_v22  ;;  %vm74_vm1 = vweird.f32 %v68_v22  ;;  %v78_v34 = vand.u32 2147483647, %v68_v22 }
  0x97   :  { %1230 = vrcp.f32 %v132_v24  ;;  %vm138_vm4 = vweird.f32 %v132_v24  ;;  %v144_v42 = vand.u32 2147483648, %v132_v24  ;;  %v142_v43 = vand.u32 2147483647, %v132_v24 }
  0x98   :  { %v81_v37 = vor.u32 1.1754944e-38, %v80_v33  ;;  %vm79_vm3 = vcmp.eq.f32.partialorder %v78_v34, 8.507059e+37 }
  0x99   :  { %v145_v45 = vor.u32 1.1754944e-38, %v144_v42  ;;  %vm143_vm7 = vcmp.eq.f32.partialorder %v142_v43, 8.507059e+37 }
  0x9c   :  { %v1229_v25 = vpop.eup %1228 }
  0x9d   :  { %v70_v26 = vmul.f32 %v1229_v25, %v68_v22  ;;  %v1231_v28 = vpop.eup %1230  ;;  %vm75_vm0 = vweird.f32 %v1229_v25 }
  0x9e   :  { %v134_v30 = vmul.f32 %v1231_v28, %v132_v24  ;;  %vm76_vm2 = vmor %vm74_vm1, %vm75_vm0  ;;  %vm139_vm5 = vweird.f32 %v1231_v28 }
  0x9f   :  { %v71_v27 = vsub.f32 1.0, %v70_v26  ;;  %vm140_vm6 = vmor %vm138_vm4, %vm139_vm5 }
  0xa0   :  { %v135_v32 = vsub.f32 1.0, %v134_v30 }
  0xa1   :  { %v72_v29 = vmul.f32 %v1229_v25, %v71_v27 }
  0xa2   :  { %v136_v36 = vmul.f32 %v1231_v28, %v135_v32 }
  0xa3   :  { %v73_v31 = vadd.f32 %v1229_v25, %v72_v29 }
  0xa4   :  { %v137_v41 = vadd.f32 %v1231_v28, %v136_v36 }
  0xa5   :  { %v77_v35 = vsel %vm76_vm2, %v1229_v25, %v73_v31 }
  0xa6   :  { %v82_v39 = vsel %vm79_vm3, %v81_v37, %v77_v35  ;;  %v141_v44 = vsel %vm140_vm6, %v1231_v28, %v137_v41 }
  0xa7   :  { %v146_v47 = vsel %vm143_vm7, %v145_v45, %v141_v44  ;;  %v95_v55 = vsub.f32 1.0, %v82_v39  ;;  %v101_v57 = vmul.f32 0.0, %v82_v39 }
  0xa8   :  { %v159_v60 = vsub.f32 1.0, %v146_v47  ;;  %v165_v62 = vmul.f32 0.0, %v146_v47 }
  0xfb   :  { %v86_v38 = vpop.permute.xlu0 %85 }
  0xfc   :  { %v88_v40 = vmul.f32 %v86_v38, %v82_v39 }
  0xfe   :  { %90 = vrot.lane.b32.xlu1 %v88_v40, %s1323_s21 }
 0x103   :  { %v150_v46 = vpop.permute.xlu0 %149 }
 0x104   :  { %v152_v48 = vmul.f32 %v150_v46, %v146_v47 }
 0x106   :  { %154 = vrot.lane.b32.xlu1 %v152_v48, %s1323_s21 }
 0x170   :  { %v91_v49 = vpop.permute.xlu1 %90 }
 0x171   :  { %v93_v50 = vadd.f32 %v91_v49, %v36_v15 }
 0x173   :  { %1232 = vtanh.f32 %v93_v50 }
 0x178   :  { %v155_v51 = vpop.permute.xlu1 %154 }
 0x179   :  { %v1233_v52 = vpop.eup %1232  ;;  %v157_v53 = vadd.f32 %v1162_v18, %v155_v51 }
 0x17a   :  { %97 = vrot.lane.b32.xlu2 %v1233_v52, %s1324_s28 }
 0x17b   :  { %1234 = vtanh.f32 %v157_v53 }
 0x181   :  { %v1235_v54 = vpop.eup %1234 }
 0x182   :  { %161 = vrot.lane.b32.xlu2 %v1235_v54, %s1324_s28 }
 0x1d4   :  { %v98_v56 = vpop.permute.xlu2 %97 }
 0x1d5   :  { %v100_v58 = vmul.f32 %v98_v56, %v95_v55 }
 0x1d7   :  { %v1474_v59 = vadd.f32 %v101_v57, %v100_v58 }
 0x1d9   :  { %168 = vrot.lane.b32.xlu0 %v1474_v59, %s1324_s28 }
 0x1dc   :  { %v162_v61 = vpop.permute.xlu2 %161 }
 0x1dd   :  { %v164_v63 = vmul.f32 %v162_v61, %v159_v60 }
 0x1df   :  { %v1478_v8 = vadd.f32 %v165_v62, %v164_v63 }
 0x1e1   :  { %174 = vrot.lane.b32.xlu1 %v1478_v8, %s1324_s28 }
 0x24b   :  { %v169_v10 = vpop.permute.xlu0 %168 }
 0x24c   :  { %172 = vst.msk [vmem:[%s1767_s6] sm:$0x3] %vm171_vm8, %v169_v10  ;;  %1166 = vmatmul.msk.f32.vlgmr.msra.gmra.mxu2 %vm40_vm9, %v169_v10 }
 0x24d   :  { %747 = vmatpush.msra.mxu2 %v1373_v0 }
 0x24f   :  { %748 = vmatpush.msra.mxu2 %v1383_v2 }
 0x251   :  { %749 = vmatpush.msra.mxu2 %v1395_v4 }
 0x253   :  { %v175_v11 = vpop.permute.xlu1 %174  ;;  %750 = vmatpush.msra.mxu2 %v1409_v6 }
 0x254   :  { %1164 = vst.msk [vmem:[%s1768_s7 + $0xe] sm:$0x3] %vm171_vm8, %v175_v11  ;;  %1169 = vmatmul.msk.f32.vlgmr.msra.gmra.mxu3 %vm40_vm9, %v175_v11 }
 0x255   :  { %810 = vmatpush.msra.mxu3 %v1378_v1 }
 0x257   :  { %811 = vmatpush.msra.mxu3 %v1390_v3 }
 0x259   :  { %812 = vmatpush.msra.mxu3 %v1400_v5 }
 0x25b   :  { %813 = vmatpush.msra.mxu3 %v1414_v7 }
 0x2cf   :  { %v200_v13 = vpop.f32.mrf.mxu2 }
 0x2d0   :  { %v201_v14 = vadd.f32 %v1453_v9, %v200_v13 }
 0x2d2   :  { %224 = vrot.lane.b32.xlu2 %v201_v14, %s1323_s21  ;;  %v203_v18 = vadd.f32 %v1165_v17, %v201_v14 }
 0x2d4   :  { %v1167_v19 = vmul.f32 -1.442695, %v203_v18 }
 0x2d6   :  { %1236 = vpow2.f32 %v1167_v19  ;;  %v1173_v19 = vld [vmem:[%s1765_s0 + $0x4] sm:$0x3] }
 0x2d7   :  { %v263_v15 = vpop.f32.mrf.mxu3 }
 0x2d8   :  { %v264_v16 = vadd.f32 %v1460_v12, %v263_v15 }
 0x2da   :  { %287 = vrot.lane.b32.xlu0 %v264_v16, %s1323_s21  ;;  %v266_v25 = vadd.f32 %v1168_v23, %v264_v16 }
 0x2dc   :  { %v1237_v20 = vpop.eup %1236  ;;  %v1170_v27 = vmul.f32 -1.442695, %v266_v25 }
 0x2dd   :  { %v207_v21 = vadd.f32 1.0, %v1237_v20 }
 0x2df   :  { %1238 = vrcp.f32 %v207_v21  ;;  %v219_v30 = vand.u32 2147483648, %v207_v21  ;;  %vm213_vm11 = vweird.f32 %v207_v21  ;;  %v217_v31 = vand.u32 2147483647, %v207_v21 }
 0x2e0   :  { %1240 = vpow2.f32 %v1170_v27 }
 0x2e1   :  { %v220_v34 = vor.u32 1.1754944e-38, %v219_v30  ;;  %vm218_vm13 = vcmp.eq.f32.partialorder %v217_v31, 8.507059e+37 }
 0x2e5   :  { %v1239_v22 = vpop.eup %1238 }
 0x2e6   :  { %v209_v24 = vmul.f32 %v1239_v22, %v207_v21  ;;  %vm214_vm10 = vweird.f32 %v1239_v22  ;;  %v1241_v32 = vpop.eup %1240 }
 0x2e7   :  { %vm215_vm12 = vmor %vm213_vm11, %vm214_vm10  ;;  %v270_v35 = vadd.f32 1.0, %v1241_v32 }
 0x2e8   :  { %v210_v26 = vsub.f32 1.0, %v209_v24 }
 0x2e9   :  { %1242 = vrcp.f32 %v270_v35  ;;  %v282_v44 = vand.u32 2147483648, %v270_v35  ;;  %vm276_vm15 = vweird.f32 %v270_v35  ;;  %v280_v45 = vand.u32 2147483647, %v270_v35 }
 0x2ea   :  { %v211_v28 = vmul.f32 %v1239_v22, %v210_v26 }
 0x2eb   :  { %v283_v47 = vor.u32 1.1754944e-38, %v282_v44  ;;  %vm281_vm1 = vcmp.eq.f32.partialorder %v280_v45, 8.507059e+37 }
 0x2ec   :  { %v212_v29 = vadd.f32 %v1239_v22, %v211_v28 }
 0x2ee   :  { %v216_v33 = vsel %vm215_vm12, %v1239_v22, %v212_v29  ;;  %v1176_v22 = vld [vmem:[%s1766_s1 + $0xa] sm:$0x3] }
 0x2ef   :  { %v221_v36 = vsel %vm218_vm13, %v220_v34, %v216_v33  ;;  %v1243_v39 = vpop.eup %1242 }
 0x2f0   :  { %v272_v40 = vmul.f32 %v1243_v39, %v270_v35  ;;  %vm277_vm14 = vweird.f32 %v1243_v39  ;;  %v234_v57 = vsub.f32 1.0, %v221_v36  ;;  %v240_v60 = vmul.f32 %v221_v36, %v1474_v59 }
 0x2f1   :  { %vm278_vm0 = vmor %vm276_vm15, %vm277_vm14 }
 0x2f2   :  { %v273_v41 = vsub.f32 1.0, %v272_v40 }
 0x2f4   :  { %v274_v42 = vmul.f32 %v1243_v39, %v273_v41 }
 0x2f6   :  { %v275_v43 = vadd.f32 %v1243_v39, %v274_v42 }
 0x2f8   :  { %v279_v46 = vsel %vm278_vm0, %v1243_v39, %v275_v43 }
 0x2f9   :  { %v284_v49 = vsel %vm281_vm1, %v283_v47, %v279_v46 }
 0x2fa   :  { %v297_v63 = vsub.f32 1.0, %v284_v49  ;;  %v303_v11 = vmul.f32 %v284_v49, %v1478_v8 }
 0x32c   :  { %v225_v37 = vpop.permute.xlu2 %224 }
 0x32d   :  { %v227_v38 = vmul.f32 %v225_v37, %v221_v36 }
 0x32f   :  { %229 = vrot.lane.b32.xlu1 %v227_v38, %s1323_s21 }
 0x34c   :  { %v288_v48 = vpop.permute.xlu0 %287 }
 0x34d   :  { %v290_v50 = vmul.f32 %v288_v48, %v284_v49 }
 0x34f   :  { %292 = vrot.lane.b32.xlu2 %v290_v50, %s1323_s21 }
 0x3a1   :  { %v230_v51 = vpop.permute.xlu1 %229 }
 0x3a2   :  { %v232_v52 = vadd.f32 %v1165_v17, %v230_v51 }
 0x3a4   :  { %1244 = vtanh.f32 %v232_v52 }
 0x3a9   :  { %v293_v53 = vpop.permute.xlu2 %292 }
 0x3aa   :  { %v1245_v54 = vpop.eup %1244  ;;  %v295_v55 = vadd.f32 %v1168_v23, %v293_v53 }
 0x3ab   :  { %236 = vrot.lane.b32.xlu0 %v1245_v54, %s1324_s28 }
 0x3ac   :  { %1246 = vtanh.f32 %v295_v55 }
 0x3b2   :  { %v1247_v56 = vpop.eup %1246 }
 0x3b3   :  { %299 = vrot.lane.b32.xlu1 %v1247_v56, %s1324_s28 }
 0x41d   :  { %v237_v58 = vpop.permute.xlu0 %236 }
 0x41e   :  { %v239_v61 = vmul.f32 %v237_v58, %v234_v57 }
 0x420   :  { %v1515_v62 = vadd.f32 %v240_v60, %v239_v61 }
 0x422   :  { %306 = vrot.lane.b32.xlu2 %v1515_v62, %s1324_s28 }
 0x425   :  { %v300_v10 = vpop.permute.xlu1 %299 }
 0x426   :  { %v302_v13 = vmul.f32 %v300_v10, %v297_v63 }
 0x428   :  { %v1520_v14 = vadd.f32 %v303_v11, %v302_v13 }
 0x42a   :  { %312 = vrot.lane.b32.xlu0 %v1520_v14, %s1324_s28 }
 0x47c   :  { %v307_v15 = vpop.permute.xlu2 %306 }
 0x47d   :  { %1171 = vst.msk [vmem:[%s1767_s6 + $0x2] sm:$0x3] %vm171_vm8, %v307_v15  ;;  %1174 = vmatmul.msk.f32.vlgmr.msrb.gmra.mxu0 %vm40_vm9, %v307_v15 }
 0x47e   :  { %885 = vmatpush.msrb.mxu0 %v1373_v0 }
 0x480   :  { %886 = vmatpush.msrb.mxu0 %v1383_v2 }
 0x482   :  { %887 = vmatpush.msrb.mxu0 %v1395_v4 }
 0x484   :  { %888 = vmatpush.msrb.mxu0 %v1409_v6 }
 0x49c   :  { %v313_v59 = vpop.permute.xlu0 %312 }
 0x49d   :  { %1172 = vst.msk [vmem:[%s1768_s7 + $0xc] sm:$0x3] %vm171_vm8, %v313_v59  ;;  %1177 = vmatmul.msk.f32.vlgmr.msrb.gmra.mxu1 %vm40_vm9, %v313_v59 }
 0x49e   :  { %948 = vmatpush.msrb.mxu1 %v1378_v1 }
 0x4a0   :  { %949 = vmatpush.msrb.mxu1 %v1390_v3 }
 0x4a2   :  { %950 = vmatpush.msrb.mxu1 %v1400_v5 }
 0x4a4   :  { %951 = vmatpush.msrb.mxu1 %v1414_v7 }
 0x4fa   :  { %v338_v8 = vpop.f32.mrf.mxu0 }
 0x4fb   :  { %v339_v16 = vadd.f32 %v1453_v9, %v338_v8 }
 0x4fd   :  { %362 = vrot.lane.b32.xlu1 %v339_v16, %s1323_s21  ;;  %v341_v20 = vadd.f32 %v1173_v19, %v339_v16 }
 0x4ff   :  { %v1175_v21 = vmul.f32 -1.442695, %v341_v20 }
 0x501   :  { %1248 = vpow2.f32 %v1175_v21 }
 0x507   :  { %v1249_v25 = vpop.eup %1248 }
 0x508   :  { %v345_v26 = vadd.f32 1.0, %v1249_v25 }
 0x50a   :  { %v357_v37 = vand.u32 2147483648, %v345_v26  ;;  %vm351_vm3 = vweird.f32 %v345_v26  ;;  %v355_v38 = vand.u32 2147483647, %v345_v26 }
 0x50c   :  { %v358_v41 = vor.u32 1.1754944e-38, %v357_v37  ;;  %vm356_vm5 = vcmp.eq.f32.partialorder %v355_v38, 8.507059e+37 }
 0x51a   :  { %v401_v17 = vpop.f32.mrf.mxu1 }
 0x51b   :  { %v402_v18 = vadd.f32 %v1460_v12, %v401_v17 }
 0x51d   :  { %425 = vrot.lane.b32.xlu2 %v402_v18, %s1323_s21  ;;  %v404_v23 = vadd.f32 %v1176_v22, %v402_v18 }
 0x51f   :  { %v1178_v24 = vmul.f32 -1.442695, %v404_v23 }
 0x521   :  { %1250 = vpow2.f32 %v1178_v24 }
 0x522   :  { %1252 = vrcp.f32 %v345_v26 }
 0x527   :  { %v1251_v27 = vpop.eup %1250 }
 0x528   :  { %v408_v28 = vadd.f32 1.0, %v1251_v27  ;;  %v1253_v29 = vpop.eup %1252 }
 0x529   :  { %v347_v30 = vmul.f32 %v1253_v29, %v345_v26  ;;  %vm352_vm2 = vweird.f32 %v1253_v29 }
 0x52a   :  { %1254 = vrcp.f32 %v408_v28  ;;  %vm353_vm4 = vmor %vm351_vm3, %vm352_vm2  ;;  %v420_v46 = vand.u32 2147483648, %v408_v28  ;;  %vm414_vm7 = vweird.f32 %v408_v28  ;;  %v418_v47 = vand.u32 2147483647, %v408_v28 }
 0x52b   :  { %v348_v31 = vsub.f32 1.0, %v347_v30 }
 0x52c   :  { %v421_v49 = vor.u32 1.1754944e-38, %v420_v46  ;;  %vm419_vm11 = vcmp.eq.f32.partialorder %v418_v47, 8.507059e+37 }
 0x52d   :  { %v349_v33 = vmul.f32 %v1253_v29, %v348_v31 }
 0x52f   :  { %v350_v35 = vadd.f32 %v1253_v29, %v349_v33 }
 0x530   :  { %v1255_v32 = vpop.eup %1254 }
 0x531   :  { %v410_v34 = vmul.f32 %v1255_v32, %v408_v28  ;;  %v354_v39 = vsel %vm353_vm4, %v1253_v29, %v350_v35  ;;  %vm415_vm6 = vweird.f32 %v1255_v32 }
 0x532   :  { %v359_v43 = vsel %vm356_vm5, %v358_v41, %v354_v39  ;;  %vm416_vm10 = vmor %vm414_vm7, %vm415_vm6 }
 0x533   :  { %v411_v36 = vsub.f32 1.0, %v410_v34  ;;  %v372_v60 = vsub.f32 1.0, %v359_v43  ;;  %v378_v63 = vmul.f32 %v359_v43, %v1515_v62 }
 0x535   :  { %v412_v40 = vmul.f32 %v1255_v32, %v411_v36 }
 0x537   :  { %v413_v45 = vadd.f32 %v1255_v32, %v412_v40 }
 0x539   :  { %v417_v48 = vsel %vm416_vm10, %v1255_v32, %v413_v45 }
 0x53a   :  { %v422_v50 = vsel %vm419_vm11, %v421_v49, %v417_v48 }
 0x53b   :  { %v435_v13 = vsub.f32 1.0, %v422_v50  ;;  %v441_v59 = vmul.f32 %v422_v50, %v1520_v14 }
 0x56f   :  { %v363_v42 = vpop.permute.xlu1 %362 }
 0x570   :  { %v365_v44 = vmul.f32 %v363_v42, %v359_v43 }
 0x572   :  { %367 = vrot.lane.b32.xlu0 %v365_v44, %s1323_s21 }
 0x577   :  { %v426_v51 = vpop.permute.xlu2 %425 }
 0x578   :  { %v428_v52 = vmul.f32 %v426_v51, %v422_v50 }
 0x57a   :  { %430 = vrot.lane.b32.xlu1 %v428_v52, %s1323_s21 }
 0x5e4   :  { %v368_v53 = vpop.permute.xlu0 %367 }
 0x5e5   :  { %v370_v54 = vadd.f32 %v1173_v19, %v368_v53 }
 0x5e7   :  { %1256 = vtanh.f32 %v370_v54 }
 0x5ec   :  { %v431_v55 = vpop.permute.xlu1 %430 }
 0x5ed   :  { %v1257_v56 = vpop.eup %1256  ;;  %v433_v57 = vadd.f32 %v1176_v22, %v431_v55 }
 0x5ee   :  { %374 = vrot.lane.b32.xlu2 %v1257_v56, %s1324_s28 }
 0x5ef   :  { %1258 = vtanh.f32 %v433_v57 }
 0x5f5   :  { %v1259_v58 = vpop.eup %1258 }
 0x5f6   :  { %437 = vrot.lane.b32.xlu0 %v1259_v58, %s1324_s28 }
 0x648   :  { %v375_v61 = vpop.permute.xlu2 %374 }
 0x649   :  { %v377_v10 = vmul.f32 %v375_v61, %v372_v60 }
 0x64b   :  { %v1557_v11 = vadd.f32 %v378_v63, %v377_v10 }
 0x64d   :  { %444 = vrot.lane.b32.xlu1 %v1557_v11, %s1324_s28 }
 0x668   :  { %v438_v15 = vpop.permute.xlu0 %437 }
 0x669   :  { %v440_v8 = vmul.f32 %v438_v15, %v435_v13 }
 0x66b   :  { %v1562_v16 = vadd.f32 %v441_v59, %v440_v8 }
 0x66d   :  { %450 = vrot.lane.b32.xlu2 %v1562_v16, %s1324_s28 }
 0x6bf   :  { %v445_v17 = vpop.permute.xlu1 %444 }
 0x6c0   :  { %1179 = vst.msk [vmem:[%s1767_s6 + $0x4] sm:$0x3] %vm171_vm8, %v445_v17  ;;  %1182 = vmatmul.msk.f32.vlgmr.msrb.gmra.mxu2 %vm40_vm9, %v445_v17  ;;  %v1189_v17 = vld [vmem:[%s1765_s0 + $0x8] sm:$0x3] }
 0x6c1   :  { %1023 = vmatpush.msrb.mxu2 %v1373_v0 }
 0x6c3   :  { %1024 = vmatpush.msrb.mxu2 %v1383_v2 }
 0x6c5   :  { %1025 = vmatpush.msrb.mxu2 %v1395_v4 }
 0x6c7   :  { %v451_v62 = vpop.permute.xlu2 %450  ;;  %1026 = vmatpush.msrb.mxu2 %v1409_v6 }
 0x6c8   :  { %1180 = vst.msk [vmem:[%s1768_s7 + $0xa] sm:$0x3] %vm171_vm8, %v451_v62  ;;  %1185 = vmatmul.msk.f32.vlgmr.msrb.gmra.mxu3 %vm40_vm9, %v451_v62 }
 0x6c9   :  { %1085 = vmatpush.msrb.mxu3 %v1378_v1  ;;  %v1181_v1 = vld [vmem:[%s1765_s0 + $0x6] sm:$0x3] }
 0x6cb   :  { %1086 = vmatpush.msrb.mxu3 %v1390_v3 }
 0x6cd   :  { %1087 = vmatpush.msrb.mxu3 %v1400_v5  ;;  %v1184_v5 = vld [vmem:[%s1766_s1 + $0x8] sm:$0x3] }
 0x6cf   :  { %1088 = vmatpush.msrb.mxu3 %v1414_v7 }
 0x743   :  { %v476_v0 = vpop.f32.mrf.mxu2 }
 0x744   :  { %v477_v2 = vadd.f32 %v1453_v9, %v476_v0 }
 0x746   :  { %500 = vrot.lane.b32.xlu0 %v477_v2, %s1323_s21  ;;  %v479_v14 = vadd.f32 %v1181_v1, %v477_v2 }
 0x748   :  { %v1183_v3 = vmul.f32 -1.442695, %v479_v14 }
 0x74a   :  { %1260 = vpow2.f32 %v1183_v3 }
 0x74b   :  { %v539_v4 = vpop.f32.mrf.mxu3 }
 0x74c   :  { %v540_v6 = vadd.f32 %v1460_v12, %v539_v4 }
 0x74e   :  { %563 = vrot.lane.b32.xlu1 %v540_v6, %s1323_s21  ;;  %v542_v7 = vadd.f32 %v1184_v5, %v540_v6 }
 0x750   :  { %v1186_v18 = vmul.f32 -1.442695, %v542_v7  ;;  %v1261_v19 = vpop.eup %1260 }
 0x751   :  { %v483_v20 = vadd.f32 1.0, %v1261_v19 }
 0x752   :  { %1262 = vpow2.f32 %v1186_v18 }
 0x753   :  { %1264 = vrcp.f32 %v483_v20  ;;  %v495_v31 = vand.u32 2147483648, %v483_v20  ;;  %vm489_vm13 = vweird.f32 %v483_v20  ;;  %v493_v32 = vand.u32 2147483647, %v483_v20 }
 0x755   :  { %v496_v35 = vor.u32 1.1754944e-38, %v495_v31  ;;  %vm494_vm15 = vcmp.eq.f32.partialorder %v493_v32, 8.507059e+37 }
 0x758   :  { %v1263_v21 = vpop.eup %1262 }
 0x759   :  { %v546_v22 = vadd.f32 1.0, %v1263_v21  ;;  %v1265_v23 = vpop.eup %1264 }
 0x75a   :  { %v485_v24 = vmul.f32 %v1265_v23, %v483_v20  ;;  %vm490_vm12 = vweird.f32 %v1265_v23 }
 0x75b   :  { %1266 = vrcp.f32 %v546_v22  ;;  %vm491_vm14 = vmor %vm489_vm13, %vm490_vm12  ;;  %v558_v40 = vand.u32 2147483648, %v546_v22  ;;  %vm552_vm1 = vweird.f32 %v546_v22  ;;  %v556_v41 = vand.u32 2147483647, %v546_v22 }
 0x75c   :  { %v486_v25 = vsub.f32 1.0, %v485_v24 }
 0x75d   :  { %v559_v43 = vor.u32 1.1754944e-38, %v558_v40  ;;  %vm557_vm3 = vcmp.eq.f32.partialorder %v556_v41, 8.507059e+37 }
 0x75e   :  { %v487_v27 = vmul.f32 %v1265_v23, %v486_v25 }
 0x760   :  { %v488_v29 = vadd.f32 %v1265_v23, %v487_v27 }
 0x761   :  { %v1267_v26 = vpop.eup %1266 }
 0x762   :  { %v548_v28 = vmul.f32 %v1267_v26, %v546_v22  ;;  %v492_v33 = vsel %vm491_vm14, %v1265_v23, %v488_v29  ;;  %vm553_vm0 = vweird.f32 %v1267_v26 }
 0x763   :  { %v497_v37 = vsel %vm494_vm15, %v496_v35, %v492_v33  ;;  %vm554_vm2 = vmor %vm552_vm1, %vm553_vm0 }
 0x764   :  { %v549_v30 = vsub.f32 1.0, %v548_v28  ;;  %v510_v53 = vsub.f32 1.0, %v497_v37  ;;  %v516_v55 = vmul.f32 %v497_v37, %v1557_v11 }
 0x766   :  { %v550_v34 = vmul.f32 %v1267_v26, %v549_v30 }
 0x768   :  { %v551_v39 = vadd.f32 %v1267_v26, %v550_v34 }
 0x76a   :  { %v555_v42 = vsel %vm554_vm2, %v1267_v26, %v551_v39 }
 0x76b   :  { %v560_v45 = vsel %vm557_vm3, %v559_v43, %v555_v42 }
 0x76c   :  { %v573_v58 = vsub.f32 1.0, %v560_v45  ;;  %v579_v61 = vmul.f32 %v560_v45, %v1562_v16 }
 0x7b8   :  { %v501_v36 = vpop.permute.xlu0 %500 }
 0x7b9   :  { %v503_v38 = vmul.f32 %v501_v36, %v497_v37 }
 0x7bb   :  { %505 = vrot.lane.b32.xlu2 %v503_v38, %s1323_s21 }
 0x7c0   :  { %v564_v44 = vpop.permute.xlu1 %563 }
 0x7c1   :  { %v566_v46 = vmul.f32 %v564_v44, %v560_v45 }
 0x7c3   :  { %568 = vrot.lane.b32.xlu0 %v566_v46, %s1323_s21 }
 0x815   :  { %v506_v47 = vpop.permute.xlu2 %505 }
 0x816   :  { %v508_v48 = vadd.f32 %v1181_v1, %v506_v47  ;;  %v1192_v1 = vld [vmem:[%s1766_s1 + $0x6] sm:$0x3] }
 0x818   :  { %1268 = vtanh.f32 %v508_v48 }
 0x81e   :  { %v1269_v49 = vpop.eup %1268 }
 0x81f   :  { %512 = vrot.lane.b32.xlu1 %v1269_v49, %s1324_s28 }
 0x835   :  { %v569_v50 = vpop.permute.xlu0 %568 }
 0x836   :  { %v571_v51 = vadd.f32 %v1184_v5, %v569_v50 }
 0x838   :  { %1270 = vtanh.f32 %v571_v51 }
 0x83e   :  { %v1271_v52 = vpop.eup %1270 }
 0x83f   :  { %575 = vrot.lane.b32.xlu2 %v1271_v52, %s1324_s28 }
 0x891   :  { %v513_v54 = vpop.permute.xlu1 %512 }
 0x892   :  { %v515_v56 = vmul.f32 %v513_v54, %v510_v53 }
 0x894   :  { %v1599_v57 = vadd.f32 %v516_v55, %v515_v56 }
 0x896   :  { %582 = vrot.lane.b32.xlu0 %v1599_v57, %s1324_s28 }
 0x899   :  { %v576_v60 = vpop.permute.xlu2 %575 }
 0x89a   :  { %v578_v63 = vmul.f32 %v576_v60, %v573_v58 }
 0x89c   :  { %v1604_v10 = vadd.f32 %v579_v61, %v578_v63 }
 0x89e   :  { %588 = vrot.lane.b32.xlu1 %v1604_v10, %s1324_s28 }
 0x908   :  { %v583_v13 = vpop.permute.xlu0 %582 }
 0x909   :  { %1187 = vst.msk [vmem:[%s1767_s6 + $0x6] sm:$0x3] %vm171_vm8, %v583_v13  ;;  %1190 = vmatmul.msk.f32.vlgmr.msra.gmra.mxu0 %vm40_vm9, %v583_v13  ;;  %v1197_v13 = vld [vmem:[%s1765_s0 + $0xa] sm:$0x3] }
 0x910   :  { %v589_v11 = vpop.permute.xlu1 %588 }
 0x911   :  { %1188 = vst.msk [vmem:[%s1768_s7 + $0x8] sm:$0x3] %vm171_vm8, %v589_v11  ;;  %1193 = vmatmul.msk.f32.vlgmr.msra.gmra.mxu1 %vm40_vm9, %v589_v11 }
 0x986   :  { %v614_v15 = vpop.f32.mrf.mxu0 }
 0x987   :  { %v615_v59 = vadd.f32 %v1453_v9, %v614_v15 }
 0x989   :  { %638 = vrot.lane.b32.xlu2 %v615_v59, %s1323_s21  ;;  %v617_v62 = vadd.f32 %v1189_v17, %v615_v59  ;;  %v1200_v59 = vld [vmem:[%s1766_s1 + $0x4] sm:$0x3] }
 0x98b   :  { %v1191_v0 = vmul.f32 -1.442695, %v617_v62 }
 0x98d   :  { %1272 = vpow2.f32 %v1191_v0 }
 0x98e   :  { %v677_v8 = vpop.f32.mrf.mxu1 }
 0x98f   :  { %v678_v16 = vadd.f32 %v1460_v12, %v677_v8 }
 0x991   :  { %701 = vrot.lane.b32.xlu0 %v678_v16, %s1323_s21  ;;  %v680_v3 = vadd.f32 %v1192_v1, %v678_v16 }
 0x993   :  { %v1273_v2 = vpop.eup %1272  ;;  %v1194_v7 = vmul.f32 -1.442695, %v680_v3 }
 0x994   :  { %v621_v4 = vadd.f32 1.0, %v1273_v2 }
 0x996   :  { %1274 = vrcp.f32 %v621_v4  ;;  %v633_v20 = vand.u32 2147483648, %v621_v4  ;;  %vm627_vm5 = vweird.f32 %v621_v4  ;;  %v631_v21 = vand.u32 2147483647, %v621_v4 }
 0x997   :  { %1276 = vpow2.f32 %v1194_v7 }
 0x998   :  { %v634_v24 = vor.u32 1.1754944e-38, %v633_v20  ;;  %vm632_vm7 = vcmp.eq.f32.partialorder %v631_v21, 8.507059e+37 }
 0x99c   :  { %v1275_v6 = vpop.eup %1274 }
 0x99d   :  { %v623_v14 = vmul.f32 %v1275_v6, %v621_v4  ;;  %vm628_vm4 = vweird.f32 %v1275_v6  ;;  %v1277_v22 = vpop.eup %1276 }
 0x99e   :  { %vm629_vm6 = vmor %vm627_vm5, %vm628_vm4  ;;  %v684_v25 = vadd.f32 1.0, %v1277_v22 }
 0x99f   :  { %v624_v5 = vsub.f32 1.0, %v623_v14 }
 0x9a0   :  { %1278 = vrcp.f32 %v684_v25  ;;  %v696_v34 = vand.u32 2147483648, %v684_v25  ;;  %vm690_vm11 = vweird.f32 %v684_v25  ;;  %v694_v35 = vand.u32 2147483647, %v684_v25 }
 0x9a1   :  { %v625_v18 = vmul.f32 %v1275_v6, %v624_v5 }
 0x9a2   :  { %v697_v37 = vor.u32 1.1754944e-38, %v696_v34  ;;  %vm695_vm13 = vcmp.eq.f32.partialorder %v694_v35, 8.507059e+37 }
 0x9a3   :  { %v626_v19 = vadd.f32 %v1275_v6, %v625_v18 }
 0x9a5   :  { %v630_v23 = vsel %vm629_vm6, %v1275_v6, %v626_v19 }
 0x9a6   :  { %v635_v26 = vsel %vm632_vm7, %v634_v24, %v630_v23  ;;  %v1279_v29 = vpop.eup %1278 }
 0x9a7   :  { %v686_v30 = vmul.f32 %v1279_v29, %v684_v25  ;;  %vm691_vm10 = vweird.f32 %v1279_v29  ;;  %v648_v47 = vsub.f32 1.0, %v635_v26  ;;  %v654_v49 = vmul.f32 %v635_v26, %v1599_v57 }
 0x9a8   :  { %vm692_vm12 = vmor %vm690_vm11, %vm691_vm10 }
 0x9a9   :  { %v687_v31 = vsub.f32 1.0, %v686_v30 }
 0x9ab   :  { %v688_v32 = vmul.f32 %v1279_v29, %v687_v31 }
 0x9ad   :  { %v689_v33 = vadd.f32 %v1279_v29, %v688_v32 }
 0x9af   :  { %v693_v36 = vsel %vm692_vm12, %v1279_v29, %v689_v33 }
 0x9b0   :  { %v698_v39 = vsel %vm695_vm13, %v697_v37, %v693_v36 }
 0x9b1   :  { %v711_v52 = vsub.f32 1.0, %v698_v39  ;;  %v717_v54 = vmul.f32 %v698_v39, %v1604_v10 }
 0x9e3   :  { %v639_v27 = vpop.permute.xlu2 %638 }
 0x9e4   :  { %v641_v28 = vmul.f32 %v639_v27, %v635_v26 }
 0x9e6   :  { %643 = vrot.lane.b32.xlu1 %v641_v28, %s1323_s21 }
 0xa03   :  { %v702_v38 = vpop.permute.xlu0 %701 }
 0xa04   :  { %v704_v40 = vmul.f32 %v702_v38, %v698_v39 }
 0xa06   :  { %706 = vrot.lane.b32.xlu2 %v704_v40, %s1323_s21 }
 0xa58   :  { %v644_v41 = vpop.permute.xlu1 %643 }
 0xa59   :  { %v646_v42 = vadd.f32 %v1189_v17, %v644_v41 }
 0xa5b   :  { %1280 = vtanh.f32 %v646_v42 }
 0xa60   :  { %v707_v43 = vpop.permute.xlu2 %706 }
 0xa61   :  { %v1281_v44 = vpop.eup %1280  ;;  %v709_v45 = vadd.f32 %v1192_v1, %v707_v43 }
 0xa62   :  { %650 = vrot.lane.b32.xlu0 %v1281_v44, %s1324_s28 }
 0xa63   :  { %1282 = vtanh.f32 %v709_v45 }
 0xa69   :  { %v1283_v46 = vpop.eup %1282 }
 0xa6a   :  { %713 = vrot.lane.b32.xlu1 %v1283_v46, %s1324_s28 }
 0xad4   :  { %v651_v48 = vpop.permute.xlu0 %650 }
 0xad5   :  { %v653_v50 = vmul.f32 %v651_v48, %v648_v47 }
 0xad7   :  { %v1633_v51 = vadd.f32 %v654_v49, %v653_v50 }
 0xad9   :  { %720 = vrot.lane.b32.xlu2 %v1633_v51, %s1324_s28 }
 0xadc   :  { %v714_v53 = vpop.permute.xlu1 %713 }
 0xadd   :  { %v716_v55 = vmul.f32 %v714_v53, %v711_v52  ;;  %v1689_v52 = vld [vmem:[%s1763_s3] ss:$0 sm:$0xff] }
 0xadf   :  { %v1638_v56 = vadd.f32 %v717_v54, %v716_v55  ;;  %v1696_v55 = vld [vmem:[%s1764_s5] ss:$0 sm:$0xff] }
 0xae1   :  { %726 = vrot.lane.b32.xlu0 %v1638_v56, %s1324_s28 }
 0xb33   :  { %v721_v58 = vpop.permute.xlu2 %720 }
 0xb34   :  { %1195 = vst.msk [vmem:[%s1767_s6 + $0x8] sm:$0x3] %vm171_vm8, %v721_v58  ;;  %1198 = vmatmul.msk.f32.vlgmr.msra.gmra.mxu2 %vm40_vm9, %v721_v58  ;;  %v1205_v58 = vld [vmem:[%s1765_s0 + $0xc] sm:$0x3] }
 0xb53   :  { %v727_v57 = vpop.permute.xlu0 %726 }
 0xb54   :  { %1196 = vst.msk [vmem:[%s1768_s7 + $0x6] sm:$0x3] %vm171_vm8, %v727_v57  ;;  %1201 = vmatmul.msk.f32.vlgmr.msra.gmra.mxu3 %vm40_vm9, %v727_v57 }
 0xbb7   :  { %v752_v60 = vpop.f32.mrf.mxu2 }
 0xbb8   :  { %v753_v61 = vadd.f32 %v1453_v9, %v752_v60 }
 0xbba   :  { %776 = vrot.lane.b32.xlu1 %v753_v61, %s1323_s21  ;;  %v755_v11 = vadd.f32 %v1197_v13, %v753_v61  ;;  %v1208_v61 = vld [vmem:[%s1766_s1 + $0x2] sm:$0x3] }
 0xbbc   :  { %v1199_v15 = vmul.f32 -1.442695, %v755_v11 }
 0xbbe   :  { %1284 = vpow2.f32 %v1199_v15 }
 0xbc4   :  { %v1285_v16 = vpop.eup %1284 }
 0xbc5   :  { %v759_v17 = vadd.f32 1.0, %v1285_v16 }
 0xbc7   :  { %v771_v7 = vand.u32 2147483648, %v759_v17  ;;  %vm765_vm15 = vweird.f32 %v759_v17  ;;  %v769_v18 = vand.u32 2147483647, %v759_v17 }
 0xbc9   :  { %v772_v21 = vor.u32 1.1754944e-38, %v771_v7  ;;  %vm770_vm1 = vcmp.eq.f32.partialorder %v769_v18, 8.507059e+37 }
 0xbd7   :  { %v815_v63 = vpop.f32.mrf.mxu3 }
 0xbd8   :  { %v816_v10 = vadd.f32 %v1460_v12, %v815_v63 }
 0xbda   :  { %839 = vrot.lane.b32.xlu2 %v816_v10, %s1323_s21  ;;  %v818_v8 = vadd.f32 %v1200_v59, %v816_v10 }
 0xbdc   :  { %v1202_v9 = vmul.f32 -1.442695, %v818_v8 }
 0xbde   :  { %1286 = vpow2.f32 %v1202_v9 }
 0xbdf   :  { %1288 = vrcp.f32 %v759_v17 }
 0xbe4   :  { %v1287_v12 = vpop.eup %1286 }
 0xbe5   :  { %v822_v62 = vadd.f32 1.0, %v1287_v12  ;;  %v1289_v0 = vpop.eup %1288 }
 0xbe6   :  { %v761_v2 = vmul.f32 %v1289_v0, %v759_v17  ;;  %vm766_vm14 = vweird.f32 %v1289_v0 }
 0xbe7   :  { %1290 = vrcp.f32 %v822_v62  ;;  %vm767_vm0 = vmor %vm765_vm15, %vm766_vm14  ;;  %v834_v26 = vand.u32 2147483648, %v822_v62  ;;  %vm828_vm3 = vweird.f32 %v822_v62  ;;  %v832_v27 = vand.u32 2147483647, %v822_v62 }
 0xbe8   :  { %v762_v4 = vsub.f32 1.0, %v761_v2 }
 0xbe9   :  { %v835_v29 = vor.u32 1.1754944e-38, %v834_v26  ;;  %vm833_vm5 = vcmp.eq.f32.partialorder %v832_v27, 8.507059e+37 }
 0xbea   :  { %v763_v1 = vmul.f32 %v1289_v0, %v762_v4 }
 0xbec   :  { %v764_v3 = vadd.f32 %v1289_v0, %v763_v1 }
 0xbed   :  { %v1291_v6 = vpop.eup %1290 }
 0xbee   :  { %v824_v14 = vmul.f32 %v1291_v6, %v822_v62  ;;  %v768_v19 = vsel %vm767_vm0, %v1289_v0, %v764_v3  ;;  %vm829_vm2 = vweird.f32 %v1291_v6 }
 0xbef   :  { %v773_v23 = vsel %vm770_vm1, %v772_v21, %v768_v19  ;;  %vm830_vm4 = vmor %vm828_vm3, %vm829_vm2 }
 0xbf0   :  { %v825_v5 = vsub.f32 1.0, %v824_v14  ;;  %v786_v39 = vsub.f32 1.0, %v773_v23  ;;  %v792_v41 = vmul.f32 %v773_v23, %v1633_v51 }
 0xbf2   :  { %v826_v20 = vmul.f32 %v1291_v6, %v825_v5 }
 0xbf4   :  { %v827_v25 = vadd.f32 %v1291_v6, %v826_v20 }
 0xbf6   :  { %v831_v28 = vsel %vm830_vm4, %v1291_v6, %v827_v25 }
 0xbf7   :  { %v836_v30 = vsel %vm833_vm5, %v835_v29, %v831_v28 }
 0xbf8   :  { %v849_v44 = vsub.f32 1.0, %v836_v30  ;;  %v855_v46 = vmul.f32 %v836_v30, %v1638_v56 }
 0xc2c   :  { %v777_v22 = vpop.permute.xlu1 %776 }
 0xc2d   :  { %v779_v24 = vmul.f32 %v777_v22, %v773_v23 }
 0xc2f   :  { %781 = vrot.lane.b32.xlu0 %v779_v24, %s1323_s21 }
 0xc34   :  { %v840_v31 = vpop.permute.xlu2 %839 }
 0xc35   :  { %v842_v32 = vmul.f32 %v840_v31, %v836_v30 }
 0xc37   :  { %844 = vrot.lane.b32.xlu1 %v842_v32, %s1323_s21 }
 0xca1   :  { %v782_v33 = vpop.permute.xlu0 %781 }
 0xca2   :  { %v784_v34 = vadd.f32 %v1197_v13, %v782_v33 }
 0xca4   :  { %1292 = vtanh.f32 %v784_v34 }
 0xca9   :  { %v845_v35 = vpop.permute.xlu1 %844 }
 0xcaa   :  { %v1293_v36 = vpop.eup %1292  ;;  %v847_v37 = vadd.f32 %v1200_v59, %v845_v35 }
 0xcab   :  { %788 = vrot.lane.b32.xlu2 %v1293_v36, %s1324_s28 }
 0xcac   :  { %1294 = vtanh.f32 %v847_v37 }
 0xcb2   :  { %v1295_v38 = vpop.eup %1294 }
 0xcb3   :  { %851 = vrot.lane.b32.xlu0 %v1295_v38, %s1324_s28 }
 0xd05   :  { %v789_v40 = vpop.permute.xlu2 %788 }
 0xd06   :  { %v791_v42 = vmul.f32 %v789_v40, %v786_v39 }
 0xd08   :  { %v1667_v43 = vadd.f32 %v792_v41, %v791_v42 }
 0xd0a   :  { %858 = vrot.lane.b32.xlu1 %v1667_v43, %s1324_s28 }
 0xd25   :  { %v852_v45 = vpop.permute.xlu0 %851 }
 0xd26   :  { %v854_v47 = vmul.f32 %v852_v45, %v849_v44 }
 0xd28   :  { %v1672_v48 = vadd.f32 %v855_v46, %v854_v47 }
 0xd2a   :  { %864 = vrot.lane.b32.xlu2 %v1672_v48, %s1324_s28 }
 0xd7c   :  { %v859_v49 = vpop.permute.xlu1 %858 }
 0xd7d   :  { %1203 = vst.msk [vmem:[%s1767_s6 + $0xa] sm:$0x3] %vm171_vm8, %v859_v49  ;;  %1206 = vmatmul.msk.f32.vlgmr.msrb.gmra.mxu0 %vm40_vm9, %v859_v49  ;;  %v1213_v49 = vld [vmem:[%s1765_s0 + $0xe] sm:$0x3] }
 0xd84   :  { %v865_v50 = vpop.permute.xlu2 %864 }
 0xd85   :  { %1204 = vst.msk [vmem:[%s1768_s7 + $0x4] sm:$0x3] %vm171_vm8, %v865_v50  ;;  %1209 = vmatmul.msk.f32.vlgmr.msrb.gmra.mxu1 %vm40_vm9, %v865_v50 }
 0xdfa   :  { %v890_v51 = vpop.f32.mrf.mxu0 }
 0xdfb   :  { %v891_v53 = vadd.f32 %v1689_v52, %v890_v51 }
 0xdfd   :  { %914 = vrot.lane.b32.xlu0 %v891_v53, %s1323_s21  ;;  %v893_v57 = vadd.f32 %v1205_v58, %v891_v53 }
 0xdff   :  { %v1207_v60 = vmul.f32 -1.442695, %v893_v57 }
 0xe01   :  { %1296 = vpow2.f32 %v1207_v60 }
 0xe02   :  { %v953_v54 = vpop.f32.mrf.mxu1 }
 0xe03   :  { %v954_v56 = vadd.f32 %v1696_v55, %v953_v54 }
 0xe05   :  { %977 = vrot.lane.b32.xlu1 %v954_v56, %s1323_s21  ;;  %v956_v63 = vadd.f32 %v1208_v61, %v954_v56 }
 0xe07   :  { %v1210_v10 = vmul.f32 -1.442695, %v956_v63  ;;  %v1297_v13 = vpop.eup %1296 }
 0xe08   :  { %v897_v11 = vadd.f32 1.0, %v1297_v13 }
 0xe09   :  { %1298 = vpow2.f32 %v1210_v10 }
 0xe0a   :  { %1300 = vrcp.f32 %v897_v11  ;;  %v909_v4 = vand.u32 2147483648, %v897_v11  ;;  %vm903_vm7 = vweird.f32 %v897_v11  ;;  %v907_v6 = vand.u32 2147483647, %v897_v11 }
 0xe0c   :  { %v910_v3 = vor.u32 1.1754944e-38, %v909_v4  ;;  %vm908_vm11 = vcmp.eq.f32.partialorder %v907_v6, 8.507059e+37 }
 0xe0f   :  { %v1299_v15 = vpop.eup %1298 }
 0xe10   :  { %v960_v59 = vadd.f32 1.0, %v1299_v15  ;;  %v1301_v8 = vpop.eup %1300 }
 0xe11   :  { %v899_v9 = vmul.f32 %v1301_v8, %v897_v11  ;;  %vm904_vm6 = vweird.f32 %v1301_v8 }
 0xe12   :  { %1302 = vrcp.f32 %v960_v59  ;;  %vm905_vm10 = vmor %vm903_vm7, %vm904_vm6  ;;  %v972_v20 = vand.u32 2147483648, %v960_v59  ;;  %vm966_vm13 = vweird.f32 %v960_v59  ;;  %v970_v21 = vand.u32 2147483647, %v960_v59 }
 0xe13   :  { %v900_v16 = vsub.f32 1.0, %v899_v9 }
 0xe14   :  { %v973_v23 = vor.u32 1.1754944e-38, %v972_v20  ;;  %vm971_vm15 = vcmp.eq.f32.partialorder %v970_v21, 8.507059e+37 }
 0xe15   :  { %v901_v12 = vmul.f32 %v1301_v8, %v900_v16 }
 0xe17   :  { %v902_v0 = vadd.f32 %v1301_v8, %v901_v12 }
 0xe18   :  { %v1303_v17 = vpop.eup %1302 }
 0xe19   :  { %v962_v62 = vmul.f32 %v1303_v17, %v960_v59  ;;  %v906_v1 = vsel %vm905_vm10, %v1301_v8, %v902_v0  ;;  %vm967_vm12 = vweird.f32 %v1303_v17 }
 0xe1a   :  { %v911_v7 = vsel %vm908_vm11, %v910_v3, %v906_v1  ;;  %vm968_vm14 = vmor %vm966_vm13, %vm967_vm12 }
 0xe1b   :  { %v963_v2 = vsub.f32 1.0, %v962_v62  ;;  %v924_v33 = vsub.f32 1.0, %v911_v7  ;;  %v930_v35 = vmul.f32 %v911_v7, %v1667_v43 }
 0xe1d   :  { %v964_v14 = vmul.f32 %v1303_v17, %v963_v2 }
 0xe1f   :  { %v965_v19 = vadd.f32 %v1303_v17, %v964_v14 }
 0xe21   :  { %v969_v22 = vsel %vm968_vm14, %v1303_v17, %v965_v19 }
 0xe22   :  { %v974_v25 = vsel %vm971_vm15, %v973_v23, %v969_v22 }
 0xe23   :  { %v987_v38 = vsub.f32 1.0, %v974_v25  ;;  %v993_v40 = vmul.f32 %v974_v25, %v1672_v48 }
 0xe6f   :  { %v915_v5 = vpop.permute.xlu0 %914 }
 0xe70   :  { %v917_v18 = vmul.f32 %v915_v5, %v911_v7 }
 0xe72   :  { %919 = vrot.lane.b32.xlu2 %v917_v18, %s1323_s21 }
 0xe77   :  { %v978_v24 = vpop.permute.xlu1 %977 }
 0xe78   :  { %v980_v26 = vmul.f32 %v978_v24, %v974_v25 }
 0xe7a   :  { %982 = vrot.lane.b32.xlu0 %v980_v26, %s1323_s21 }
 0xecc   :  { %v920_v27 = vpop.permute.xlu2 %919 }
 0xecd   :  { %v922_v28 = vadd.f32 %v1205_v58, %v920_v27 }
 0xecf   :  { %1304 = vtanh.f32 %v922_v28 }
 0xed5   :  { %v1305_v29 = vpop.eup %1304 }
 0xed6   :  { %926 = vrot.lane.b32.xlu1 %v1305_v29, %s1324_s28 }
 0xeec   :  { %v983_v30 = vpop.permute.xlu0 %982 }
 0xeed   :  { %v985_v31 = vadd.f32 %v1208_v61, %v983_v30 }
 0xeef   :  { %1306 = vtanh.f32 %v985_v31 }
 0xef5   :  { %v1307_v32 = vpop.eup %1306 }
 0xef6   :  { %989 = vrot.lane.b32.xlu2 %v1307_v32, %s1324_s28 }
 0xf48   :  { %v927_v34 = vpop.permute.xlu1 %926 }
 0xf49   :  { %v929_v36 = vmul.f32 %v927_v34, %v924_v33 }
 0xf4b   :  { %v1711_v37 = vadd.f32 %v930_v35, %v929_v36 }
 0xf4d   :  { %996 = vrot.lane.b32.xlu0 %v1711_v37, %s1324_s28 }
 0xf50   :  { %v990_v39 = vpop.permute.xlu2 %989 }
 0xf51   :  { %v992_v41 = vmul.f32 %v990_v39, %v987_v38 }
 0xf53   :  { %v1716_v42 = vadd.f32 %v993_v40, %v992_v41 }
 0xf55   :  { %1002 = vrot.lane.b32.xlu1 %v1716_v42, %s1324_s28 }
 0xfbf   :  { %v997_v44 = vpop.permute.xlu0 %996 }
 0xfc0   :  { %1211 = vst.msk [vmem:[%s1767_s6 + $0xc] sm:$0x3] %vm171_vm8, %v997_v44  ;;  %1214 = vmatmul.msk.f32.vlgmr.msrb.gmra.mxu2 %vm40_vm9, %v997_v44 }
 0xfc7   :  { %v1003_v43 = vpop.permute.xlu1 %1002 }
 0xfc8   :  { %1212 = vst.msk [vmem:[%s1768_s7 + $0x2] sm:$0x3] %vm171_vm8, %v1003_v43  ;;  %1216 = vmatmul.msk.f32.vlgmr.msrb.gmra.mxu3 %vm40_vm9, %v1003_v43 }
0x1043   :  { %v1028_v45 = vpop.f32.mrf.mxu2 }
0x1044   :  { %v1029_v46 = vadd.f32 %v1689_v52, %v1028_v45  ;;  %v1070_v52 = vld [vmem:[%s1766_s1] sm:$0x3] }
0x1046   :  { %1052 = vrot.lane.b32.xlu2 %v1029_v46, %s1323_s21  ;;  %v1031_v50 = vadd.f32 %v1213_v49, %v1029_v46 }
0x1048   :  { %v1215_v51 = vmul.f32 -1.442695, %v1031_v50 }
0x104a   :  { %1308 = vpow2.f32 %v1215_v51 }
0x104b   :  { %v1090_v47 = vpop.f32.mrf.mxu3 }
0x104c   :  { %v1091_v48 = vadd.f32 %v1696_v55, %v1090_v47 }
0x104e   :  { %1114 = vrot.lane.b32.xlu0 %v1091_v48, %s1323_s21  ;;  %v1093_v57 = vadd.f32 %v1091_v48, %v1070_v52 }
0x1050   :  { %v1309_v53 = vpop.eup %1308  ;;  %v1217_v60 = vmul.f32 -1.442695, %v1093_v57 }
0x1051   :  { %v1035_v54 = vadd.f32 1.0, %v1309_v53 }
0x1053   :  { %1310 = vrcp.f32 %v1035_v54  ;;  %v1047_v10 = vand.u32 2147483648, %v1035_v54  ;;  %vm1041_vm0 = vweird.f32 %v1035_v54  ;;  %v1045_v13 = vand.u32 2147483647, %v1035_v54 }
0x1054   :  { %1312 = vpow2.f32 %v1217_v60 }
0x1055   :  { %v1048_v59 = vor.u32 1.1754944e-38, %v1047_v10  ;;  %vm1046_vm2 = vcmp.eq.f32.partialorder %v1045_v13, 8.507059e+37 }
0x1059   :  { %v1311_v56 = vpop.eup %1310 }
0x105a   :  { %v1037_v58 = vmul.f32 %v1311_v56, %v1035_v54  ;;  %vm1042_vm9 = vweird.f32 %v1311_v56  ;;  %v1313_v11 = vpop.eup %1312 }
0x105b   :  { %vm1043_vm1 = vmor %vm1041_vm0, %vm1042_vm9  ;;  %v1097_v8 = vadd.f32 1.0, %v1313_v11 }
0x105c   :  { %v1038_v55 = vsub.f32 1.0, %v1037_v58 }
0x105d   :  { %1314 = vrcp.f32 %v1097_v8  ;;  %v1109_v6 = vand.u32 2147483648, %v1097_v8  ;;  %vm1103_vm4 = vweird.f32 %v1097_v8  ;;  %v1107_v1 = vand.u32 2147483647, %v1097_v8 }
0x105e   :  { %v1039_v61 = vmul.f32 %v1311_v56, %v1038_v55 }
0x105f   :  { %v1110_v3 = vor.u32 1.1754944e-38, %v1109_v6  ;;  %vm1108_vm6 = vcmp.eq.f32.partialorder %v1107_v1, 8.507059e+37 }
0x1060   :  { %v1040_v63 = vadd.f32 %v1311_v56, %v1039_v61 }
0x1062   :  { %v1044_v15 = vsel %vm1043_vm1, %v1311_v56, %v1040_v63 }
0x1063   :  { %v1049_v9 = vsel %vm1046_vm2, %v1048_v59, %v1044_v15  ;;  %v1315_v12 = vpop.eup %1314 }
0x1064   :  { %v1099_v62 = vmul.f32 %v1315_v12, %v1097_v8  ;;  %vm1104_vm3 = vweird.f32 %v1315_v12  ;;  %v1062_v25 = vsub.f32 1.0, %v1049_v9  ;;  %v1068_v27 = vmul.f32 %v1049_v9, %v1711_v37 }
0x1065   :  { %vm1105_vm5 = vmor %vm1103_vm4, %vm1104_vm3 }
0x1066   :  { %v1100_v0 = vsub.f32 1.0, %v1099_v62 }
0x1068   :  { %v1101_v2 = vmul.f32 %v1315_v12, %v1100_v0 }
0x106a   :  { %v1102_v4 = vadd.f32 %v1315_v12, %v1101_v2 }
0x106c   :  { %v1106_v14 = vsel %vm1105_vm5, %v1315_v12, %v1102_v4 }
0x106d   :  { %v1111_v7 = vsel %vm1108_vm6, %v1110_v3, %v1106_v14 }
0x106e   :  { %v1124_v30 = vsub.f32 1.0, %v1111_v7  ;;  %v1130_v32 = vmul.f32 %v1111_v7, %v1716_v42 }
0x10a0   :  { %v1053_v16 = vpop.permute.xlu2 %1052 }
0x10a1   :  { %v1055_v17 = vmul.f32 %v1053_v16, %v1049_v9 }
0x10a3   :  { %1057 = vrot.lane.b32.xlu1 %v1055_v17, %s1323_s21 }
0x10c0   :  { %v1115_v5 = vpop.permute.xlu0 %1114 }
0x10c1   :  { %v1117_v18 = vmul.f32 %v1115_v5, %v1111_v7 }
0x10c3   :  { %1119 = vrot.lane.b32.xlu2 %v1117_v18, %s1323_s21 }
0x1115   :  { %v1058_v19 = vpop.permute.xlu1 %1057 }
0x1116   :  { %v1060_v20 = vadd.f32 %v1213_v49, %v1058_v19 }
0x1118   :  { %1316 = vtanh.f32 %v1060_v20 }
0x111d   :  { %v1120_v21 = vpop.permute.xlu2 %1119 }
0x111e   :  { %v1317_v22 = vpop.eup %1316  ;;  %v1122_v23 = vadd.f32 %v1120_v21, %v1070_v52 }
0x111f   :  { %1064 = vrot.lane.b32.xlu0 %v1317_v22, %s1324_s28 }
0x1120   :  { %1318 = vtanh.f32 %v1122_v23 }
0x1126   :  { %v1319_v24 = vpop.eup %1318 }
0x1127   :  { %1126 = vrot.lane.b32.xlu1 %v1319_v24, %s1324_s28 }
0x1191   :  { %v1065_v26 = vpop.permute.xlu0 %1064 }
0x1192   :  { %v1067_v28 = vmul.f32 %v1065_v26, %v1062_v25 }
0x1194   :  { %v1069_v29 = vadd.f32 %v1068_v27, %v1067_v28 }
0x1196   :  { %1133 = vrot.lane.b32.xlu2 %v1069_v29, %s1324_s28 }
0x1199   :  { %v1127_v31 = vpop.permute.xlu1 %1126 }
0x119a   :  { %v1129_v33 = vmul.f32 %v1127_v31, %v1124_v30 }
0x119c   :  { %v1131_v34 = vadd.f32 %v1130_v32, %v1129_v33 }
0x119e   :  { %1139 = vrot.lane.b32.xlu0 %v1131_v34, %s1324_s28  ;;  %v1143_v35 = vadd.f32 %v1131_v34, %v1069_v29 }
0x11a0   :  { %1145 = vrot.lane.b32.xlu1 %v1143_v35, %s1324_s28 }
0x11f0   :  { %v1134_v36 = vpop.permute.xlu2 %1133 }
0x11f1   :  { %1218 = vst.msk [vmem:[%s1767_s6 + $0xe] sm:$0x3] %vm171_vm8, %v1134_v36 }
0x1210   :  { %v1140_v37 = vpop.permute.xlu0 %1139 }
0x1211   :  { %1142 = vst.msk [vmem:[%s1768_s7] sm:$0x3] %vm171_vm8, %v1140_v37 }
0x1212   :  { %v1146_v38 = vpop.permute.xlu1 %1145 }
0x1213   :  { %1148 = vst.msk [vmem:[%s1769_s8] sm:$0x3] %vm171_vm8, %v1146_v38 }

// kernel: seq2seq_forward.3
= control target key start
LH: loop header
LB: loop body
LE: loop exit
PB: predicated region body
PF: predicated region fallthrough
CT: control target
= control target key end

     0   :  { %s3271_s0 = inlined_call_operand.vmem [shape: s32[6], index: 0, kind: input, shape index: {}]   ;;  %s3272_s1 = inlined_call_operand.vmem [shape: f32[6,2,16], index: 1, kind: input, shape index: {}]   ;;  %s3273_s2 = inlined_call_operand.vmem [shape: f32[2,32], index: 2, kind: input, shape index: {}]   ;;  %s3274_s3 = inlined_call_operand.vmem [shape: f32[8,2,64], index: 3, kind: input, shape index: {}]   ;;  %s3275_s4 = inlined_call_operand.vmem [shape: f32[8,2,32], index: 4, kind: input, shape index: {}]   ;;  %s3276_s5 = inlined_call_operand.vmem [shape: f32[29,16], index: 5, kind: input, shape index: {}]   ;;  %s3277_s6 = inlined_call_operand.vmem [shape: f32[16,96], index: 6, kind: input, shape index: {}]   ;;  %s3278_s7 = inlined_call_operand.vmem [shape: f32[32,96], index: 7, kind: input, shape index: {}]   ;;  %s3279_s8 = inlined_call_operand.vmem [shape: f32[1,96], index: 8, kind: input, shape index: {}]   ;;  %s3280_s9 = inlined_call_operand.vmem [shape: f32[1,96], index: 9, kind: input, shape index: {}]   ;;  %s3281_s10 = inlined_call_operand.vmem [shape: f32[32,32], index: 10, kind: input, shape index: {}]   ;;  %s3282_s11 = inlined_call_operand.vmem [shape: f32[1,32], index: 11, kind: input, shape index: {}]   ;;  %s3283_s12 = inlined_call_operand.vmem [shape: f32[1,32], index: 12, kind: input, shape index: {}]   ;;  %s3284_s13 = inlined_call_operand.vmem [shape: f32[64,29], index: 13, kind: input, shape index: {}]   ;;  %s3285_s14 = inlined_call_operand.vmem [shape: f32[32,29], index: 14, kind: input, shape index: {}]   ;;  %s3286_s15 = inlined_call_operand.vmem [shape: f32[1,29], index: 15, kind: input, shape index: {}]   ;;  %s3287_s16 = inlined_call_operand.vmem [shape: f32[32,29], index: 16, kind: input, shape index: {}]   ;;  %s3288_s17 = inlined_call_operand.vmem [shape: f32[1,29], index: 17, kind: input, shape index: {}]   ;;  %s3289_s18 = inlined_call_operand.hbm [shape: f32[6,2,29], index: 18, kind: output, shape index: {}]  }
   0x1   :  { %3291 = sst [smem:[#allocation8_spill]] %s3271_s0 }
   0x2   :  { %3292 = sst [smem:[#allocation9_spill]] %s3272_s1 }
   0x3   :  { %3293 = sst [smem:[#allocation10_spill]] %s3273_s2 }
   0x4   :  { %23 = vsyncpa [#allocation4], 0 }
   0x5   :  { %24 = vsyncpa [#allocation3], 0  ;;  %s3294_s29 = sld [smem:[#allocation8_spill]]  ;;  %s2184_s0 = smov [#allocation2]  }
   0xb   :  { %s30_s30 = sshll.u32 %s3294_s29, 4  ;;  %s31_s30 = int_to_ptr.vmem [resolvable:$true] %s30_s30 }
   0xc   :  { %33 = dma.vmem_to_smem %s31_s30, 16, %s2184_s0, [#allocation4]  }
   0xd   :  { %2180 = dma.done.wait [#allocation4], 16  }
   0xe   :  { %2181 = vsyncadd [#allocation4], 4294967280 }
   0xf   :  { %72 = sfence }
  0x10   :  { %v2292_v0 = vld [vmem:[%s3277_s6 + $0x8] sm:$0xff]  ;;  %v2297_v1 = vld [vmem:[%s3277_s6] sm:$0xff]  ;;  %s3295_s22 = sld [smem:[#allocation9_spill]]  ;;  %vm127_vm0 = vcmask 130048   ;;  %v2306_v3 = vld [vmem:[%s3278_s7 + $0x18] sm:$0xff]  ;;  %vm154_vm1 = vcmask 261120  }
  0x11   :  { %145 = vmatpush.msra.mxu1 %v2292_v0  ;;  %v2313_v4 = vld [vmem:[%s3278_s7 + $0x10] sm:$0xff]  ;;  %v2319_v5 = vld [vmem:[%s3278_s7 + $0x8] sm:$0xff]  ;;  %v2325_v6 = vld [vmem:[%s3278_s7] sm:$0xff]  ;;  %s3296_s19 = sld [smem:[#allocation10_spill]]  ;;  %s2185_s1 = smov 64   ;;  %vm275_vm6 = vcmask 254976  }
  0x12   :  { %v2336_v9 = vld [vmem:[%s3280_s9] ss:$0 sm:$0xff]  ;;  %s2186_s2 = smov 96   ;;  %s2187_s23 = smov 32   ;;  %v2352_v33 = vld [vmem:[%s3281_s10 + $0x18] sm:$0xff]  ;;  %v2362_v35 = vld [vmem:[%s3281_s10 + $0x10] sm:$0xff] }
  0x13   :  { %146 = vmatpush.msra.mxu1 %v2297_v1  ;;  %v2343_v12 = vld [vmem:[%s3279_s8] ss:$0 sm:$0xff]  ;;  %v2357_v34 = vld [vmem:[%s3285_s14 + $0x18] sm:$0xff]  ;;  %240 = vmatpush.msra.mxu2 %v2352_v33  ;;  %v2369_v36 = vld [vmem:[%s3285_s14 + $0x10] sm:$0xff]  ;;  %vm300_vm7 = vcmask 1041408   ;;  %vm372_vm8 = vcmask 517120  }
  0x14   :  { %400 = vmatpush.msra.mxu3 %v2357_v34  ;;  %v2374_v37 = vld [vmem:[%s3281_s10 + $0x8] sm:$0xff]  ;;  %v2386_v39 = vld [vmem:[%s3281_s10] sm:$0xff]  ;;  %vm408_vm9 = vcmask 523264   ;;  %vm122_vm10 = vcmask 230400   ;;  %vm467_vm12 = vcmask 1044480   ;;  %vm463_vm14 = vcmask 236544  }
  0x15   :  { %170 = vmatpush.msrb.mxu1 %v2306_v3  ;;  %v2379_v38 = vld [vmem:[%s3285_s14 + $0x8] sm:$0xff]  ;;  %241 = vmatpush.msra.mxu2 %v2362_v35  ;;  %v2391_v40 = vld [vmem:[%s3285_s14] sm:$0xff]  ;;  %s1856_s27 = sld [smem:[#allocation2 + $0x2]]  ;;  %s2190_s17 = smov 2  }
  0x16   :  { %v121_v2 = vld [vmem:[%s3295_s22] sm:$0x3]  ;;  %401 = vmatpush.msra.mxu3 %v2369_v36  ;;  %v2422_v50 = vld [vmem:[%s3275_s4 + $0x4] sm:$0x3]  ;;  %v2427_v51 = vld [vmem:[%s3275_s4 + $0x2] sm:$0x3] }
  0x17   :  { %1836 = vmatmul.msk.f32.vlgmr.msra.gmra.mxu1 %vm127_vm0, %v121_v2  ;;  %v120_v7 = vld [vmem:[%s3296_s19] sm:$0x3]  ;;  %242 = vmatpush.msra.mxu2 %v2374_v37  ;;  %v2438_v54 = vld [vmem:[%s3275_s4 + $0xc] sm:$0x3]  ;;  %v2446_v58 = vld [vmem:[%s3275_s4 + $0xa] sm:$0x3] }
  0x18   :  { %171 = vmatpush.msrb.mxu1 %v2313_v4  ;;  %402 = vmatpush.msra.mxu3 %v2379_v38  ;;  %v2417_v48 = vld [vmem:[%s3282_s11] ss:$0 sm:$0xff]  ;;  %v2451_v59 = vld [vmem:[%s3275_s4 + $0x6] sm:$0x3] }
  0x19   :  { %243 = vmatpush.msra.mxu2 %v2386_v39  ;;  %v2432_v52 = vld [vmem:[%s3275_s4] sm:$0x3] }
  0x1a   :  { %172 = vmatpush.msrb.mxu1 %v2319_v5  ;;  %403 = vmatpush.msra.mxu3 %v2391_v40  ;;  %v2459_v63 = vld [vmem:[%s3283_s12] ss:$0 sm:$0xff] }
  0x1b   :  { %518 = vmatpush.msrb.mxu2 %v2292_v0  ;;  %s835_s28 = scvt.s32.f32 %s1856_s27 }
  0x1c   :  { %173 = vmatpush.msrb.mxu1 %v2325_v6  ;;  %536 = vmatpush.msrb.mxu3 %v2306_v3 }
  0x1d   :  { %519 = vmatpush.msrb.mxu2 %v2297_v1  ;;  %s840_s29 = ssub.f32 1.0, %s835_s28 }
  0x1e   :  { %537 = vmatpush.msrb.mxu3 %v2313_v4 }
  0x1f   :  { %1837 = vmatmul.msk.f32.vlgmr.msrb.gmra.mxu1 %vm154_vm1, %v120_v7 }
  0x20   :  { %538 = vmatpush.msrb.mxu3 %v2319_v5 }
  0x22   :  { %539 = vmatpush.msrb.mxu3 %v2325_v6 }
  0x94   :  { %v148_v8 = vpop.f32.mrf.mxu1 }
  0x95   :  { %v149_v13 = vadd.f32 %v2343_v12, %v148_v8 }
  0x9c   :  { %v175_v10 = vpop.f32.mrf.mxu1 }
  0x9d   :  { %v176_v11 = vadd.f32 %v2336_v9, %v175_v10  ;;  %v2465_v10 = vld [vmem:[%s3275_s4 + $0x8] sm:$0x3] }
  0x9f   :  { %199 = vrot.lane.b32.xlu0 %v176_v11, %s2185_s1  ;;  %v178_v14 = vadd.f32 %v176_v11, %v149_v13 }
  0xa1   :  { %v1838_v15 = vmul.f32 -1.442695, %v178_v14 }
  0xa3   :  { %1898 = vpow2.f32 %v1838_v15 }
  0xa9   :  { %v1899_v16 = vpop.eup %1898 }
  0xaa   :  { %v182_v17 = vadd.f32 1.0, %v1899_v16 }
  0xac   :  { %1900 = vrcp.f32 %v182_v17  ;;  %v194_v23 = vand.u32 2147483648, %v182_v17  ;;  %vm188_vm3 = vweird.f32 %v182_v17  ;;  %v192_v24 = vand.u32 2147483647, %v182_v17 }
  0xae   :  { %v195_v26 = vor.u32 1.1754944e-38, %v194_v23  ;;  %vm193_vm5 = vcmp.eq.f32.partialorder %v192_v24, 8.507059e+37 }
  0xb2   :  { %v1901_v18 = vpop.eup %1900 }
  0xb3   :  { %v184_v19 = vmul.f32 %v1901_v18, %v182_v17  ;;  %vm189_vm2 = vweird.f32 %v1901_v18 }
  0xb4   :  { %vm190_vm4 = vmor %vm188_vm3, %vm189_vm2 }
  0xb5   :  { %v185_v20 = vsub.f32 1.0, %v184_v19 }
  0xb7   :  { %v186_v21 = vmul.f32 %v1901_v18, %v185_v20 }
  0xb9   :  { %v187_v22 = vadd.f32 %v1901_v18, %v186_v21 }
  0xbb   :  { %v191_v25 = vsel %vm190_vm4, %v1901_v18, %v187_v22 }
  0xbc   :  { %v196_v28 = vsel %vm193_vm5, %v195_v26, %v191_v25  ;;  %v2479_v25 = vld [vmem:[%s3275_s4 + $0xe] sm:$0x3] }
  0xbd   :  { %v209_v42 = vsub.f32 1.0, %v196_v28 }
 0x111   :  { %v200_v27 = vpop.permute.xlu0 %199 }
 0x112   :  { %v202_v29 = vmul.f32 %v200_v27, %v196_v28 }
 0x114   :  { %204 = vrot.lane.b32.xlu0 %v202_v29, %s2185_s1 }
 0x186   :  { %v205_v30 = vpop.permute.xlu0 %204 }
 0x187   :  { %v207_v31 = vadd.f32 %v205_v30, %v149_v13 }
 0x189   :  { %1902 = vtanh.f32 %v207_v31 }
 0x18f   :  { %v1903_v32 = vpop.eup %1902 }
 0x190   :  { %211 = vrot.lane.b32.xlu1 %v1903_v32, %s2186_s2 }
 0x198   :  { %215 = vrot.lane.b32.xlu1 %v120_v7, %s2187_s23 }
 0x202   :  { %v212_v41 = vpop.permute.xlu1 %211 }
 0x203   :  { %v214_v44 = vmul.f32 %v212_v41, %v209_v42 }
 0x20a   :  { %v216_v43 = vpop.permute.xlu1 %215 }
 0x20b   :  { %v218_v45 = vmul.f32 %v216_v43, %v196_v28 }
 0x20d   :  { %v2403_v46 = vadd.f32 %v218_v45, %v214_v44 }
 0x20f   :  { %224 = vrot.lane.b32.xlu2 %v2403_v46, %s2186_s2 }
 0x269   :  { %v225_v47 = vpop.permute.xlu2 %224 }
 0x26a   :  { %1839 = vmatmul.msk.f32.vlgmr.msra.gmra.mxu2 %vm154_vm1, %v225_v47  ;;  %1840 = vmatmul.msk.f32.vlgmr.msra.gmra.mxu3 %vm154_vm1, %v225_v47 }
 0x26b   :  { %754 = vmatpush.msra.mxu2 %v2357_v34 }
 0x26d   :  { %755 = vmatpush.msra.mxu2 %v2369_v36 }
 0x26f   :  { %756 = vmatpush.msra.mxu2 %v2379_v38 }
 0x271   :  { %757 = vmatpush.msra.mxu2 %v2391_v40 }
 0x272   :  { %1848 = vmatmul.msk.f32.vlgmr.msrb.gmra.mxu3 %vm154_vm1, %v225_v47 }
 0x2ed   :  { %v245_v49 = vpop.f32.mrf.mxu2 }
 0x2ee   :  { %v246_v53 = vadd.f32 %v2417_v48, %v245_v49 }
 0x2f0   :  { %v250_v55 = vadd.f32 %v246_v53, %v2422_v50  ;;  %v249_v56 = vadd.f32 %v246_v53, %v2427_v51  ;;  %v248_v57 = vadd.f32 %v246_v53, %v2432_v52  ;;  %v254_v60 = vadd.f32 %v246_v53, %v2438_v54 }
 0x2f1   :  { %v253_v61 = vadd.f32 %v246_v53, %v2446_v58  ;;  %v251_v62 = vadd.f32 %v246_v53, %v2451_v59  ;;  %v252_v18 = vadd.f32 %v246_v53, %v2465_v10  ;;  %v255_v28 = vadd.f32 %v246_v53, %v2479_v25 }
 0x2f2   :  { %1904 = vtanh.f32 %v250_v55 }
 0x2f3   :  { %1906 = vtanh.f32 %v249_v56 }
 0x2f4   :  { %1908 = vtanh.f32 %v248_v57 }
 0x2f5   :  { %1910 = vtanh.f32 %v254_v60 }
 0x2f6   :  { %1912 = vtanh.f32 %v253_v61 }
 0x2f7   :  { %1914 = vtanh.f32 %v251_v62 }
 0x2f8   :  { %v1905_v2 = vpop.eup %1904  ;;  %1916 = vtanh.f32 %v252_v18  ;;  %v2500_v18 = vld [vmem:[%s3284_s13 + $0x38] sm:$0xff] }
 0x2f9   :  { %v1907_v7 = vpop.eup %1906  ;;  %v269_v8 = vmul.f32 %v1905_v2, %v2459_v63  ;;  %1918 = vtanh.f32 %v255_v28  ;;  %420 = vmatpush.msra.mxu0 %v2500_v18  ;;  %773 = vmatpush.msra.mxu3 %v2500_v18 }
 0x2fa   :  { %v1909_v11 = vpop.eup %1908  ;;  %v268_v13 = vmul.f32 %v1907_v7, %v2459_v63 }
 0x2fb   :  { %v282_v14 = vsel %vm275_vm6, %v269_v8, 0.0  ;;  %v267_v15 = vmul.f32 %v1909_v11, %v2459_v63  ;;  %v1911_v16 = vpop.eup %1910 }
 0x2fc   :  { %283 = vadd.xlane.f32.xlu1 %v282_v14  ;;  %v279_v17 = vsel %vm275_vm6, %v268_v13, 0.0  ;;  %v1913_v19 = vpop.eup %1912  ;;  %v273_v22 = vmul.f32 %v1911_v16, %v2459_v63 }
 0x2fd   :  { %280 = vadd.xlane.f32.xlu0 %v279_v17  ;;  %v276_v20 = vsel %vm275_vm6, %v267_v15, 0.0  ;;  %v1915_v21 = vpop.eup %1914  ;;  %v272_v23 = vmul.f32 %v1913_v19, %v2459_v63  ;;  %v2505_v19 = vld [vmem:[%s3284_s13 + $0x30] sm:$0xff] }
 0x2fe   :  { %277 = vadd.xlane.f32.xlu2 %v276_v20  ;;  %v270_v24 = vmul.f32 %v1915_v21, %v2459_v63  ;;  %v294_v26 = vsel %vm275_vm6, %v273_v22, 0.0  ;;  %v1917_v30 = vpop.eup %1916  ;;  %v2512_v22 = vld [vmem:[%s3284_s13 + $0x28] sm:$0xff]  ;;  %421 = vmatpush.msra.mxu0 %v2505_v19 }
 0x2ff   :  { %v291_v27 = vsel %vm275_vm6, %v272_v23, 0.0  ;;  %v271_v31 = vmul.f32 %v1917_v30, %v2459_v63  ;;  %v1919_v41 = vpop.eup %1918  ;;  %774 = vmatpush.msra.mxu3 %v2505_v19 }
 0x300   :  { %v285_v29 = vsel %vm275_vm6, %v270_v24, 0.0  ;;  %v274_v42 = vmul.f32 %v1919_v41, %v2459_v63  ;;  %v2519_v24 = vld [vmem:[%s3284_s13 + $0x20] sm:$0xff]  ;;  %422 = vmatpush.msra.mxu0 %v2512_v22 }
 0x301   :  { %v288_v32 = vsel %vm275_vm6, %v271_v31, 0.0  ;;  %v2525_v31 = vld [vmem:[%s3284_s13 + $0x18] sm:$0xff]  ;;  %775 = vmatpush.msra.mxu3 %v2512_v22 }
 0x302   :  { %v297_v43 = vsel %vm275_vm6, %v274_v42, 0.0  ;;  %423 = vmatpush.msra.mxu0 %v2519_v24 }
 0x303   :  { %776 = vmatpush.msra.mxu3 %v2519_v24 }
 0x304   :  { %295 = vadd.xlane.f32.xlu1 %v294_v26  ;;  %424 = vmatpush.msra.mxu0 %v2525_v31 }
 0x305   :  { %292 = vadd.xlane.f32.xlu0 %v291_v27  ;;  %777 = vmatpush.msra.mxu3 %v2525_v31 }
 0x306   :  { %286 = vadd.xlane.f32.xlu2 %v285_v29 }
 0x30e   :  { %289 = vadd.xlane.f32.xlu2 %v288_v32 }
 0x316   :  { %298 = vadd.xlane.f32.xlu2 %v297_v43 }
 0x36f   :  { %v284_v47 = vpop.xlane.xlu1 %283 }
 0x370   :  { %v281_v49 = vpop.xlane.xlu0 %280  ;;  %v303_v8 = vsel %vm300_vm7, %v284_v47, -inf }
 0x371   :  { %v278_v44 = vpop.xlane.xlu2 %277  ;;  %v302_v11 = vsel %vm300_vm7, %v281_v49, -inf }
 0x372   :  { %v301_v60 = vsel %vm300_vm7, %v278_v44, -inf }
 0x377   :  { %v296_v55 = vpop.xlane.xlu1 %295 }
 0x378   :  { %v293_v56 = vpop.xlane.xlu0 %292  ;;  %v309_v61 = vsel %vm300_vm7, %v296_v55, -inf }
 0x379   :  { %v287_v45 = vpop.xlane.xlu2 %286  ;;  %v307_v62 = vsel %vm300_vm7, %v293_v56, -inf  ;;  %v310_v15 = vmax.f32 %v303_v8, %v309_v61 }
 0x37a   :  { %v304_v13 = vsel %vm300_vm7, %v287_v45, -inf  ;;  %v308_v16 = vmax.f32 %v302_v11, %v307_v62 }
 0x381   :  { %v290_v53 = vpop.xlane.xlu2 %289 }
 0x382   :  { %v305_v57 = vsel %vm300_vm7, %v290_v53, -inf }
 0x383   :  { %v306_v2 = vmax.f32 %v301_v60, %v305_v57  ;;  %v2546_v60 = vld [vmem:[%s3284_s13] sm:$0xff] }
 0x385   :  { %v313_v20 = vmax.f32 %v306_v2, %v308_v16 }
 0x389   :  { %v299_v7 = vpop.xlane.xlu2 %298 }
 0x38a   :  { %v311_v14 = vsel %vm300_vm7, %v299_v7, -inf }
 0x38b   :  { %v312_v17 = vmax.f32 %v304_v13, %v311_v14 }
 0x38d   :  { %v314_v21 = vmax.f32 %v310_v15, %v312_v17 }
 0x38f   :  { %v315_v23 = vmax.f32 %v313_v20, %v314_v21 }
 0x391   :  { %v316_v26 = vsub.f32 %v278_v44, %v315_v23  ;;  %v317_v27 = vsub.f32 %v281_v49, %v315_v23  ;;  %v318_v28 = vsub.f32 %v284_v47, %v315_v23  ;;  %v319_v29 = vsub.f32 %v287_v45, %v315_v23  ;;  %v2532_v45 = vld [vmem:[%s3284_s13 + $0x10] sm:$0xff] }
 0x392   :  { %v320_v30 = vsub.f32 %v290_v53, %v315_v23  ;;  %v321_v43 = vsub.f32 %v293_v56, %v315_v23  ;;  %v322_v47 = vsub.f32 %v296_v55, %v315_v23  ;;  %v2539_v53 = vld [vmem:[%s3284_s13 + $0x8] sm:$0xff]  ;;  %425 = vmatpush.msra.mxu0 %v2532_v45  ;;  %v323_v56 = vsub.f32 %v299_v7, %v315_v23 }
 0x393   :  { %v324_v32 = vmul.f32 1.442695, %v316_v26  ;;  %v326_v41 = vmul.f32 1.442695, %v317_v27  ;;  %v328_v42 = vmul.f32 1.442695, %v318_v28  ;;  %778 = vmatpush.msra.mxu3 %v2532_v45 }
 0x394   :  { %v330_v44 = vmul.f32 1.442695, %v319_v29  ;;  %v332_v49 = vmul.f32 1.442695, %v320_v30  ;;  %v334_v57 = vmul.f32 1.442695, %v321_v43  ;;  %426 = vmatpush.msra.mxu0 %v2539_v53 }
 0x395   :  { %1920 = vpow2.f32 %v324_v32  ;;  %v336_v55 = vmul.f32 1.442695, %v322_v47  ;;  %779 = vmatpush.msra.mxu3 %v2539_v53  ;;  %v338_v2 = vmul.f32 1.442695, %v323_v56  ;;  %v2569_v56 = vld [vmem:[%s3274_s3 + $0x2] sm:$0x3] }
 0x396   :  { %1922 = vpow2.f32 %v326_v41  ;;  %427 = vmatpush.msra.mxu0 %v2546_v60 }
 0x397   :  { %1924 = vpow2.f32 %v328_v42  ;;  %780 = vmatpush.msra.mxu3 %v2546_v60 }
 0x398   :  { %1926 = vpow2.f32 %v330_v44 }
 0x399   :  { %1928 = vpow2.f32 %v332_v49  ;;  %v2564_v49 = vld [vmem:[%s3274_s3] sm:$0x3] }
 0x39a   :  { %1930 = vpow2.f32 %v334_v57  ;;  %v2574_v57 = vld [vmem:[%s3274_s3 + $0x4] sm:$0x3] }
 0x39b   :  { %v1921_v61 = vpop.eup %1920  ;;  %1932 = vpow2.f32 %v336_v55 }
 0x39c   :  { %v1923_v62 = vpop.eup %1922  ;;  %v340_v7 = vsel %vm300_vm7, %v1921_v61, 0.0  ;;  %1934 = vpow2.f32 %v338_v2 }
 0x39d   :  { %v1925_v8 = vpop.eup %1924  ;;  %v341_v11 = vsel %vm300_vm7, %v1923_v62, 0.0 }
 0x39e   :  { %v1927_v13 = vpop.eup %1926  ;;  %v342_v14 = vadd.f32 %v341_v11, %v340_v7  ;;  %v343_v15 = vsel %vm300_vm7, %v1925_v8, 0.0 }
 0x39f   :  { %v1929_v16 = vpop.eup %1928  ;;  %v345_v20 = vsel %vm300_vm7, %v1927_v13, 0.0 }
 0x3a0   :  { %v344_v17 = vadd.f32 %v343_v15, %v342_v14  ;;  %v1931_v21 = vpop.eup %1930  ;;  %v347_v26 = vsel %vm300_vm7, %v1929_v16, 0.0  ;;  %v2579_v14 = vld [vmem:[%s3274_s3 + $0x6] sm:$0x3] }
 0x3a1   :  { %v1933_v27 = vpop.eup %1932  ;;  %v349_v29 = vsel %vm300_vm7, %v1931_v21, 0.0 }
 0x3a2   :  { %v346_v23 = vadd.f32 %v345_v20, %v344_v17  ;;  %v1935_v30 = vpop.eup %1934  ;;  %v351_v41 = vsel %vm300_vm7, %v1933_v27, 0.0 }
 0x3a3   :  { %v353_v43 = vsel %vm300_vm7, %v1935_v30, 0.0 }
 0x3a4   :  { %v348_v28 = vadd.f32 %v347_v26, %v346_v23 }
 0x3a6   :  { %v350_v32 = vadd.f32 %v349_v29, %v348_v28 }
 0x3a8   :  { %v352_v42 = vadd.f32 %v351_v41, %v350_v32 }
 0x3aa   :  { %v354_v44 = vadd.f32 %v353_v43, %v352_v42 }
 0x3ac   :  { %1936 = vrcp.f32 %v354_v44 }
 0x3b2   :  { %v1937_v47 = vpop.eup %1936 }
 0x3b3   :  { %v356_v55 = vmul.f32 %v1937_v47, %v1921_v61  ;;  %v357_v2 = vmul.f32 %v1937_v47, %v1923_v62  ;;  %v358_v7 = vmul.f32 %v1937_v47, %v1925_v8  ;;  %v359_v11 = vmul.f32 %v1937_v47, %v1927_v13  ;;  %v2587_v61 = vld [vmem:[%s3274_s3 + $0x8] sm:$0x3] }
 0x3b4   :  { %v360_v15 = vmul.f32 %v1937_v47, %v1929_v16  ;;  %v361_v62 = vmul.f32 %v1937_v47, %v1931_v21  ;;  %v2595_v16 = vld [vmem:[%s3274_s3 + $0xa] sm:$0x3]  ;;  %v362_v29 = vmul.f32 %v1937_v47, %v1933_v27  ;;  %v2602_v21 = vld [vmem:[%s3274_s3 + $0xc] sm:$0x3]  ;;  %v363_v43 = vmul.f32 %v1937_v47, %v1935_v30 }
 0x3b5   :  { %v364_v17 = vmul.f32 %v356_v55, %v2564_v49  ;;  %v365_v20 = vmul.f32 %v357_v2, %v2569_v56  ;;  %v366_v23 = vmul.f32 %v358_v7, %v2574_v57  ;;  %v367_v8 = vmul.f32 %v359_v11, %v2579_v14  ;;  %v2609_v2 = vld [vmem:[%s3274_s3 + $0xe] sm:$0x3] }
 0x3b6   :  { %v368_v32 = vmul.f32 %v360_v15, %v2587_v61  ;;  %v369_v44 = vmul.f32 %v361_v62, %v2595_v16  ;;  %v370_v7 = vmul.f32 %v362_v29, %v2602_v21 }
 0x3b7   :  { %v373_v13 = vsel %vm372_vm8, %v364_v17, 0.0  ;;  %v374_v26 = vsel %vm372_vm8, %v365_v20, 0.0  ;;  %v376_v41 = vsel %vm372_vm8, %v366_v23, 0.0  ;;  %v378_v55 = vsel %vm372_vm8, %v367_v8, 0.0 }
 0x3b8   :  { %v375_v28 = vadd.f32 %v374_v26, %v373_v13  ;;  %v380_v11 = vsel %vm372_vm8, %v368_v32, 0.0  ;;  %v371_v17 = vmul.f32 %v363_v43, %v2609_v2  ;;  %v382_v20 = vsel %vm372_vm8, %v369_v44, 0.0  ;;  %v2621_v13 = vld [vmem:[%s3286_s15] ss:$0 sm:$0xff]  ;;  %v405_v26 = vpop.f32.mrf.mxu3 }
 0x3b9   :  { %v384_v47 = vsel %vm372_vm8, %v370_v7, 0.0  ;;  %v438_v44 = vlaneseq }
 0x3ba   :  { %v377_v42 = vadd.f32 %v376_v41, %v375_v28  ;;  %v386_v62 = vsel %vm372_vm8, %v371_v17, 0.0 }
 0x3bc   :  { %v379_v27 = vadd.f32 %v378_v55, %v377_v42  ;;  %v2631_v55 = vand.u32 127, %v438_v44 }
 0x3be   :  { %v381_v15 = vadd.f32 %v380_v11, %v379_v27 }
 0x3c0   :  { %v383_v30 = vadd.f32 %v382_v20, %v381_v15  ;;  %v541_v42 = vpop.f32.mrf.mxu3  ;;  %v2188_v20 = vmov 0.0  }
 0x3c1   :  { %v2627_v43 = vadd.f32 %v2336_v9, %v541_v42  ;;  %v2638_v9 = vld [vmem:[%s3276_s5 + $0x18] sm:$0x1f]  ;;  %123 = vst.msk [vmem:[#allocation5] sm:$0x3] %vm122_vm10, %v2188_v20 }
 0x3c2   :  { %v385_v23 = vadd.f32 %v384_v47, %v383_v30  ;;  %1843 = vmatpush.msk.msra.mxu1 %vm467_vm12, %v2638_v9  ;;  %1854 = vmatpush.msk.msrb.mxu0 %vm467_vm12, %v2638_v9 }
 0x3c3   :  { %1865 = vmatpush.msk.msrb.mxu3 %vm467_vm12, %v2638_v9 }
 0x3c4   :  { %v387_v8 = vadd.f32 %v386_v62, %v385_v23 }
 0x3c6   :  { %1841 = vmatmul.msk.f32.vlgmr.msra.gmra.mxu0 %vm408_vm9, %v387_v8  ;;  %v2651_v8 = vld [vmem:[%s3276_s5 + $0x10] sm:$0xff] }
 0x3c7   :  { %484 = vmatpush.msra.mxu1 %v2651_v8  ;;  %827 = vmatpush.msrb.mxu0 %v2651_v8 }
 0x3c8   :  { %1170 = vmatpush.msrb.mxu3 %v2651_v8 }
 0x443   :  { %v429_v28 = vpop.f32.mrf.mxu0 }
 0x444   :  { %v430_v29 = vadd.f32 %v429_v28, %v405_v26  ;;  %v2656_v26 = vld [vmem:[%s3276_s5 + $0x8] sm:$0xff]  ;;  %v2663_v28 = vld [vmem:[%s3276_s5] sm:$0xff]  ;;  %s1845_s5 = sld [smem:[#allocation2 + $0x1]] }
 0x445   :  { %485 = vmatpush.msra.mxu1 %v2656_v26  ;;  %828 = vmatpush.msrb.mxu0 %v2656_v26 }
 0x446   :  { %v435_v32 = vadd.f32 %v2621_v13, %v430_v29  ;;  %1171 = vmatpush.msrb.mxu3 %v2656_v26 }
 0x447   :  { %486 = vmatpush.msra.mxu1 %v2663_v28  ;;  %829 = vmatpush.msrb.mxu0 %v2663_v28 }
 0x448   :  { %437 = vst.msk [vmem:[#allocation5 + $0x2] sm:$0x3] %vm122_vm10, %v435_v32  ;;  %v440_v41 = vsel %vm122_vm10, %v435_v32, -inf  ;;  %1172 = vmatpush.msrb.mxu3 %v2663_v28 }
 0x449   :  { %441 = vmax.xlane.f32.xlu0 %v440_v41  ;;  %600 = vmatpush.msrb.mxu1 %v2352_v33 }
 0x44a   :  { %943 = vmatpush.msra.mxu0 %v2352_v33  ;;  %s492_s24 = scvt.s32.f32 %s1845_s5 }
 0x44b   :  { %601 = vmatpush.msrb.mxu1 %v2362_v35 }
 0x44c   :  { %944 = vmatpush.msra.mxu0 %v2362_v35  ;;  %s497_s25 = ssub.f32 1.0, %s492_s24  ;;  %v1846_v35 = vld [vmem:[%s3295_s22 + $0x2] sm:$0x3] }
 0x44d   :  { %602 = vmatpush.msrb.mxu1 %v2374_v37 }
 0x44e   :  { %945 = vmatpush.msra.mxu0 %v2374_v37  ;;  %v495_v37 = vstv %s492_s24 }
 0x44f   :  { %603 = vmatpush.msrb.mxu1 %v2386_v39 }
 0x450   :  { %946 = vmatpush.msra.mxu0 %v2386_v39  ;;  %v498_v39 = vstv %s497_s25 }
 0x45d   :  { %565 = vrot.lane.b32.xlu0 %v2627_v43, %s2185_s1 }
 0x4bc   :  { %v442_v27 = vpop.xlane.xlu0 %441 }
 0x4bd   :  { %vm443_vm11 = vcmp.eq.f32.partialorder %v435_v32, %v442_v27  ;;  %v496_v27 = vmul.f32 %v1846_v35, %v495_v37 }
 0x4be   :  { %v444_v7 = vsel %vm443_vm11, %v2631_v55, 29 }
 0x4bf   :  { %v445_v11 = vsel %vm122_vm10, %v444_v7, 2147483647 }
 0x4c0   :  { %v447_v15 = vshra.s32 %v445_v11, 16  ;;  %v446_v30 = vand.u32 65535, %v445_v11 }
 0x4c2   :  { %v449_v17 = vcvt.s32.f32 %v447_v15  ;;  %v448_v23 = vcvt.s32.f32 %v446_v30 }
 0x4c4   :  { %450 = vmin.xlane.f32.xlu1 %v449_v17 }
 0x537   :  { %v451_v47 = vpop.xlane.xlu1 %450 }
 0x538   :  { %vm452_vm13 = vcmp.eq.f32.partialorder %v449_v17, %v451_v47  ;;  %v457_v29 = vcvt.f32.s32 %v451_v47 }
 0x539   :  { %v453_v62 = vsel %vm452_vm13, %v448_v23, inf }
 0x53a   :  { %454 = vmin.xlane.f32.xlu2 %v453_v62  ;;  %v458_v41 = vshll.u32 %v457_v29, 16 }
 0x5ad   :  { %v455_v32 = vpop.xlane.xlu2 %454 }
 0x5ae   :  { %v456_v42 = vcvt.f32.s32 %v455_v32 }
 0x5b0   :  { %v459_v44 = vadd.s32 %v458_v41, %v456_v42 }
 0x5b2   :  { %vm460_vm15 = vcmp.eq.s32.totalorder %v2631_v55, %v459_v44 }
 0x5b3   :  { %v1842_v33 = vsel %vm460_vm15, 1.0, %v2188_v20 }
 0x5b4   :  { %1844 = vmatmul.msk.f32.vlgmr.msra.gmra.mxu1 %vm463_vm14, %v1842_v33 }
 0x5b5   :  { %861 = vmatpush.msra.mxu1 %v2292_v0 }
 0x5b7   :  { %862 = vmatpush.msra.mxu1 %v2297_v1 }
 0x631   :  { %v488_v7 = vpop.f32.mrf.mxu1 }
 0x632   :  { %v499_v11 = vmul.f32 %v498_v39, %v488_v7 }
 0x634   :  { %v500_v15 = vadd.f32 %v499_v11, %v496_v27 }
 0x636   :  { %1847 = vmatmul.msk.f32.vlgmr.msrb.gmra.mxu2 %vm127_vm0, %v500_v15 }
 0x637   :  { %879 = vmatpush.msrb.mxu2 %v2306_v3 }
 0x639   :  { %880 = vmatpush.msrb.mxu2 %v2313_v4 }
 0x63b   :  { %881 = vmatpush.msrb.mxu2 %v2319_v5 }
 0x63d   :  { %882 = vmatpush.msrb.mxu2 %v2325_v6 }
 0x6b9   :  { %v521_v0 = vpop.f32.mrf.mxu2 }
 0x6ba   :  { %v522_v1 = vadd.f32 %v2343_v12, %v521_v0  ;;  %v566_v12 = vpop.permute.xlu0 %565 }
 0x6bc   :  { %v544_v17 = vadd.f32 %v2627_v43, %v522_v1 }
 0x6be   :  { %v1849_v30 = vmul.f32 -1.442695, %v544_v17 }
 0x6c0   :  { %1938 = vpow2.f32 %v1849_v30 }
 0x6c6   :  { %v1939_v47 = vpop.eup %1938 }
 0x6c7   :  { %v548_v23 = vadd.f32 1.0, %v1939_v47 }
 0x6c9   :  { %1940 = vrcp.f32 %v548_v23  ;;  %v560_v3 = vand.u32 2147483648, %v548_v23  ;;  %v558_v4 = vand.u32 2147483647, %v548_v23  ;;  %vm554_vm3 = vweird.f32 %v548_v23 }
 0x6cb   :  { %v561_v6 = vor.u32 1.1754944e-38, %v560_v3  ;;  %vm559_vm5 = vcmp.eq.f32.partialorder %v558_v4, 8.507059e+37 }
 0x6cf   :  { %v1941_v62 = vpop.eup %1940 }
 0x6d0   :  { %v550_v29 = vmul.f32 %v1941_v62, %v548_v23  ;;  %vm555_vm2 = vweird.f32 %v1941_v62 }
 0x6d1   :  { %vm556_vm4 = vmor %vm554_vm3, %vm555_vm2 }
 0x6d2   :  { %v551_v32 = vsub.f32 1.0, %v550_v29 }
 0x6d4   :  { %v552_v41 = vmul.f32 %v1941_v62, %v551_v32 }
 0x6d6   :  { %v553_v5 = vadd.f32 %v1941_v62, %v552_v41 }
 0x6d8   :  { %v557_v42 = vsel %vm556_vm4, %v1941_v62, %v553_v5 }
 0x6d9   :  { %v562_v43 = vsel %vm559_vm5, %v561_v6, %v557_v42 }
 0x6da   :  { %v568_v44 = vmul.f32 %v566_v12, %v562_v43  ;;  %v575_v39 = vsub.f32 1.0, %v562_v43  ;;  %v581_v7 = vmul.f32 %v562_v43, %v2403_v46 }
 0x6dc   :  { %570 = vrot.lane.b32.xlu1 %v568_v44, %s2185_s1 }
 0x74e   :  { %v571_v33 = vpop.permute.xlu1 %570 }
 0x74f   :  { %v573_v35 = vadd.f32 %v571_v33, %v522_v1 }
 0x751   :  { %1942 = vtanh.f32 %v573_v35 }
 0x757   :  { %v1943_v37 = vpop.eup %1942 }
 0x758   :  { %577 = vrot.lane.b32.xlu2 %v1943_v37, %s2186_s2 }
 0x7b2   :  { %v578_v27 = vpop.permute.xlu2 %577 }
 0x7b3   :  { %v580_v11 = vmul.f32 %v578_v27, %v575_v39 }
 0x7b5   :  { %v2698_v15 = vadd.f32 %v581_v7, %v580_v11 }
 0x7b7   :  { %584 = vrot.lane.b32.xlu0 %v2698_v15, %s2186_s2 }
 0x829   :  { %v585_v0 = vpop.permute.xlu0 %584 }
 0x82a   :  { %1850 = vmatmul.msk.f32.vlgmr.msrb.gmra.mxu1 %vm154_vm1, %v585_v0  ;;  %1851 = vmatmul.msk.f32.vlgmr.msra.gmra.mxu2 %vm154_vm1, %v585_v0 }
 0x82b   :  { %1097 = vmatpush.msrb.mxu1 %v2357_v34  ;;  %1116 = vmatpush.msra.mxu2 %v2500_v18 }
 0x82d   :  { %1098 = vmatpush.msrb.mxu1 %v2369_v36  ;;  %1117 = vmatpush.msra.mxu2 %v2505_v19 }
 0x82f   :  { %1099 = vmatpush.msrb.mxu1 %v2379_v38  ;;  %1118 = vmatpush.msra.mxu2 %v2512_v22 }
 0x831   :  { %1100 = vmatpush.msrb.mxu1 %v2391_v40  ;;  %1119 = vmatpush.msra.mxu2 %v2519_v24 }
 0x832   :  { %1859 = vmatmul.msk.f32.vlgmr.msrb.gmra.mxu2 %vm154_vm1, %v585_v0 }
 0x833   :  { %1120 = vmatpush.msra.mxu2 %v2525_v31 }
 0x835   :  { %1121 = vmatpush.msra.mxu2 %v2532_v45 }
 0x837   :  { %1122 = vmatpush.msra.mxu2 %v2539_v53 }
 0x839   :  { %1123 = vmatpush.msra.mxu2 %v2546_v60 }
 0x83b   :  { %1876 = vmatpush.msk.msrb.mxu2 %vm467_vm12, %v2638_v9 }
 0x83d   :  { %1513 = vmatpush.msrb.mxu2 %v2651_v8 }
 0x83f   :  { %1514 = vmatpush.msrb.mxu2 %v2656_v26 }
 0x841   :  { %1515 = vmatpush.msrb.mxu2 %v2663_v28 }
 0x8a7   :  { %v605_v34 = vpop.f32.mrf.mxu1 }
 0x8a8   :  { %v606_v36 = vadd.f32 %v2417_v48, %v605_v34 }
 0x8aa   :  { %v610_v38 = vadd.f32 %v606_v36, %v2422_v50  ;;  %v609_v40 = vadd.f32 %v606_v36, %v2427_v51  ;;  %v608_v46 = vadd.f32 %v606_v36, %v2432_v52  ;;  %v613_v1 = vadd.f32 %v606_v36, %v2446_v58 }
 0x8ab   :  { %v612_v9 = vadd.f32 %v606_v36, %v2465_v10  ;;  %v611_v8 = vadd.f32 %v606_v36, %v2451_v59  ;;  %v615_v17 = vadd.f32 %v606_v36, %v2479_v25  ;;  %v614_v30 = vadd.f32 %v606_v36, %v2438_v54 }
 0x8ac   :  { %1944 = vtanh.f32 %v610_v38 }
 0x8ad   :  { %1946 = vtanh.f32 %v609_v40 }
 0x8ae   :  { %1948 = vtanh.f32 %v608_v46 }
 0x8af   :  { %1950 = vtanh.f32 %v613_v1 }
 0x8b0   :  { %1952 = vtanh.f32 %v612_v9 }
 0x8b1   :  { %1954 = vtanh.f32 %v611_v8 }
 0x8b2   :  { %v1945_v26 = vpop.eup %1944  ;;  %1956 = vtanh.f32 %v615_v17 }
 0x8b3   :  { %v1947_v48 = vpop.eup %1946  ;;  %v626_v50 = vmul.f32 %v1945_v26, %v2459_v63  ;;  %1958 = vtanh.f32 %v614_v30 }
 0x8b4   :  { %v1949_v28 = vpop.eup %1948  ;;  %v625_v51 = vmul.f32 %v1947_v48, %v2459_v63 }
 0x8b5   :  { %v638_v52 = vsel %vm275_vm6, %v626_v50, 0.0  ;;  %v624_v58 = vmul.f32 %v1949_v28, %v2459_v63  ;;  %v1951_v10 = vpop.eup %1950 }
 0x8b6   :  { %639 = vadd.xlane.f32.xlu2 %v638_v52  ;;  %v635_v59 = vsel %vm275_vm6, %v625_v51, 0.0  ;;  %v1953_v47 = vpop.eup %1952  ;;  %v629_v29 = vmul.f32 %v1951_v10, %v2459_v63 }
 0x8b7   :  { %636 = vadd.xlane.f32.xlu0 %v635_v59  ;;  %v632_v23 = vsel %vm275_vm6, %v624_v58, 0.0  ;;  %v1955_v62 = vpop.eup %1954  ;;  %v628_v32 = vmul.f32 %v1953_v47, %v2459_v63 }
 0x8b8   :  { %633 = vadd.xlane.f32.xlu1 %v632_v23  ;;  %v627_v25 = vmul.f32 %v1955_v62, %v2459_v63  ;;  %v647_v3 = vsel %vm275_vm6, %v629_v29, 0.0  ;;  %v1957_v54 = vpop.eup %1956 }
 0x8b9   :  { %v644_v41 = vsel %vm275_vm6, %v628_v32, 0.0  ;;  %v1959_v5 = vpop.eup %1958  ;;  %v631_v6 = vmul.f32 %v1957_v54, %v2459_v63 }
 0x8ba   :  { %v641_v4 = vsel %vm275_vm6, %v627_v25, 0.0  ;;  %v630_v42 = vmul.f32 %v1959_v5, %v2459_v63 }
 0x8bb   :  { %v653_v12 = vsel %vm275_vm6, %v631_v6, 0.0 }
 0x8bc   :  { %v650_v43 = vsel %vm275_vm6, %v630_v42, 0.0 }
 0x8be   :  { %648 = vadd.xlane.f32.xlu2 %v647_v3 }
 0x8bf   :  { %645 = vadd.xlane.f32.xlu0 %v644_v41 }
 0x8c0   :  { %642 = vadd.xlane.f32.xlu1 %v641_v4 }
 0x8c7   :  { %654 = vadd.xlane.f32.xlu0 %v653_v12 }
 0x8c8   :  { %651 = vadd.xlane.f32.xlu1 %v650_v43 }
 0x929   :  { %v640_v33 = vpop.xlane.xlu2 %639 }
 0x92a   :  { %v637_v44 = vpop.xlane.xlu0 %636  ;;  %v658_v9 = vsel %vm300_vm7, %v640_v33, -inf }
 0x92b   :  { %v634_v35 = vpop.xlane.xlu1 %633  ;;  %v657_v0 = vsel %vm300_vm7, %v637_v44, -inf }
 0x92c   :  { %v656_v63 = vsel %vm300_vm7, %v634_v35, -inf }
 0x931   :  { %v649_v27 = vpop.xlane.xlu2 %648 }
 0x932   :  { %v646_v37 = vpop.xlane.xlu0 %645  ;;  %v662_v7 = vsel %vm300_vm7, %v649_v27, -inf }
 0x933   :  { %v643_v39 = vpop.xlane.xlu1 %642  ;;  %v660_v11 = vsel %vm300_vm7, %v646_v37, -inf  ;;  %v663_v36 = vmax.f32 %v657_v0, %v662_v7 }
 0x934   :  { %v661_v38 = vmax.f32 %v656_v63, %v660_v11  ;;  %v659_v40 = vsel %vm300_vm7, %v643_v39, -inf }
 0x936   :  { %v668_v50 = vmax.f32 %v661_v38, %v663_v36 }
 0x93a   :  { %v655_v34 = vpop.xlane.xlu0 %654 }
 0x93b   :  { %v666_v46 = vsel %vm300_vm7, %v655_v34, -inf  ;;  %v652_v1 = vpop.xlane.xlu1 %651 }
 0x93c   :  { %v667_v8 = vmax.f32 %v659_v40, %v666_v46  ;;  %v664_v26 = vsel %vm300_vm7, %v652_v1, -inf }
 0x93d   :  { %v665_v48 = vmax.f32 %v658_v9, %v664_v26 }
 0x93f   :  { %v669_v28 = vmax.f32 %v665_v48, %v667_v8 }
 0x941   :  { %v670_v51 = vmax.f32 %v668_v50, %v669_v28 }
 0x943   :  { %v671_v52 = vsub.f32 %v634_v35, %v670_v51  ;;  %v672_v58 = vsub.f32 %v637_v44, %v670_v51  ;;  %v673_v17 = vsub.f32 %v640_v33, %v670_v51  ;;  %v674_v10 = vsub.f32 %v643_v39, %v670_v51 }
 0x944   :  { %v675_v59 = vsub.f32 %v646_v37, %v670_v51  ;;  %v676_v62 = vsub.f32 %v649_v27, %v670_v51  ;;  %v677_v32 = vsub.f32 %v652_v1, %v670_v51  ;;  %v678_v3 = vsub.f32 %v655_v34, %v670_v51 }
 0x945   :  { %v679_v30 = vmul.f32 1.442695, %v671_v52  ;;  %v681_v47 = vmul.f32 1.442695, %v672_v58  ;;  %v683_v23 = vmul.f32 1.442695, %v673_v17 }
 0x946   :  { %v685_v29 = vmul.f32 1.442695, %v674_v10  ;;  %v687_v25 = vmul.f32 1.442695, %v675_v59  ;;  %v689_v41 = vmul.f32 1.442695, %v676_v62 }
 0x947   :  { %1960 = vpow2.f32 %v679_v30  ;;  %v691_v54 = vmul.f32 1.442695, %v677_v32  ;;  %v693_v6 = vmul.f32 1.442695, %v678_v3 }
 0x948   :  { %1962 = vpow2.f32 %v681_v47 }
 0x949   :  { %1964 = vpow2.f32 %v683_v23 }
 0x94a   :  { %1966 = vpow2.f32 %v685_v29 }
 0x94b   :  { %1968 = vpow2.f32 %v687_v25 }
 0x94c   :  { %1970 = vpow2.f32 %v689_v41 }
 0x94d   :  { %v1961_v4 = vpop.eup %1960  ;;  %1972 = vpow2.f32 %v691_v54 }
 0x94e   :  { %v1963_v5 = vpop.eup %1962  ;;  %v695_v42 = vsel %vm300_vm7, %v1961_v4, 0.0  ;;  %1974 = vpow2.f32 %v693_v6 }
 0x94f   :  { %v1965_v12 = vpop.eup %1964  ;;  %v696_v43 = vsel %vm300_vm7, %v1963_v5, 0.0 }
 0x950   :  { %v1967_v44 = vpop.eup %1966  ;;  %v697_v33 = vadd.f32 %v696_v43, %v695_v42  ;;  %v698_v35 = vsel %vm300_vm7, %v1965_v12, 0.0 }
 0x951   :  { %v1969_v37 = vpop.eup %1968  ;;  %v700_v27 = vsel %vm300_vm7, %v1967_v44, 0.0 }
 0x952   :  { %v699_v39 = vadd.f32 %v698_v35, %v697_v33  ;;  %v1971_v7 = vpop.eup %1970  ;;  %v702_v0 = vsel %vm300_vm7, %v1969_v37, 0.0  ;;  %v2801_v33 = vld [vmem:[%s3281_s10] sm:$0xff]  ;;  %v759_v35 = vpop.f32.mrf.mxu2 }
 0x953   :  { %v1973_v63 = vpop.eup %1972  ;;  %v704_v36 = vsel %vm300_vm7, %v1971_v7, 0.0 }
 0x954   :  { %v701_v11 = vadd.f32 %v700_v27, %v699_v39  ;;  %v1975_v38 = vpop.eup %1974  ;;  %v706_v46 = vsel %vm300_vm7, %v1973_v63, 0.0 }
 0x955   :  { %v708_v9 = vsel %vm300_vm7, %v1975_v38, 0.0 }
 0x956   :  { %v703_v34 = vadd.f32 %v702_v0, %v701_v11  ;;  %v2810_v0 = vld [vmem:[%s3280_s9] ss:$0 sm:$0xff] }
 0x958   :  { %v705_v40 = vadd.f32 %v704_v36, %v703_v34 }
 0x95a   :  { %v707_v1 = vadd.f32 %v706_v46, %v705_v40  ;;  %v884_v11 = vpop.f32.mrf.mxu2 }
 0x95c   :  { %v709_v8 = vadd.f32 %v708_v9, %v707_v1 }
 0x95e   :  { %1976 = vrcp.f32 %v709_v8 }
 0x964   :  { %v1977_v26 = vpop.eup %1976 }
 0x965   :  { %v711_v48 = vmul.f32 %v1977_v26, %v1961_v4  ;;  %v712_v50 = vmul.f32 %v1977_v26, %v1963_v5  ;;  %v713_v28 = vmul.f32 %v1977_v26, %v1965_v12  ;;  %v714_v51 = vmul.f32 %v1977_v26, %v1967_v44 }
 0x966   :  { %v715_v52 = vmul.f32 %v1977_v26, %v1969_v37  ;;  %v716_v59 = vmul.f32 %v1977_v26, %v1971_v7  ;;  %v717_v29 = vmul.f32 %v1977_v26, %v1973_v63  ;;  %v718_v41 = vmul.f32 %v1977_v26, %v1975_v38 }
 0x967   :  { %v719_v58 = vmul.f32 %v711_v48, %v2564_v49  ;;  %v720_v17 = vmul.f32 %v712_v50, %v2569_v56  ;;  %v721_v10 = vmul.f32 %v713_v28, %v2574_v57  ;;  %v722_v30 = vmul.f32 %v714_v51, %v2579_v14 }
 0x968   :  { %v723_v32 = vmul.f32 %v715_v52, %v2587_v61  ;;  %v724_v49 = vmul.f32 %v716_v59, %v2595_v16  ;;  %v725_v54 = vmul.f32 %v717_v29, %v2602_v21  ;;  %v726_v5 = vmul.f32 %v718_v41, %v2609_v2  ;;  %v2783_v16 = vld [vmem:[%s3281_s10 + $0x18] sm:$0xff]  ;;  %v2789_v21 = vld [vmem:[%s3281_s10 + $0x10] sm:$0xff]  ;;  %v2795_v2 = vld [vmem:[%s3281_s10 + $0x8] sm:$0xff] }
 0x969   :  { %v727_v47 = vsel %vm372_vm8, %v719_v58, 0.0  ;;  %v728_v23 = vsel %vm372_vm8, %v720_v17, 0.0  ;;  %v730_v25 = vsel %vm372_vm8, %v721_v10, 0.0  ;;  %v732_v56 = vsel %vm372_vm8, %v722_v30, 0.0  ;;  %v2822_v58 = vld [vmem:[%s3277_s6 + $0x8] sm:$0xff]  ;;  %v2828_v17 = vld [vmem:[%s3277_s6] sm:$0xff] }
 0x96a   :  { %v729_v62 = vadd.f32 %v728_v23, %v727_v47  ;;  %v734_v14 = vsel %vm372_vm8, %v723_v32, 0.0  ;;  %v736_v6 = vsel %vm372_vm8, %v724_v49, 0.0  ;;  %v738_v61 = vsel %vm372_vm8, %v725_v54, 0.0  ;;  %v1857_v10 = vld [vmem:[%s3295_s22 + $0x4] sm:$0x3]  ;;  %v2838_v32 = vld [vmem:[%s3278_s7 + $0x18] sm:$0xff] }
 0x96b   :  { %v740_v43 = vsel %vm372_vm8, %v726_v5, 0.0  ;;  %v885_v63 = vadd.f32 %v2810_v0, %v884_v11  ;;  %v838_v59 = vstv %s835_s28  ;;  %v841_v30 = vstv %s840_s29  ;;  %v2856_v41 = vld [vmem:[%s3278_s7] sm:$0xff]  ;;  %s1823_s6 = sshll.u32 %s3289_s18, 4  ;;  %s1824_s6 = int_to_ptr.hbm [resolvable:$true] %s1823_s6 }
 0x96c   :  { %v731_v3 = vadd.f32 %v730_v25, %v729_v62  ;;  %v839_v47 = vmul.f32 %v1857_v10, %v838_v59  ;;  %v2844_v25 = vld [vmem:[%s3278_s7 + $0x10] sm:$0xff]  ;;  %v2946_v59 = vld [vmem:[%s3275_s4 + $0x6] sm:$0x3] }
 0x96e   :  { %v733_v57 = vadd.f32 %v732_v56, %v731_v3  ;;  %v2850_v3 = vld [vmem:[%s3278_s7 + $0x8] sm:$0xff]  ;;  %v2862_v56 = vld [vmem:[%s3279_s8] ss:$0 sm:$0xff] }
 0x970   :  { %v735_v4 = vadd.f32 %v734_v14, %v733_v57 }
 0x972   :  { %v737_v42 = vadd.f32 %v736_v6, %v735_v4 }
 0x974   :  { %v739_v12 = vadd.f32 %v738_v61, %v737_v42 }
 0x976   :  { %v741_v44 = vadd.f32 %v740_v43, %v739_v12 }
 0x978   :  { %1852 = vmatmul.msk.f32.vlgmr.msra.gmra.mxu3 %vm408_vm9, %v741_v44 }
 0x979   :  { %1286 = vmatpush.msra.mxu3 %v2783_v16 }
 0x97b   :  { %1287 = vmatpush.msra.mxu3 %v2789_v21 }
 0x97d   :  { %1288 = vmatpush.msra.mxu3 %v2795_v2 }
 0x97f   :  { %1289 = vmatpush.msra.mxu3 %v2801_v33 }
 0x9fb   :  { %v782_v37 = vpop.f32.mrf.mxu3 }
 0x9fc   :  { %v783_v39 = vadd.f32 %v782_v37, %v759_v35 }
 0x9fe   :  { %v785_v27 = vadd.f32 %v2621_v13, %v783_v39 }
 0xa00   :  { %787 = vst.msk [vmem:[#allocation5 + $0x4] sm:$0x3] %vm122_vm10, %v785_v27  ;;  %v788_v7 = vsel %vm122_vm10, %v785_v27, -inf }
 0xa01   :  { %789 = vmax.xlane.f32.xlu2 %v788_v7 }
 0xa19   :  { %908 = vrot.lane.b32.xlu2 %v885_v63, %s2185_s1 }
 0xa74   :  { %v790_v34 = vpop.xlane.xlu2 %789 }
 0xa75   :  { %vm791_vm11 = vcmp.eq.f32.partialorder %v785_v27, %v790_v34 }
 0xa76   :  { %v792_v36 = vsel %vm791_vm11, %v2631_v55, 29 }
 0xa77   :  { %v793_v13 = vsel %vm122_vm10, %v792_v36, 2147483647 }
 0xa78   :  { %v795_v38 = vshra.s32 %v793_v13, 16  ;;  %v794_v46 = vand.u32 65535, %v793_v13 }
 0xa7a   :  { %v797_v40 = vcvt.s32.f32 %v795_v38  ;;  %v796_v9 = vcvt.s32.f32 %v794_v46 }
 0xa7c   :  { %798 = vmin.xlane.f32.xlu1 %v797_v40  ;;  %v909_v27 = vpop.permute.xlu2 %908 }
 0xaef   :  { %v799_v1 = vpop.xlane.xlu1 %798 }
 0xaf0   :  { %vm800_vm12 = vcmp.eq.f32.partialorder %v797_v40, %v799_v1  ;;  %v805_v26 = vcvt.f32.s32 %v799_v1 }
 0xaf1   :  { %v801_v8 = vsel %vm800_vm12, %v796_v9, inf }
 0xaf2   :  { %802 = vmin.xlane.f32.xlu0 %v801_v8  ;;  %v806_v50 = vshll.u32 %v805_v26, 16  ;;  %v2877_v8 = vld [vmem:[%s3285_s14 + $0x18] sm:$0xff]  ;;  %v2891_v26 = vld [vmem:[%s3285_s14 + $0x8] sm:$0xff] }
 0xb65   :  { %v803_v48 = vpop.xlane.xlu0 %802 }
 0xb66   :  { %v804_v28 = vcvt.f32.s32 %v803_v48 }
 0xb68   :  { %v807_v51 = vadd.s32 %v806_v50, %v804_v28  ;;  %v2934_v28 = vld [vmem:[%s3275_s4 + $0xa] sm:$0x3] }
 0xb6a   :  { %vm808_vm13 = vcmp.eq.s32.totalorder %v2631_v55, %v807_v51 }
 0xb6b   :  { %v1853_v52 = vsel %vm808_vm13, 1.0, %v2188_v20 }
 0xb6c   :  { %1855 = vmatmul.msk.f32.vlgmr.msrb.gmra.mxu0 %vm463_vm14, %v1853_v52  ;;  %v2940_v52 = vld [vmem:[%s3275_s4 + $0x8] sm:$0x3] }
 0xb6d   :  { %1204 = vmatpush.msrb.mxu0 %v2822_v58 }
 0xb6f   :  { %1205 = vmatpush.msrb.mxu0 %v2828_v17 }
 0xbe9   :  { %v831_v23 = vpop.f32.mrf.mxu0 }
 0xbea   :  { %v842_v62 = vmul.f32 %v841_v30, %v831_v23 }
 0xbec   :  { %v843_v29 = vadd.f32 %v842_v62, %v839_v47  ;;  %v2952_v62 = vld [vmem:[%s3283_s12] ss:$0 sm:$0xff] }
 0xbee   :  { %1858 = vmatmul.msk.f32.vlgmr.msra.gmra.mxu1 %vm127_vm0, %v843_v29 }
 0xbef   :  { %1222 = vmatpush.msra.mxu1 %v2838_v32 }
 0xbf1   :  { %1223 = vmatpush.msra.mxu1 %v2844_v25 }
 0xbf3   :  { %1224 = vmatpush.msra.mxu1 %v2850_v3 }
 0xbf5   :  { %1225 = vmatpush.msra.mxu1 %v2856_v41 }
 0xc6b   :  { %v864_v49 = vpop.f32.mrf.mxu1 }
 0xc6c   :  { %v865_v57 = vadd.f32 %v2862_v56, %v864_v49 }
 0xc6e   :  { %v887_v54 = vadd.f32 %v885_v63, %v865_v57 }
 0xc70   :  { %v1860_v14 = vmul.f32 -1.442695, %v887_v54 }
 0xc72   :  { %1978 = vpow2.f32 %v1860_v14 }
 0xc78   :  { %v1979_v4 = vpop.eup %1978 }
 0xc79   :  { %v891_v5 = vadd.f32 1.0, %v1979_v4  ;;  %v2961_v4 = vld [vmem:[%s3275_s4 + $0xe] sm:$0x3] }
 0xc7b   :  { %1980 = vrcp.f32 %v891_v5  ;;  %v903_v12 = vand.u32 2147483648, %v891_v5  ;;  %v901_v44 = vand.u32 2147483647, %v891_v5  ;;  %vm897_vm2 = vweird.f32 %v891_v5 }
 0xc7d   :  { %v904_v37 = vor.u32 1.1754944e-38, %v903_v12  ;;  %vm902_vm4 = vcmp.eq.f32.partialorder %v901_v44, 8.507059e+37 }
 0xc81   :  { %v1981_v6 = vpop.eup %1980 }
 0xc82   :  { %v893_v42 = vmul.f32 %v1981_v6, %v891_v5  ;;  %vm898_vm15 = vweird.f32 %v1981_v6 }
 0xc83   :  { %vm899_vm3 = vmor %vm897_vm2, %vm898_vm15 }
 0xc84   :  { %v894_v61 = vsub.f32 1.0, %v893_v42 }
 0xc86   :  { %v895_v43 = vmul.f32 %v1981_v6, %v894_v61  ;;  %v2968_v61 = vld [vmem:[%s3275_s4 + $0xc] sm:$0x3] }
 0xc88   :  { %v896_v35 = vadd.f32 %v1981_v6, %v895_v43 }
 0xc8a   :  { %v900_v39 = vsel %vm899_vm3, %v1981_v6, %v896_v35 }
 0xc8b   :  { %v905_v7 = vsel %vm902_vm4, %v904_v37, %v900_v39 }
 0xc8c   :  { %v911_v11 = vmul.f32 %v909_v27, %v905_v7  ;;  %v918_v13 = vsub.f32 1.0, %v905_v7  ;;  %v924_v40 = vmul.f32 %v905_v7, %v2698_v15  ;;  %v2884_v15 = vld [vmem:[%s3285_s14 + $0x10] sm:$0xff] }
 0xc8e   :  { %913 = vrot.lane.b32.xlu1 %v911_v11, %s2185_s1 }
 0xd00   :  { %v914_v63 = vpop.permute.xlu1 %913 }
 0xd01   :  { %v916_v34 = vadd.f32 %v914_v63, %v865_v57 }
 0xd03   :  { %1982 = vtanh.f32 %v916_v34 }
 0xd09   :  { %v1983_v36 = vpop.eup %1982 }
 0xd0a   :  { %920 = vrot.lane.b32.xlu0 %v1983_v36, %s2186_s2 }
 0xd7c   :  { %v921_v38 = vpop.permute.xlu0 %920 }
 0xd7d   :  { %v923_v46 = vmul.f32 %v921_v38, %v918_v13 }
 0xd7f   :  { %v2868_v1 = vadd.f32 %v924_v40, %v923_v46 }
 0xd81   :  { %927 = vrot.lane.b32.xlu2 %v2868_v1, %s2186_s2 }
 0xddb   :  { %v928_v9 = vpop.permute.xlu2 %927 }
 0xddc   :  { %1861 = vmatmul.msk.f32.vlgmr.msra.gmra.mxu0 %vm154_vm1, %v928_v9  ;;  %1862 = vmatmul.msk.f32.vlgmr.msrb.gmra.mxu1 %vm154_vm1, %v928_v9 }
 0xddd   :  { %1440 = vmatpush.msra.mxu0 %v2877_v8  ;;  %1459 = vmatpush.msrb.mxu1 %v2500_v18  ;;  %v2898_v18 = vld [vmem:[%s3285_s14] sm:$0xff]  ;;  %s2189_s14 = smov [#allocation5]  }
 0xdde   :  { %s1821_s16 = sshll.u32 %s2189_s14, 4  ;;  %s1822_s16 = int_to_ptr.vmem [resolvable:$true] %s1821_s16 }
 0xddf   :  { %1441 = vmatpush.msra.mxu0 %v2884_v15  ;;  %1460 = vmatpush.msrb.mxu1 %v2505_v19 }
 0xde1   :  { %1442 = vmatpush.msra.mxu0 %v2891_v26  ;;  %1461 = vmatpush.msrb.mxu1 %v2512_v22  ;;  %v2910_v22 = vld [vmem:[%s3282_s11] ss:$0 sm:$0xff] }
 0xde3   :  { %1443 = vmatpush.msra.mxu0 %v2898_v18  ;;  %1462 = vmatpush.msrb.mxu1 %v2519_v24  ;;  %v2916_v24 = vld [vmem:[%s3275_s4 + $0x4] sm:$0x3] }
 0xde4   :  { %1870 = vmatmul.msk.f32.vlgmr.msra.gmra.mxu1 %vm154_vm1, %v928_v9 }
 0xde5   :  { %1463 = vmatpush.msrb.mxu1 %v2525_v31 }
 0xde7   :  { %1464 = vmatpush.msrb.mxu1 %v2532_v45  ;;  %v2922_v45 = vld [vmem:[%s3275_s4 + $0x2] sm:$0x3] }
 0xde9   :  { %1465 = vmatpush.msrb.mxu1 %v2539_v53 }
 0xdeb   :  { %1466 = vmatpush.msrb.mxu1 %v2546_v60  ;;  %v2928_v60 = vld [vmem:[%s3275_s4] sm:$0x3] }
 0xe59   :  { %v948_v19 = vpop.f32.mrf.mxu0 }
 0xe5a   :  { %v949_v48 = vadd.f32 %v2910_v22, %v948_v19 }
 0xe5c   :  { %v953_v31 = vadd.f32 %v2916_v24, %v949_v48  ;;  %v952_v53 = vadd.f32 %v2922_v45, %v949_v48  ;;  %v951_v50 = vadd.f32 %v2928_v60, %v949_v48  ;;  %v956_v51 = vadd.f32 %v2934_v28, %v949_v48 }
 0xe5d   :  { %v955_v10 = vadd.f32 %v2940_v52, %v949_v48  ;;  %v954_v30 = vadd.f32 %v2946_v59, %v949_v48  ;;  %v958_v5 = vadd.f32 %v2961_v4, %v949_v48  ;;  %v957_v12 = vadd.f32 %v2968_v61, %v949_v48 }
 0xe5e   :  { %1984 = vtanh.f32 %v953_v31 }
 0xe5f   :  { %1986 = vtanh.f32 %v952_v53 }
 0xe60   :  { %1988 = vtanh.f32 %v951_v50 }
 0xe61   :  { %1990 = vtanh.f32 %v956_v51 }
 0xe62   :  { %1992 = vtanh.f32 %v955_v10 }
 0xe63   :  { %1994 = vtanh.f32 %v954_v30 }
 0xe64   :  { %v1985_v47 = vpop.eup %1984  ;;  %1996 = vtanh.f32 %v958_v5 }
 0xe65   :  { %v1987_v23 = vpop.eup %1986  ;;  %v969_v29 = vmul.f32 %v2952_v62, %v1985_v47  ;;  %1998 = vtanh.f32 %v957_v12 }
 0xe66   :  { %v1989_v49 = vpop.eup %1988  ;;  %v968_v57 = vmul.f32 %v2952_v62, %v1987_v23 }
 0xe67   :  { %v981_v54 = vsel %vm275_vm6, %v969_v29, 0.0  ;;  %v967_v14 = vmul.f32 %v2952_v62, %v1989_v49  ;;  %v1991_v6 = vpop.eup %1990 }
 0xe68   :  { %982 = vadd.xlane.f32.xlu2 %v981_v54  ;;  %v978_v42 = vsel %vm275_vm6, %v968_v57, 0.0  ;;  %v1993_v43 = vpop.eup %1992  ;;  %v972_v37 = vmul.f32 %v2952_v62, %v1991_v6 }
 0xe69   :  { %979 = vadd.xlane.f32.xlu1 %v978_v42  ;;  %v975_v44 = vsel %vm275_vm6, %v967_v14, 0.0  ;;  %v1995_v35 = vpop.eup %1994  ;;  %v971_v39 = vmul.f32 %v2952_v62, %v1993_v43 }
 0xe6a   :  { %976 = vadd.xlane.f32.xlu0 %v975_v44  ;;  %v970_v27 = vmul.f32 %v2952_v62, %v1995_v35  ;;  %v990_v7 = vsel %vm275_vm6, %v972_v37, 0.0  ;;  %v1997_v63 = vpop.eup %1996 }
 0xe6b   :  { %v987_v11 = vsel %vm275_vm6, %v971_v39, 0.0  ;;  %v1999_v36 = vpop.eup %1998  ;;  %v974_v13 = vmul.f32 %v2952_v62, %v1997_v63 }
 0xe6c   :  { %v984_v34 = vsel %vm275_vm6, %v970_v27, 0.0  ;;  %v973_v38 = vmul.f32 %v2952_v62, %v1999_v36 }
 0xe6d   :  { %v996_v40 = vsel %vm275_vm6, %v974_v13, 0.0 }
 0xe6e   :  { %v993_v46 = vsel %vm275_vm6, %v973_v38, 0.0 }
 0xe70   :  { %991 = vadd.xlane.f32.xlu2 %v990_v7 }
 0xe71   :  { %988 = vadd.xlane.f32.xlu1 %v987_v11 }
 0xe72   :  { %985 = vadd.xlane.f32.xlu0 %v984_v34 }
 0xe79   :  { %997 = vadd.xlane.f32.xlu1 %v996_v40 }
 0xe7a   :  { %994 = vadd.xlane.f32.xlu0 %v993_v46 }
 0xedb   :  { %v983_v19 = vpop.xlane.xlu2 %982 }
 0xedc   :  { %v980_v9 = vpop.xlane.xlu1 %979  ;;  %v1001_v5 = vsel %vm300_vm7, %v983_v19, -inf }
 0xedd   :  { %v977_v48 = vpop.xlane.xlu0 %976  ;;  %v1000_v30 = vsel %vm300_vm7, %v980_v9, -inf }
 0xede   :  { %v999_v47 = vsel %vm300_vm7, %v977_v48, -inf }
 0xee3   :  { %v992_v50 = vpop.xlane.xlu2 %991 }
 0xee4   :  { %v989_v31 = vpop.xlane.xlu1 %988  ;;  %v1005_v51 = vsel %vm300_vm7, %v992_v50, -inf }
 0xee5   :  { %v986_v53 = vpop.xlane.xlu0 %985  ;;  %v1003_v10 = vsel %vm300_vm7, %v989_v31, -inf  ;;  %v1006_v29 = vmax.f32 %v1000_v30, %v1005_v51 }
 0xee6   :  { %v1004_v49 = vmax.f32 %v999_v47, %v1003_v10  ;;  %v1002_v57 = vsel %vm300_vm7, %v986_v53, -inf }
 0xee8   :  { %v1011_v43 = vmax.f32 %v1004_v49, %v1006_v29 }
 0xeec   :  { %v998_v23 = vpop.xlane.xlu1 %997 }
 0xeed   :  { %v1009_v54 = vsel %vm300_vm7, %v998_v23, -inf  ;;  %v995_v14 = vpop.xlane.xlu0 %994 }
 0xeee   :  { %v1010_v6 = vmax.f32 %v1002_v57, %v1009_v54  ;;  %v1007_v42 = vsel %vm300_vm7, %v995_v14, -inf }
 0xeef   :  { %v1008_v12 = vmax.f32 %v1001_v5, %v1007_v42 }
 0xef1   :  { %v1012_v44 = vmax.f32 %v1008_v12, %v1010_v6 }
 0xef3   :  { %v1013_v35 = vmax.f32 %v1011_v43, %v1012_v44 }
 0xef5   :  { %v1014_v37 = vsub.f32 %v977_v48, %v1013_v35  ;;  %v1015_v39 = vsub.f32 %v980_v9, %v1013_v35  ;;  %v1016_v27 = vsub.f32 %v983_v19, %v1013_v35  ;;  %v1017_v7 = vsub.f32 %v986_v53, %v1013_v35 }
 0xef6   :  { %v1018_v11 = vsub.f32 %v989_v31, %v1013_v35  ;;  %v1019_v13 = vsub.f32 %v992_v50, %v1013_v35  ;;  %v1020_v40 = vsub.f32 %v995_v14, %v1013_v35  ;;  %v1021_v51 = vsub.f32 %v998_v23, %v1013_v35 }
 0xef7   :  { %v1022_v63 = vmul.f32 1.442695, %v1014_v37  ;;  %v1024_v34 = vmul.f32 1.442695, %v1015_v39  ;;  %v1026_v36 = vmul.f32 1.442695, %v1016_v27 }
 0xef8   :  { %v1028_v38 = vmul.f32 1.442695, %v1017_v7  ;;  %v1030_v46 = vmul.f32 1.442695, %v1018_v11  ;;  %v1032_v10 = vmul.f32 1.442695, %v1019_v13 }
 0xef9   :  { %2000 = vpow2.f32 %v1022_v63  ;;  %v1034_v30 = vmul.f32 1.442695, %v1020_v40  ;;  %v1036_v19 = vmul.f32 1.442695, %v1021_v51  ;;  %v3001_v40 = vld [vmem:[%s3274_s3] sm:$0x3] }
 0xefa   :  { %2002 = vpow2.f32 %v1024_v34  ;;  %v3007_v51 = vld [vmem:[%s3274_s3 + $0x2] sm:$0x3] }
 0xefb   :  { %2004 = vpow2.f32 %v1026_v36 }
 0xefc   :  { %2006 = vpow2.f32 %v1028_v38 }
 0xefd   :  { %2008 = vpow2.f32 %v1030_v46 }
 0xefe   :  { %2010 = vpow2.f32 %v1032_v10 }
 0xeff   :  { %v2001_v48 = vpop.eup %2000  ;;  %2012 = vpow2.f32 %v1034_v30  ;;  %v3013_v30 = vld [vmem:[%s3274_s3 + $0x4] sm:$0x3] }
 0xf00   :  { %v2003_v9 = vpop.eup %2002  ;;  %v1038_v31 = vsel %vm300_vm7, %v2001_v48, 0.0  ;;  %2014 = vpow2.f32 %v1036_v19  ;;  %v3019_v19 = vld [vmem:[%s3274_s3 + $0x6] sm:$0x3] }
 0xf01   :  { %v2005_v53 = vpop.eup %2004  ;;  %v1039_v50 = vsel %vm300_vm7, %v2003_v9, 0.0 }
 0xf02   :  { %v2007_v47 = vpop.eup %2006  ;;  %v1040_v29 = vadd.f32 %v1039_v50, %v1038_v31  ;;  %v1041_v49 = vsel %vm300_vm7, %v2005_v53, 0.0 }
 0xf03   :  { %v2009_v57 = vpop.eup %2008  ;;  %v1043_v54 = vsel %vm300_vm7, %v2007_v47, 0.0 }
 0xf04   :  { %v1042_v23 = vadd.f32 %v1041_v49, %v1040_v29  ;;  %v2011_v14 = vpop.eup %2010  ;;  %v1045_v6 = vsel %vm300_vm7, %v2009_v57, 0.0  ;;  %v3027_v49 = vld [vmem:[%s3274_s3 + $0x8] sm:$0x3] }
 0xf05   :  { %v2013_v42 = vpop.eup %2012  ;;  %v1047_v43 = vsel %vm300_vm7, %v2011_v14, 0.0 }
 0xf06   :  { %v1044_v5 = vadd.f32 %v1043_v54, %v1042_v23  ;;  %v2015_v44 = vpop.eup %2014  ;;  %v1049_v37 = vsel %vm300_vm7, %v2013_v42, 0.0 }
 0xf07   :  { %v1051_v27 = vsel %vm300_vm7, %v2015_v44, 0.0 }
 0xf08   :  { %v1046_v12 = vadd.f32 %v1045_v6, %v1044_v5  ;;  %v3034_v5 = vld [vmem:[%s3274_s3 + $0xa] sm:$0x3] }
 0xf0a   :  { %v1048_v35 = vadd.f32 %v1047_v43, %v1046_v12  ;;  %v3041_v43 = vld [vmem:[%s3274_s3 + $0xc] sm:$0x3] }
 0xf0c   :  { %v1050_v39 = vadd.f32 %v1049_v37, %v1048_v35 }
 0xf0e   :  { %v1052_v7 = vadd.f32 %v1051_v27, %v1050_v39  ;;  %v3048_v39 = vld [vmem:[%s3274_s3 + $0xe] sm:$0x3] }
 0xf10   :  { %2016 = vrcp.f32 %v1052_v7 }
 0xf16   :  { %v2017_v11 = vpop.eup %2016 }
 0xf17   :  { %v1054_v63 = vmul.f32 %v2017_v11, %v2001_v48  ;;  %v1055_v34 = vmul.f32 %v2017_v11, %v2003_v9  ;;  %v1056_v36 = vmul.f32 %v2017_v11, %v2005_v53  ;;  %v1057_v13 = vmul.f32 %v2017_v11, %v2007_v47 }
 0xf18   :  { %v1058_v38 = vmul.f32 %v2017_v11, %v2009_v57  ;;  %v1059_v9 = vmul.f32 %v2017_v11, %v2011_v14  ;;  %v1060_v29 = vmul.f32 %v2017_v11, %v2013_v42  ;;  %v1061_v14 = vmul.f32 %v2017_v11, %v2015_v44 }
 0xf19   :  { %v1062_v46 = vmul.f32 %v3001_v40, %v1054_v63  ;;  %v1063_v10 = vmul.f32 %v3007_v51, %v1055_v34  ;;  %v1064_v48 = vmul.f32 %v3013_v30, %v1056_v36  ;;  %v1065_v31 = vmul.f32 %v3019_v19, %v1057_v13 }
 0xf1a   :  { %v1066_v57 = vmul.f32 %v3027_v49, %v1058_v38  ;;  %v1067_v6 = vmul.f32 %v3034_v5, %v1059_v9  ;;  %v1068_v35 = vmul.f32 %v3041_v43, %v1060_v29  ;;  %v1069_v27 = vmul.f32 %v3048_v39, %v1061_v14  ;;  %v1102_v38 = vpop.f32.mrf.mxu1 }
 0xf1b   :  { %v1070_v53 = vsel %vm372_vm8, %v1062_v46, 0.0  ;;  %v1071_v50 = vsel %vm372_vm8, %v1063_v10, 0.0  ;;  %v1073_v23 = vsel %vm372_vm8, %v1064_v48, 0.0  ;;  %v1075_v42 = vsel %vm372_vm8, %v1065_v31, 0.0  ;;  %v3062_v48 = vld [vmem:[%s3286_s15] ss:$0 sm:$0xff] }
 0xf1c   :  { %v1072_v47 = vadd.f32 %v1071_v50, %v1070_v53  ;;  %v1077_v37 = vsel %vm372_vm8, %v1066_v57, 0.0  ;;  %v1079_v7 = vsel %vm372_vm8, %v1067_v6, 0.0  ;;  %v1081_v63 = vsel %vm372_vm8, %v1068_v35, 0.0  ;;  %s1867_s15 = sld [smem:[#allocation2 + $0x3]] }
 0xf1d   :  { %v1083_v36 = vsel %vm372_vm8, %v1069_v27, 0.0 }
 0xf1e   :  { %v1074_v54 = vadd.f32 %v1073_v23, %v1072_v47 }
 0xf20   :  { %v1076_v12 = vadd.f32 %v1075_v42, %v1074_v54 }
 0xf22   :  { %v1078_v44 = vadd.f32 %v1077_v37, %v1076_v12  ;;  %s1178_s29 = scvt.s32.f32 %s1867_s15  ;;  %v1868_v37 = vld [vmem:[%s3295_s22 + $0x6] sm:$0x3] }
 0xf24   :  { %v1080_v11 = vadd.f32 %v1079_v7, %v1078_v44  ;;  %s1183_s30 = ssub.f32 1.0, %s1178_s29  ;;  %v1181_v44 = vstv %s1178_s29 }
 0xf25   :  { %v1182_v7 = vmul.f32 %v1868_v37, %v1181_v44 }
 0xf26   :  { %v1082_v34 = vadd.f32 %v1081_v63, %v1080_v11  ;;  %v1184_v27 = vstv %s1183_s30 }
 0xf28   :  { %v1084_v13 = vadd.f32 %v1083_v36, %v1082_v34 }
 0xf2a   :  { %1863 = vmatmul.msk.f32.vlgmr.msra.gmra.mxu2 %vm408_vm9, %v1084_v13 }
 0xf2b   :  { %1629 = vmatpush.msra.mxu2 %v2783_v16 }
 0xf2d   :  { %1630 = vmatpush.msra.mxu2 %v2789_v21  ;;  %v1227_v21 = vpop.f32.mrf.mxu1 }
 0xf2f   :  { %1631 = vmatpush.msra.mxu2 %v2795_v2  ;;  %v1228_v2 = vadd.f32 %v2810_v0, %v1227_v21 }
 0xf31   :  { %1632 = vmatpush.msra.mxu2 %v2801_v33 }
 0xfad   :  { %v1125_v46 = vpop.f32.mrf.mxu2 }
 0xfae   :  { %v1126_v10 = vadd.f32 %v1125_v46, %v1102_v38 }
 0xfb0   :  { %v1128_v9 = vadd.f32 %v3062_v48, %v1126_v10 }
 0xfb2   :  { %1130 = vst.msk [vmem:[#allocation5 + $0x6] sm:$0x3] %vm122_vm10, %v1128_v9  ;;  %v1131_v16 = vsel %vm122_vm10, %v1128_v9, -inf }
 0xfb3   :  { %1132 = vmax.xlane.f32.xlu2 %v1131_v16 }
 0xfcb   :  { %1251 = vrot.lane.b32.xlu2 %v1228_v2, %s2185_s1 }
0x1026   :  { %v1133_v33 = vpop.xlane.xlu2 %1132 }
0x1027   :  { %vm1134_vm5 = vcmp.eq.f32.partialorder %v1128_v9, %v1133_v33 }
0x1028   :  { %v1135_v31 = vsel %vm1134_vm5, %v2631_v55, 29 }
0x1029   :  { %v1136_v53 = vsel %vm122_vm10, %v1135_v31, 2147483647 }
0x102a   :  { %v1138_v50 = vshra.s32 %v1136_v53, 16  ;;  %v1137_v29 = vand.u32 65535, %v1136_v53 }
0x102c   :  { %v1140_v47 = vcvt.s32.f32 %v1138_v50  ;;  %v1139_v23 = vcvt.s32.f32 %v1137_v29 }
0x102e   :  { %1141 = vmin.xlane.f32.xlu0 %v1140_v47  ;;  %v1252_v31 = vpop.permute.xlu2 %1251 }
0x10a1   :  { %v1142_v57 = vpop.xlane.xlu0 %1141 }
0x10a2   :  { %vm1143_vm11 = vcmp.eq.f32.partialorder %v1140_v47, %v1142_v57  ;;  %v1148_v14 = vcvt.f32.s32 %v1142_v57 }
0x10a3   :  { %v1144_v54 = vsel %vm1143_vm11, %v1139_v23, inf }
0x10a4   :  { %1145 = vmin.xlane.f32.xlu1 %v1144_v54  ;;  %v1149_v0 = vshll.u32 %v1148_v14, 16 }
0x1117   :  { %v1146_v6 = vpop.xlane.xlu1 %1145 }
0x1118   :  { %v1147_v42 = vcvt.f32.s32 %v1146_v6 }
0x111a   :  { %v1150_v12 = vadd.s32 %v1149_v0, %v1147_v42  ;;  %v2133_v42 = vld [vmem:[%s3284_s13 + $0x38] sm:$0xff] }
0x111c   :  { %vm1151_vm12 = vcmp.eq.s32.totalorder %v2631_v55, %v1150_v12  ;;  %v2135_v12 = vld [vmem:[%s3284_s13 + $0x28] sm:$0xff] }
0x111d   :  { %v1864_v35 = vsel %vm1151_vm12, 1.0, %v2188_v20 }
0x111e   :  { %1866 = vmatmul.msk.f32.vlgmr.msrb.gmra.mxu3 %vm463_vm14, %v1864_v35  ;;  %v2140_v35 = vld [vmem:[%s3284_s13] sm:$0xff] }
0x111f   :  { %1547 = vmatpush.msrb.mxu3 %v2822_v58 }
0x1121   :  { %1548 = vmatpush.msrb.mxu3 %v2828_v17 }
0x11a1   :  { %v1174_v11 = vpop.f32.mrf.mxu3 }
0x11a2   :  { %v1185_v63 = vmul.f32 %v1184_v27, %v1174_v11 }
0x11a4   :  { %v1186_v34 = vadd.f32 %v1185_v63, %v1182_v7 }
0x11a6   :  { %1869 = vmatmul.msk.f32.vlgmr.msrb.gmra.mxu0 %vm127_vm0, %v1186_v34 }
0x11a7   :  { %1565 = vmatpush.msrb.mxu0 %v2838_v32 }
0x11a9   :  { %1566 = vmatpush.msrb.mxu0 %v2844_v25 }
0x11ab   :  { %1567 = vmatpush.msrb.mxu0 %v2850_v3 }
0x11ad   :  { %1568 = vmatpush.msrb.mxu0 %v2856_v41 }
0x1223   :  { %v1207_v58 = vpop.f32.mrf.mxu0 }
0x1224   :  { %v1208_v17 = vadd.f32 %v2862_v56, %v1207_v58 }
0x1226   :  { %v1230_v36 = vadd.f32 %v1228_v2, %v1208_v17 }
0x1228   :  { %v1871_v13 = vmul.f32 -1.442695, %v1230_v36 }
0x122a   :  { %2018 = vpow2.f32 %v1871_v13 }
0x1230   :  { %v2019_v38 = vpop.eup %2018 }
0x1231   :  { %v1234_v46 = vadd.f32 1.0, %v2019_v38 }
0x1233   :  { %2020 = vrcp.f32 %v1234_v46  ;;  %v1246_v21 = vand.u32 2147483648, %v1234_v46  ;;  %v1244_v25 = vand.u32 2147483647, %v1234_v46  ;;  %vm1240_vm15 = vweird.f32 %v1234_v46 }
0x1235   :  { %v1247_v3 = vor.u32 1.1754944e-38, %v1246_v21  ;;  %vm1245_vm3 = vcmp.eq.f32.partialorder %v1244_v25, 8.507059e+37 }
0x1239   :  { %v2021_v10 = vpop.eup %2020 }
0x123a   :  { %v1236_v9 = vmul.f32 %v2021_v10, %v1234_v46  ;;  %vm1241_vm13 = vweird.f32 %v2021_v10 }
0x123b   :  { %vm1242_vm2 = vmor %vm1240_vm15, %vm1241_vm13 }
0x123c   :  { %v1237_v16 = vsub.f32 1.0, %v1236_v9 }
0x123e   :  { %v1238_v32 = vmul.f32 %v2021_v10, %v1237_v16 }
0x1240   :  { %v1239_v33 = vadd.f32 %v2021_v10, %v1238_v32 }
0x1242   :  { %v1243_v41 = vsel %vm1242_vm2, %v2021_v10, %v1239_v33 }
0x1243   :  { %v1248_v2 = vsel %vm1245_vm3, %v1247_v3, %v1243_v41 }
0x1244   :  { %v1254_v53 = vmul.f32 %v1252_v31, %v1248_v2  ;;  %v1261_v57 = vsub.f32 1.0, %v1248_v2  ;;  %v1267_v54 = vmul.f32 %v1248_v2, %v2868_v1  ;;  %v2134_v1 = vld [vmem:[%s3284_s13 + $0x30] sm:$0xff] }
0x1246   :  { %1256 = vrot.lane.b32.xlu0 %v1254_v53, %s2185_s1 }
0x12b8   :  { %v1257_v50 = vpop.permute.xlu0 %1256 }
0x12b9   :  { %v1259_v47 = vadd.f32 %v1257_v50, %v1208_v17 }
0x12bb   :  { %2022 = vtanh.f32 %v1259_v47 }
0x12c1   :  { %v2023_v29 = vpop.eup %2022 }
0x12c2   :  { %1263 = vrot.lane.b32.xlu1 %v2023_v29, %s2186_s2 }
0x1334   :  { %v1264_v23 = vpop.permute.xlu1 %1263 }
0x1335   :  { %v1266_v14 = vmul.f32 %v1264_v23, %v1261_v57 }
0x1337   :  { %v3088_v6 = vadd.f32 %v1267_v54, %v1266_v14 }
0x1339   :  { %1270 = vrot.lane.b32.xlu0 %v3088_v6, %s2186_s2 }
0x13ab   :  { %v1271_v0 = vpop.permute.xlu0 %1270 }
0x13ac   :  { %1872 = vmatmul.msk.f32.vlgmr.msra.gmra.mxu3 %vm154_vm1, %v1271_v0  ;;  %1873 = vmatmul.msk.f32.vlgmr.msra.gmra.mxu0 %vm154_vm1, %v1271_v0 }
0x13ad   :  { %1783 = vmatpush.msra.mxu3 %v2877_v8  ;;  %1802 = vmatpush.msra.mxu0 %v2133_v42  ;;  %v2136_v8 = vld [vmem:[%s3284_s13 + $0x20] sm:$0xff] }
0x13af   :  { %1784 = vmatpush.msra.mxu3 %v2884_v15  ;;  %1803 = vmatpush.msra.mxu0 %v2134_v1  ;;  %v2137_v15 = vld [vmem:[%s3284_s13 + $0x18] sm:$0xff] }
0x13b1   :  { %1785 = vmatpush.msra.mxu3 %v2891_v26  ;;  %1804 = vmatpush.msra.mxu0 %v2135_v12  ;;  %v2138_v26 = vld [vmem:[%s3284_s13 + $0x10] sm:$0xff] }
0x13b3   :  { %1786 = vmatpush.msra.mxu3 %v2898_v18  ;;  %1805 = vmatpush.msra.mxu0 %v2136_v8  ;;  %v2139_v18 = vld [vmem:[%s3284_s13 + $0x8] sm:$0xff] }
0x13b4   :  { %1881 = vmatmul.msk.f32.vlgmr.msrb.gmra.mxu0 %vm154_vm1, %v1271_v0 }
0x13b5   :  { %1806 = vmatpush.msra.mxu0 %v2137_v15 }
0x13b7   :  { %1807 = vmatpush.msra.mxu0 %v2138_v26 }
0x13b9   :  { %1808 = vmatpush.msra.mxu0 %v2139_v18 }
0x13bb   :  { %1809 = vmatpush.msra.mxu0 %v2140_v35 }
0x142f   :  { %v1291_v37 = vpop.f32.mrf.mxu3 }
0x1430   :  { %v1292_v44 = vadd.f32 %v2910_v22, %v1291_v37 }
0x1432   :  { %v1296_v27 = vadd.f32 %v2916_v24, %v1292_v44  ;;  %v1295_v7 = vadd.f32 %v2922_v45, %v1292_v44  ;;  %v1294_v11 = vadd.f32 %v2928_v60, %v1292_v44  ;;  %v1299_v63 = vadd.f32 %v2934_v28, %v1292_v44 }
0x1433   :  { %v1298_v34 = vadd.f32 %v2940_v52, %v1292_v44  ;;  %v1297_v58 = vadd.f32 %v2946_v59, %v1292_v44  ;;  %v1301_v9 = vadd.f32 %v2961_v4, %v1292_v44  ;;  %v1300_v32 = vadd.f32 %v2968_v61, %v1292_v44 }
0x1434   :  { %2024 = vtanh.f32 %v1296_v27 }
0x1435   :  { %2026 = vtanh.f32 %v1295_v7 }
0x1436   :  { %2028 = vtanh.f32 %v1294_v11 }
0x1437   :  { %2030 = vtanh.f32 %v1299_v63 }
0x1438   :  { %2032 = vtanh.f32 %v1298_v34 }
0x1439   :  { %2034 = vtanh.f32 %v1297_v58 }
0x143a   :  { %v2025_v17 = vpop.eup %2024  ;;  %2036 = vtanh.f32 %v1301_v9 }
0x143b   :  { %v2027_v36 = vpop.eup %2026  ;;  %v1312_v13 = vmul.f32 %v2952_v62, %v2025_v17  ;;  %2038 = vtanh.f32 %v1300_v32 }
0x143c   :  { %v2029_v38 = vpop.eup %2028  ;;  %v1311_v46 = vmul.f32 %v2952_v62, %v2027_v36 }
0x143d   :  { %v1324_v10 = vsel %vm275_vm6, %v1312_v13, 0.0  ;;  %v1310_v28 = vmul.f32 %v2952_v62, %v2029_v38  ;;  %v2031_v16 = vpop.eup %2030 }
0x143e   :  { %1325 = vadd.xlane.f32.xlu0 %v1324_v10  ;;  %v1321_v21 = vsel %vm275_vm6, %v1311_v46, 0.0  ;;  %v2033_v25 = vpop.eup %2032  ;;  %v1315_v41 = vmul.f32 %v2952_v62, %v2031_v16 }
0x143f   :  { %1322 = vadd.xlane.f32.xlu1 %v1321_v21  ;;  %v1318_v33 = vsel %vm275_vm6, %v1310_v28, 0.0  ;;  %v2035_v3 = vpop.eup %2034  ;;  %v1314_v31 = vmul.f32 %v2952_v62, %v2033_v25 }
0x1440   :  { %1319 = vadd.xlane.f32.xlu2 %v1318_v33  ;;  %v1313_v2 = vmul.f32 %v2952_v62, %v2035_v3  ;;  %v1333_v53 = vsel %vm275_vm6, %v1315_v41, 0.0  ;;  %v2037_v47 = vpop.eup %2036 }
0x1441   :  { %v1330_v50 = vsel %vm275_vm6, %v1314_v31, 0.0  ;;  %v2039_v57 = vpop.eup %2038  ;;  %v1317_v23 = vmul.f32 %v2952_v62, %v2037_v47 }
0x1442   :  { %v1327_v29 = vsel %vm275_vm6, %v1313_v2, 0.0  ;;  %v1316_v54 = vmul.f32 %v2952_v62, %v2039_v57 }
0x1443   :  { %v1339_v14 = vsel %vm275_vm6, %v1317_v23, 0.0 }
0x1444   :  { %v1336_v0 = vsel %vm275_vm6, %v1316_v54, 0.0 }
0x1446   :  { %1334 = vadd.xlane.f32.xlu0 %v1333_v53 }
0x1447   :  { %1331 = vadd.xlane.f32.xlu1 %v1330_v50 }
0x1448   :  { %1328 = vadd.xlane.f32.xlu2 %v1327_v29 }
0x144f   :  { %1340 = vadd.xlane.f32.xlu1 %v1339_v14 }
0x1450   :  { %1337 = vadd.xlane.f32.xlu2 %v1336_v0 }
0x14b1   :  { %v1326_v1 = vpop.xlane.xlu0 %1325 }
0x14b2   :  { %v1323_v42 = vpop.xlane.xlu1 %1322  ;;  %v1344_v17 = vsel %vm300_vm7, %v1326_v1, -inf }
0x14b3   :  { %v1320_v12 = vpop.xlane.xlu2 %1319  ;;  %v1343_v37 = vsel %vm300_vm7, %v1323_v42, -inf }
0x14b4   :  { %v1342_v44 = vsel %vm300_vm7, %v1320_v12, -inf }
0x14b9   :  { %v1335_v26 = vpop.xlane.xlu0 %1334 }
0x14ba   :  { %v1332_v8 = vpop.xlane.xlu1 %1331  ;;  %v1348_v18 = vsel %vm300_vm7, %v1335_v26, -inf }
0x14bb   :  { %v1329_v15 = vpop.xlane.xlu2 %1328  ;;  %v1346_v35 = vsel %vm300_vm7, %v1332_v8, -inf  ;;  %v1349_v7 = vmax.f32 %v1343_v37, %v1348_v18 }
0x14bc   :  { %v1347_v11 = vmax.f32 %v1342_v44, %v1346_v35  ;;  %v1345_v63 = vsel %vm300_vm7, %v1329_v15, -inf }
0x14be   :  { %v1354_v46 = vmax.f32 %v1347_v11, %v1349_v7 }
0x14c2   :  { %v1341_v27 = vpop.xlane.xlu1 %1340 }
0x14c3   :  { %v1352_v34 = vsel %vm300_vm7, %v1341_v27, -inf  ;;  %v1338_v58 = vpop.xlane.xlu2 %1337 }
0x14c4   :  { %v1353_v36 = vmax.f32 %v1345_v63, %v1352_v34  ;;  %v1350_v13 = vsel %vm300_vm7, %v1338_v58, -inf }
0x14c5   :  { %v1351_v38 = vmax.f32 %v1344_v17, %v1350_v13 }
0x14c7   :  { %v1355_v10 = vmax.f32 %v1351_v38, %v1353_v36 }
0x14c9   :  { %v1356_v28 = vmax.f32 %v1354_v46, %v1355_v10 }
0x14cb   :  { %v1357_v9 = vsub.f32 %v1320_v12, %v1356_v28  ;;  %v1358_v16 = vsub.f32 %v1323_v42, %v1356_v28  ;;  %v1359_v21 = vsub.f32 %v1326_v1, %v1356_v28  ;;  %v1360_v32 = vsub.f32 %v1329_v15, %v1356_v28 }
0x14cc   :  { %v1361_v25 = vsub.f32 %v1332_v8, %v1356_v28  ;;  %v1362_v31 = vsub.f32 %v1335_v26, %v1356_v28  ;;  %v1363_v53 = vsub.f32 %v1338_v58, %v1356_v28  ;;  %v1364_v47 = vsub.f32 %v1341_v27, %v1356_v28 }
0x14cd   :  { %v1365_v33 = vmul.f32 1.442695, %v1357_v9  ;;  %v1367_v3 = vmul.f32 1.442695, %v1358_v16  ;;  %v1369_v41 = vmul.f32 1.442695, %v1359_v21 }
0x14ce   :  { %v1371_v2 = vmul.f32 1.442695, %v1360_v32  ;;  %v1373_v50 = vmul.f32 1.442695, %v1361_v25  ;;  %v1375_v29 = vmul.f32 1.442695, %v1362_v31 }
0x14cf   :  { %2040 = vpow2.f32 %v1365_v33  ;;  %v1377_v57 = vmul.f32 1.442695, %v1363_v53  ;;  %v1379_v14 = vmul.f32 1.442695, %v1364_v47 }
0x14d0   :  { %2042 = vpow2.f32 %v1367_v3 }
0x14d1   :  { %2044 = vpow2.f32 %v1369_v41 }
0x14d2   :  { %2046 = vpow2.f32 %v1371_v2 }
0x14d3   :  { %2048 = vpow2.f32 %v1373_v50 }
0x14d4   :  { %2050 = vpow2.f32 %v1375_v29 }
0x14d5   :  { %v2041_v23 = vpop.eup %2040  ;;  %2052 = vpow2.f32 %v1377_v57 }
0x14d6   :  { %v2043_v54 = vpop.eup %2042  ;;  %v1381_v0 = vsel %vm300_vm7, %v2041_v23, 0.0  ;;  %2054 = vpow2.f32 %v1379_v14 }
0x14d7   :  { %v2045_v42 = vpop.eup %2044  ;;  %v1382_v1 = vsel %vm300_vm7, %v2043_v54, 0.0 }
0x14d8   :  { %v2047_v12 = vpop.eup %2046  ;;  %v1383_v8 = vadd.f32 %v1382_v1, %v1381_v0  ;;  %v1384_v15 = vsel %vm300_vm7, %v2045_v42, 0.0 }
0x14d9   :  { %v2049_v26 = vpop.eup %2048  ;;  %v1386_v35 = vsel %vm300_vm7, %v2047_v12, 0.0 }
0x14da   :  { %v1385_v18 = vadd.f32 %v1384_v15, %v1383_v8  ;;  %v2051_v37 = vpop.eup %2050  ;;  %v1388_v27 = vsel %vm300_vm7, %v2049_v26, 0.0 }
0x14db   :  { %v2053_v7 = vpop.eup %2052  ;;  %v1390_v63 = vsel %vm300_vm7, %v2051_v37, 0.0 }
0x14dc   :  { %v1387_v44 = vadd.f32 %v1386_v35, %v1385_v18  ;;  %v2055_v34 = vpop.eup %2054  ;;  %v1392_v17 = vsel %vm300_vm7, %v2053_v7, 0.0 }
0x14dd   :  { %v1394_v13 = vsel %vm300_vm7, %v2055_v34, 0.0 }
0x14de   :  { %v1389_v11 = vadd.f32 %v1388_v27, %v1387_v44  ;;  %v1445_v27 = vpop.f32.mrf.mxu0 }
0x14e0   :  { %v1391_v58 = vadd.f32 %v1390_v63, %v1389_v11 }
0x14e2   :  { %v1393_v36 = vadd.f32 %v1392_v17, %v1391_v58  ;;  %v2141_v17 = vld [vmem:[%s3280_s9] ss:$0 sm:$0xff]  ;;  %s1878_s9 = sld [smem:[#allocation2 + $0x4]] }
0x14e4   :  { %v1395_v38 = vadd.f32 %v1394_v13, %v1393_v36 }
0x14e6   :  { %2056 = vrcp.f32 %v1395_v38  ;;  %v1570_v58 = vpop.f32.mrf.mxu0 }
0x14e7   :  { %v1571_v36 = vadd.f32 %v2141_v17, %v1570_v58 }
0x14e8   :  { %s1521_s15 = scvt.s32.f32 %s1878_s9 }
0x14ea   :  { %s1526_s29 = ssub.f32 1.0, %s1521_s15 }
0x14ec   :  { %v2057_v46 = vpop.eup %2056 }
0x14ed   :  { %v1397_v10 = vmul.f32 %v2057_v46, %v2041_v23  ;;  %v1398_v28 = vmul.f32 %v2057_v46, %v2043_v54  ;;  %v1399_v9 = vmul.f32 %v2057_v46, %v2045_v42  ;;  %v1400_v16 = vmul.f32 %v2057_v46, %v2047_v12 }
0x14ee   :  { %v1401_v21 = vmul.f32 %v2057_v46, %v2049_v26  ;;  %v1402_v3 = vmul.f32 %v2057_v46, %v2051_v37  ;;  %v1403_v50 = vmul.f32 %v2057_v46, %v2053_v7  ;;  %v1404_v23 = vmul.f32 %v2057_v46, %v2055_v34 }
0x14ef   :  { %v1405_v32 = vmul.f32 %v3001_v40, %v1397_v10  ;;  %v1406_v25 = vmul.f32 %v3007_v51, %v1398_v28  ;;  %v1407_v33 = vmul.f32 %v3013_v30, %v1399_v9  ;;  %v1408_v41 = vmul.f32 %v3019_v19, %v1400_v16 }
0x14f0   :  { %v1409_v47 = vmul.f32 %v3027_v49, %v1401_v21  ;;  %v1410_v54 = vmul.f32 %v3034_v5, %v1402_v3  ;;  %v1411_v42 = vmul.f32 %v3041_v43, %v1403_v50  ;;  %v1412_v8 = vmul.f32 %v3048_v39, %v1404_v23 }
0x14f1   :  { %v1413_v31 = vsel %vm372_vm8, %v1405_v32, 0.0  ;;  %v1414_v2 = vsel %vm372_vm8, %v1406_v25, 0.0  ;;  %v1416_v29 = vsel %vm372_vm8, %v1407_v33, 0.0  ;;  %v1418_v14 = vsel %vm372_vm8, %v1408_v41, 0.0 }
0x14f2   :  { %v1415_v53 = vadd.f32 %v1414_v2, %v1413_v31  ;;  %v1420_v1 = vsel %vm372_vm8, %v1409_v47, 0.0  ;;  %v1422_v15 = vsel %vm372_vm8, %v1410_v54, 0.0  ;;  %v1424_v18 = vsel %vm372_vm8, %v1411_v42, 0.0 }
0x14f3   :  { %v1426_v37 = vsel %vm372_vm8, %v1412_v8, 0.0  ;;  %v1524_v50 = vstv %s1521_s15  ;;  %v1527_v47 = vstv %s1526_s29 }
0x14f4   :  { %v1417_v57 = vadd.f32 %v1416_v29, %v1415_v53  ;;  %v1879_v53 = vld [vmem:[%s3295_s22 + $0x8] sm:$0x3] }
0x14f5   :  { %v1525_v29 = vmul.f32 %v1879_v53, %v1524_v50 }
0x14f6   :  { %v1419_v0 = vadd.f32 %v1418_v14, %v1417_v57 }
0x14f8   :  { %v1421_v12 = vadd.f32 %v1420_v1, %v1419_v0 }
0x14fa   :  { %v1423_v26 = vadd.f32 %v1422_v15, %v1421_v12 }
0x14fc   :  { %v1425_v35 = vadd.f32 %v1424_v18, %v1423_v26 }
0x14fe   :  { %v1427_v44 = vadd.f32 %v1426_v37, %v1425_v35 }
0x1500   :  { %1874 = vmatmul.msk.f32.vlgmr.msrb.gmra.mxu1 %vm408_vm9, %v1427_v44 }
0x157d   :  { %v1468_v7 = vpop.f32.mrf.mxu1 }
0x157e   :  { %v1469_v11 = vadd.f32 %v1468_v7, %v1445_v27 }
0x1580   :  { %v1471_v63 = vadd.f32 %v3062_v48, %v1469_v11 }
0x1582   :  { %1473 = vst.msk [vmem:[#allocation5 + $0x8] sm:$0x3] %vm122_vm10, %v1471_v63  ;;  %v1474_v34 = vsel %vm122_vm10, %v1471_v63, -inf }
0x1583   :  { %1475 = vmax.xlane.f32.xlu0 %v1474_v34 }
0x1597   :  { %1594 = vrot.lane.b32.xlu0 %v1571_v36, %s2185_s1 }
0x15f6   :  { %v1476_v13 = vpop.xlane.xlu0 %1475 }
0x15f7   :  { %vm1477_vm4 = vcmp.eq.f32.partialorder %v1471_v63, %v1476_v13 }
0x15f8   :  { %v1478_v38 = vsel %vm1477_vm4, %v2631_v55, 29 }
0x15f9   :  { %v1479_v46 = vsel %vm122_vm10, %v1478_v38, 2147483647 }
0x15fa   :  { %v1481_v10 = vshra.s32 %v1479_v46, 16  ;;  %v1480_v9 = vand.u32 65535, %v1479_v46 }
0x15fc   :  { %v1483_v28 = vcvt.s32.f32 %v1481_v10  ;;  %v1482_v21 = vcvt.s32.f32 %v1480_v9 }
0x15fe   :  { %1484 = vmin.xlane.f32.xlu2 %v1483_v28 }
0x1671   :  { %v1485_v16 = vpop.xlane.xlu2 %1484 }
0x1672   :  { %vm1486_vm5 = vcmp.eq.f32.partialorder %v1483_v28, %v1485_v16  ;;  %v1491_v25 = vcvt.f32.s32 %v1485_v16 }
0x1673   :  { %v1487_v32 = vsel %vm1486_vm5, %v1482_v21, inf }
0x1674   :  { %1488 = vmin.xlane.f32.xlu1 %v1487_v32  ;;  %v1492_v3 = vshll.u32 %v1491_v25, 16 }
0x16e7   :  { %v1489_v33 = vpop.xlane.xlu1 %1488 }
0x16e8   :  { %v1490_v41 = vcvt.f32.s32 %v1489_v33 }
0x16ea   :  { %v1493_v31 = vadd.s32 %v1492_v3, %v1490_v41 }
0x16ec   :  { %vm1494_vm11 = vcmp.eq.s32.totalorder %v2631_v55, %v1493_v31 }
0x16ed   :  { %v1875_v2 = vsel %vm1494_vm11, 1.0, %v2188_v20 }
0x16ee   :  { %1877 = vmatmul.msk.f32.vlgmr.msrb.gmra.mxu2 %vm463_vm14, %v1875_v2  ;;  %v2142_v2 = vld [vmem:[%s3275_s4 + $0xa] sm:$0x3] }
0x1771   :  { %v1517_v57 = vpop.f32.mrf.mxu2 }
0x1772   :  { %v1528_v23 = vmul.f32 %v1527_v47, %v1517_v57 }
0x1774   :  { %v1529_v54 = vadd.f32 %v1528_v23, %v1525_v29  ;;  %v2143_v23 = vld [vmem:[%s3283_s12] ss:$0 sm:$0xff] }
0x1776   :  { %1880 = vmatmul.msk.f32.vlgmr.msrb.gmra.mxu3 %vm127_vm0, %v1529_v54 }
0x17f9   :  { %v1550_v55 = vpop.f32.mrf.mxu3 }
0x17fa   :  { %v1551_v20 = vadd.f32 %v2862_v56, %v1550_v55  ;;  %v1595_v56 = vpop.permute.xlu0 %1594 }
0x17fc   :  { %v1573_v14 = vadd.f32 %v1571_v36, %v1551_v20 }
0x17fe   :  { %v1882_v0 = vmul.f32 -1.442695, %v1573_v14 }
0x1800   :  { %2058 = vpow2.f32 %v1882_v0 }
0x1806   :  { %v2059_v42 = vpop.eup %2058 }
0x1807   :  { %v1577_v1 = vadd.f32 1.0, %v2059_v42 }
0x1809   :  { %2060 = vrcp.f32 %v1577_v1  ;;  %v1589_v26 = vand.u32 2147483648, %v1577_v1  ;;  %v1587_v35 = vand.u32 2147483647, %v1577_v1  ;;  %vm1583_vm12 = vweird.f32 %v1577_v1 }
0x180b   :  { %v1590_v44 = vor.u32 1.1754944e-38, %v1589_v26  ;;  %vm1588_vm0 = vcmp.eq.f32.partialorder %v1587_v35, 8.507059e+37 }
0x180f   :  { %v2061_v12 = vpop.eup %2060 }
0x1810   :  { %v1579_v8 = vmul.f32 %v2061_v12, %v1577_v1  ;;  %vm1584_vm14 = vweird.f32 %v2061_v12 }
0x1811   :  { %vm1585_vm13 = vmor %vm1583_vm12, %vm1584_vm14 }
0x1812   :  { %v1580_v15 = vsub.f32 1.0, %v1579_v8 }
0x1814   :  { %v1581_v18 = vmul.f32 %v2061_v12, %v1580_v15 }
0x1816   :  { %v1582_v37 = vadd.f32 %v2061_v12, %v1581_v18 }
0x1818   :  { %v1586_v27 = vsel %vm1585_vm13, %v2061_v12, %v1582_v37 }
0x1819   :  { %v1591_v7 = vsel %vm1588_vm0, %v1590_v44, %v1586_v27 }
0x181a   :  { %v1597_v11 = vmul.f32 %v1595_v56, %v1591_v7  ;;  %v1604_v17 = vsub.f32 1.0, %v1591_v7  ;;  %v1610_v13 = vmul.f32 %v1591_v7, %v3088_v6 }
0x181c   :  { %1599 = vrot.lane.b32.xlu2 %v1597_v11, %s2185_s1 }
0x1876   :  { %v1600_v63 = vpop.permute.xlu2 %1599 }
0x1877   :  { %v1602_v34 = vadd.f32 %v1600_v63, %v1551_v20 }
0x1879   :  { %2062 = vtanh.f32 %v1602_v34 }
0x187f   :  { %v2063_v58 = vpop.eup %2062 }
0x1880   :  { %1606 = vrot.lane.b32.xlu1 %v2063_v58, %s2186_s2 }
0x18f2   :  { %v1607_v36 = vpop.permute.xlu1 %1606 }
0x18f3   :  { %v1609_v38 = vmul.f32 %v1607_v36, %v1604_v17 }
0x18f5   :  { %v1611_v46 = vadd.f32 %v1610_v13, %v1609_v38 }
0x18f7   :  { %1613 = vrot.lane.b32.xlu0 %v1611_v46, %s2186_s2 }
0x1969   :  { %v1614_v10 = vpop.permute.xlu0 %1613 }
0x196a   :  { %1883 = vmatmul.msk.f32.vlgmr.msra.gmra.mxu2 %vm154_vm1, %v1614_v10  ;;  %1884 = vmatmul.msk.f32.vlgmr.msra.gmra.mxu3 %vm154_vm1, %v1614_v10 }
0x19ed   :  { %v1634_v28 = vpop.f32.mrf.mxu2 }
0x19ee   :  { %v1635_v9 = vadd.f32 %v2910_v22, %v1634_v28 }
0x19f0   :  { %v1639_v16 = vadd.f32 %v2916_v24, %v1635_v9  ;;  %v1638_v21 = vadd.f32 %v2922_v45, %v1635_v9  ;;  %v1637_v32 = vadd.f32 %v2928_v60, %v1635_v9  ;;  %v1643_v6 = vadd.f32 %v2968_v61, %v1635_v9 }
0x19f1   :  { %v1641_v25 = vadd.f32 %v2940_v52, %v1635_v9  ;;  %v1640_v33 = vadd.f32 %v2946_v59, %v1635_v9  ;;  %v1644_v31 = vadd.f32 %v2961_v4, %v1635_v9  ;;  %v1642_v53 = vadd.f32 %v2142_v2, %v1635_v9 }
0x19f2   :  { %2064 = vtanh.f32 %v1639_v16 }
0x19f3   :  { %2066 = vtanh.f32 %v1638_v21 }
0x19f4   :  { %2068 = vtanh.f32 %v1637_v32 }
0x19f5   :  { %2070 = vtanh.f32 %v1643_v6 }
0x19f6   :  { %2072 = vtanh.f32 %v1641_v25 }
0x19f7   :  { %2074 = vtanh.f32 %v1640_v33 }
0x19f8   :  { %v2065_v3 = vpop.eup %2064  ;;  %2076 = vtanh.f32 %v1644_v31 }
0x19f9   :  { %v2067_v22 = vpop.eup %2066  ;;  %v1655_v24 = vmul.f32 %v2952_v62, %v2065_v3  ;;  %2078 = vtanh.f32 %v1642_v53 }
0x19fa   :  { %v2069_v41 = vpop.eup %2068  ;;  %v1654_v45 = vmul.f32 %v2952_v62, %v2067_v22 }
0x19fb   :  { %v1667_v60 = vsel %vm275_vm6, %v1655_v24, 0.0  ;;  %v1653_v61 = vmul.f32 %v2952_v62, %v2069_v41  ;;  %v2071_v52 = vpop.eup %2070 }
0x19fc   :  { %1668 = vadd.xlane.f32.xlu1 %v1667_v60  ;;  %v1664_v59 = vsel %vm275_vm6, %v1654_v45, 0.0  ;;  %v2073_v50 = vpop.eup %2072  ;;  %v1659_v57 = vmul.f32 %v2952_v62, %v2071_v52 }
0x19fd   :  { %1665 = vadd.xlane.f32.xlu0 %v1664_v59  ;;  %v1661_v47 = vsel %vm275_vm6, %v1653_v61, 0.0  ;;  %v2075_v29 = vpop.eup %2074  ;;  %v1657_v4 = vmul.f32 %v2952_v62, %v2073_v50 }
0x19fe   :  { %1662 = vadd.xlane.f32.xlu2 %v1661_v47  ;;  %v1656_v54 = vmul.f32 %v2143_v23, %v2075_v29  ;;  %v1679_v55 = vsel %vm275_vm6, %v1659_v57, 0.0  ;;  %v2077_v14 = vpop.eup %2076 }
0x19ff   :  { %v1673_v20 = vsel %vm275_vm6, %v1657_v4, 0.0  ;;  %v2079_v42 = vpop.eup %2078  ;;  %v1660_v1 = vmul.f32 %v2143_v23, %v2077_v14 }
0x1a00   :  { %v1670_v0 = vsel %vm275_vm6, %v1656_v54, 0.0  ;;  %v1658_v12 = vmul.f32 %v2143_v23, %v2079_v42 }
0x1a01   :  { %v1682_v62 = vsel %vm275_vm6, %v1660_v1, 0.0 }
0x1a02   :  { %v1676_v8 = vsel %vm275_vm6, %v1658_v12, 0.0 }
0x1a04   :  { %1680 = vadd.xlane.f32.xlu1 %v1679_v55 }
0x1a05   :  { %1674 = vadd.xlane.f32.xlu0 %v1673_v20 }
0x1a06   :  { %1671 = vadd.xlane.f32.xlu2 %v1670_v0 }
0x1a0d   :  { %1683 = vadd.xlane.f32.xlu0 %v1682_v62 }
0x1a0e   :  { %1677 = vadd.xlane.f32.xlu2 %v1676_v8 }
0x1a6f   :  { %v1669_v18 = vpop.xlane.xlu1 %1668 }
0x1a70   :  { %v1666_v15 = vpop.xlane.xlu0 %1665  ;;  %v1687_v11 = vsel %vm300_vm7, %v1669_v18, -inf }
0x1a71   :  { %v1663_v26 = vpop.xlane.xlu2 %1662  ;;  %v1686_v63 = vsel %vm300_vm7, %v1666_v15, -inf }
0x1a72   :  { %v1685_v36 = vsel %vm300_vm7, %v1663_v26, -inf }
0x1a77   :  { %v1681_v44 = vpop.xlane.xlu1 %1680 }
0x1a78   :  { %v1675_v35 = vpop.xlane.xlu0 %1674  ;;  %v1693_v27 = vsel %vm300_vm7, %v1681_v44, -inf }
0x1a79   :  { %v1672_v37 = vpop.xlane.xlu2 %1671  ;;  %v1689_v56 = vsel %vm300_vm7, %v1675_v35, -inf  ;;  %v1694_v13 = vmax.f32 %v1687_v11, %v1693_v27 }
0x1a7a   :  { %v1688_v34 = vsel %vm300_vm7, %v1672_v37, -inf  ;;  %v1690_v10 = vmax.f32 %v1685_v36, %v1689_v56 }
0x1a80   :  { %v1684_v7 = vpop.xlane.xlu0 %1683 }
0x1a81   :  { %v1695_v58 = vsel %vm300_vm7, %v1684_v7, -inf  ;;  %v1678_v17 = vpop.xlane.xlu2 %1677 }
0x1a82   :  { %v1696_v38 = vmax.f32 %v1688_v34, %v1695_v58  ;;  %v1691_v46 = vsel %vm300_vm7, %v1678_v17, -inf }
0x1a83   :  { %v1692_v28 = vmax.f32 %v1686_v63, %v1691_v46 }
0x1a84   :  { %v1698_v9 = vmax.f32 %v1694_v13, %v1696_v38 }
0x1a85   :  { %v1697_v16 = vmax.f32 %v1690_v10, %v1692_v28 }
0x1a87   :  { %v1699_v21 = vmax.f32 %v1697_v16, %v1698_v9 }
0x1a89   :  { %v1700_v32 = vsub.f32 %v1663_v26, %v1699_v21  ;;  %v1701_v6 = vsub.f32 %v1666_v15, %v1699_v21  ;;  %v1702_v25 = vsub.f32 %v1669_v18, %v1699_v21  ;;  %v1703_v33 = vsub.f32 %v1672_v37, %v1699_v21 }
0x1a8a   :  { %v1704_v3 = vsub.f32 %v1675_v35, %v1699_v21  ;;  %v1705_v45 = vsub.f32 %v1678_v17, %v1699_v21  ;;  %v1706_v61 = vsub.f32 %v1681_v44, %v1699_v21  ;;  %v1707_v52 = vsub.f32 %v1684_v7, %v1699_v21 }
0x1a8b   :  { %v1708_v22 = vmul.f32 1.442695, %v1700_v32  ;;  %v1710_v24 = vmul.f32 1.442695, %v1701_v6  ;;  %v1712_v41 = vmul.f32 1.442695, %v1702_v25 }
0x1a8c   :  { %v1714_v60 = vmul.f32 1.442695, %v1703_v33  ;;  %v1716_v31 = vmul.f32 1.442695, %v1704_v3  ;;  %v1718_v59 = vmul.f32 1.442695, %v1705_v45 }
0x1a8d   :  { %2080 = vpow2.f32 %v1708_v22  ;;  %v1720_v2 = vmul.f32 1.442695, %v1706_v61  ;;  %v1722_v47 = vmul.f32 1.442695, %v1707_v52  ;;  %v1788_v61 = vpop.f32.mrf.mxu3 }
0x1a8e   :  { %2082 = vpow2.f32 %v1710_v24 }
0x1a8f   :  { %2084 = vpow2.f32 %v1712_v41 }
0x1a90   :  { %2086 = vpow2.f32 %v1714_v60 }
0x1a91   :  { %2088 = vpow2.f32 %v1716_v31 }
0x1a92   :  { %2090 = vpow2.f32 %v1718_v59 }
0x1a93   :  { %v2081_v53 = vpop.eup %2080  ;;  %2092 = vpow2.f32 %v1720_v2 }
0x1a94   :  { %v2083_v50 = vpop.eup %2082  ;;  %v1724_v29 = vsel %vm300_vm7, %v2081_v53, 0.0  ;;  %2094 = vpow2.f32 %v1722_v47 }
0x1a95   :  { %v2085_v57 = vpop.eup %2084  ;;  %v1725_v4 = vsel %vm300_vm7, %v2083_v50, 0.0 }
0x1a96   :  { %v2087_v23 = vpop.eup %2086  ;;  %v1726_v54 = vadd.f32 %v1725_v4, %v1724_v29  ;;  %v1727_v55 = vsel %vm300_vm7, %v2085_v57, 0.0 }
0x1a97   :  { %v2089_v20 = vpop.eup %2088  ;;  %v1729_v0 = vsel %vm300_vm7, %v2087_v23, 0.0 }
0x1a98   :  { %v1728_v14 = vadd.f32 %v1727_v55, %v1726_v54  ;;  %v2091_v42 = vpop.eup %2090  ;;  %v1731_v12 = vsel %vm300_vm7, %v2089_v20, 0.0 }
0x1a99   :  { %v2093_v62 = vpop.eup %2092  ;;  %v1733_v15 = vsel %vm300_vm7, %v2091_v42, 0.0 }
0x1a9a   :  { %v1730_v1 = vadd.f32 %v1729_v0, %v1728_v14  ;;  %v2095_v26 = vpop.eup %2094  ;;  %v1735_v35 = vsel %vm300_vm7, %v2093_v62, 0.0 }
0x1a9b   :  { %v1737_v44 = vsel %vm300_vm7, %v2095_v26, 0.0 }
0x1a9c   :  { %v1732_v8 = vadd.f32 %v1731_v12, %v1730_v1 }
0x1a9e   :  { %v1734_v18 = vadd.f32 %v1733_v15, %v1732_v8 }
0x1aa0   :  { %v1736_v37 = vadd.f32 %v1735_v35, %v1734_v18 }
0x1aa2   :  { %v1738_v27 = vadd.f32 %v1737_v44, %v1736_v37 }
0x1aa4   :  { %2096 = vrcp.f32 %v1738_v27 }
0x1aaa   :  { %v2097_v56 = vpop.eup %2096 }
0x1aab   :  { %v1740_v7 = vmul.f32 %v2097_v56, %v2081_v53  ;;  %v1741_v11 = vmul.f32 %v2097_v56, %v2083_v50  ;;  %v1742_v63 = vmul.f32 %v2097_v56, %v2085_v57  ;;  %v1743_v34 = vmul.f32 %v2097_v56, %v2087_v23 }
0x1aac   :  { %v1744_v58 = vmul.f32 %v2097_v56, %v2089_v20  ;;  %v1745_v38 = vmul.f32 %v2097_v56, %v2091_v42  ;;  %v1746_v32 = vmul.f32 %v2097_v56, %v2093_v62  ;;  %v1747_v25 = vmul.f32 %v2097_v56, %v2095_v26 }
0x1aad   :  { %v1748_v17 = vmul.f32 %v3001_v40, %v1740_v7  ;;  %v1749_v36 = vmul.f32 %v3007_v51, %v1741_v11  ;;  %v1750_v13 = vmul.f32 %v3013_v30, %v1742_v63  ;;  %v1751_v46 = vmul.f32 %v3019_v19, %v1743_v34 }
0x1aae   :  { %v1752_v16 = vmul.f32 %v3027_v49, %v1744_v58  ;;  %v1753_v40 = vmul.f32 %v3034_v5, %v1745_v38  ;;  %v1754_v19 = vmul.f32 %v3041_v43, %v1746_v32  ;;  %v1755_v24 = vmul.f32 %v3048_v39, %v1747_v25 }
0x1aaf   :  { %v1756_v10 = vsel %vm372_vm8, %v1748_v17, 0.0  ;;  %v1757_v28 = vsel %vm372_vm8, %v1749_v36, 0.0  ;;  %v1759_v21 = vsel %vm372_vm8, %v1750_v13, 0.0  ;;  %v1761_v51 = vsel %vm372_vm8, %v1751_v46, 0.0 }
0x1ab0   :  { %v1758_v9 = vadd.f32 %v1757_v28, %v1756_v10  ;;  %v1763_v33 = vsel %vm372_vm8, %v1752_v16, 0.0  ;;  %v1765_v22 = vsel %vm372_vm8, %v1753_v40, 0.0  ;;  %v1767_v41 = vsel %vm372_vm8, %v1754_v19, 0.0 }
0x1ab1   :  { %v1769_v60 = vsel %vm372_vm8, %v1755_v24, 0.0 }
0x1ab2   :  { %v1760_v6 = vadd.f32 %v1759_v21, %v1758_v9 }
0x1ab4   :  { %v1762_v30 = vadd.f32 %v1761_v51, %v1760_v6 }
0x1ab6   :  { %v1764_v3 = vadd.f32 %v1763_v33, %v1762_v30 }
0x1ab8   :  { %v1766_v49 = vadd.f32 %v1765_v22, %v1764_v3 }
0x1aba   :  { %v1768_v45 = vadd.f32 %v1767_v41, %v1766_v49 }
0x1abc   :  { %v1770_v5 = vadd.f32 %v1769_v60, %v1768_v45 }
0x1abe   :  { %1885 = vmatmul.msk.f32.vlgmr.msra.gmra.mxu0 %vm408_vm9, %v1770_v5 }
0x1b3b   :  { %v1811_v43 = vpop.f32.mrf.mxu0 }
0x1b3c   :  { %v1812_v31 = vadd.f32 %v1811_v43, %v1788_v61 }
0x1b3e   :  { %v1814_v39 = vadd.f32 %v3062_v48, %v1812_v31 }
0x1b40   :  { %1816 = vst.msk [vmem:[#allocation5 + $0xa] sm:$0x3] %vm122_vm10, %v1814_v39 }
0x1b41   :  { %1829 = dma.vmem_to_hbm [thread:$0]  %s1822_s16, 192, %s1824_s6, [#allocation3], %s2187_s23, %s2187_s23, %s2190_s17  }
0x1b42   :  { %2182 = dma.done.wait [#allocation3], 192  }
0x1b43   :  { %2183 = vsyncadd [#allocation3], 4294967104 }
0x1b44   :  { %1834 = vsyncpa [#allocation3], 1 }
0x1b45   :  { %1835 = vsyncpa [#allocation4], 1 }

</bundles_post_ra>
